<compile_context>
chip_gen: v5e
topology: v5e:2x2
jax: 0.10.0
libtpu: 0.0.40
codegen_flags: <defaults>
</compile_context>

<pallas_src>
import functools

import jax
import jax.numpy as jnp
from jax import lax
from jax.experimental import pallas as pl
from jax.experimental.pallas import tpu as pltpu


def _round_up(x, m):
    return (x + m - 1) // m * m


def _disambiguation_lstm_kernel(
    emb_ref,      # (S*Bt, D)   f32  time-major embedded batch tile
    wih_f_ref,    # (D, 4Hp)    forward input weights (x @ W layout)
    whh_f_ref,    # (Hp, 4Hp)   forward recurrent weights
    b_f_ref,      # (1, 4Hp)    forward bias (b_ih + b_hh)
    wih_b_ref,    # (D, 4Hp)    reverse input weights
    b_b_ref,      # (1, 4Hp)    reverse bias
    wlin_f_ref,   # (Hp, Pp)    final linear, forward half
    wlin_b_ref,   # (Hp, Pp)    final linear, reverse half
    blin_ref,     # (1, Pp)     final linear bias
    out_ref,      # (Bt, Pp)    output logits (lane-dense, padded)
    gx_ref,       # scratch VMEM (S*Bt, 4Hp): precomputed input projections
):
    SB, _ = emb_ref.shape
    Hp = whh_f_ref.shape[0]
    Bt = out_ref.shape[0]
    S = SB // Bt

    # One big MXU matmul for the input contribution of every timestep's
    # forward gates, stored flat so each per-step read is a sublane-aligned
    # (Bt, 4Hp) slab.  emb is consumed immediately (not held live over the
    # recurrence).
    gx_ref[...] = (
        jnp.dot(emb_ref[...], wih_f_ref[...],
                preferred_element_type=jnp.float32)
        + b_f_ref[...]
    )

    def lstm_cell(gates, c_prev):
        # PyTorch gate order: i, f, g, o (each slice is 128-lane aligned).
        i = jax.nn.sigmoid(gates[:, 0 * Hp:1 * Hp])
        f = jax.nn.sigmoid(gates[:, 1 * Hp:2 * Hp])
        g = jnp.tanh(gates[:, 2 * Hp:3 * Hp])
        o = jax.nn.sigmoid(gates[:, 3 * Hp:4 * Hp])
        c = f * c_prev + i * g
        h = o * jnp.tanh(c)
        return h, c

    def fwd_step(t, carry):
        h, c = carry
        start = pl.multiple_of(t * Bt, Bt)
        gates = gx_ref[pl.ds(start, Bt), :] + jnp.dot(
            h, whh_f_ref[...], preferred_element_type=jnp.float32)
        return lstm_cell(gates, c)

    h0 = jnp.zeros((Bt, Hp), jnp.float32)
    c0 = jnp.zeros((Bt, Hp), jnp.float32)
    # Serial critical path: fully unrolled so the LLO scheduler can overlap
    # the tiny per-step matmul / EUP work across iterations.
    h_fwd, _ = lax.fori_loop(0, S, fwd_step, (h0, c0), unroll=True)

    # Reverse-direction contribution to output[:, -1, :]: exactly one cell
    # step on x[:, -1, :] starting from the zero state (h0 @ Whh_b == 0, so
    # that matmul and weight are omitted entirely).
    x_last = emb_ref[pl.ds((S - 1) * Bt, Bt), :]
    gates_b = (
        jnp.dot(x_last, wih_b_ref[...], preferred_element_type=jnp.float32)
        + b_b_ref[...]
    )
    h_bwd, _ = lstm_cell(gates_b, c0)

    # Final linear as two half-matmuls (no lane-axis concat) into a
    # lane-dense (Bt, Pp) store.
    out_ref[...] = (
        jnp.dot(h_fwd, wlin_f_ref[...], preferred_element_type=jnp.float32)
        + jnp.dot(h_bwd, wlin_b_ref[...], preferred_element_type=jnp.float32)
        + blin_ref[...]
    )


def _pad_gate_cols(w, H, Hp):
    """Zero-pad the packed (..., 4H) gate axis to (..., 4Hp), per gate."""
    lead = w.shape[:-1]
    w = w.reshape(lead + (4, H))
    pad = [(0, 0)] * len(lead) + [(0, 0), (0, Hp - H)]
    return jnp.pad(w, pad).reshape(lead + (4 * Hp,))


def _pad_to(x, axis, new):
    pad = [(0, 0)] * x.ndim
    pad[axis] = (0, new - x.shape[axis])
    return jnp.pad(x, pad)


@functools.partial(jax.jit, static_argnames=("batch_tile",))
def disambiguation_lstm_forward(x_idx, params, *, batch_tile=8):
    """x_idx: int32 (batch, seq) token indices -> (batch, n_pronounce) f32."""
    emb_table = params["embedding"]
    B, S = x_idx.shape
    D = emb_table.shape[1]
    H = params["whh_f"].shape[0]
    P = params["wlin"].shape[1]

    Bt = batch_tile                      # sublane-aligned batch tile
    Hp = _round_up(H, 128)               # lane-align every gate slice
    Pp = _round_up(P, 128)               # lane-dense output store
    B_pad = _round_up(max(B, Bt), Bt)
    n_bt = B_pad // Bt

    # ---- plain-JAX glue: embedding gather + padding / layout ----
    emb = jnp.take(emb_table, x_idx, axis=0).astype(jnp.float32)     # (B, S, D)
    emb = _pad_to(emb, 0, B_pad)
    emb = emb.reshape(n_bt, Bt, S, D).transpose(0, 2, 1, 3)          # (n_bt, S, Bt, D)
    emb = emb.reshape(n_bt, S * Bt, D)                               # time-major tiles

    wih_f = _pad_gate_cols(params["wih_f"], H, Hp)                   # (D, 4Hp)
    whh_f = _pad_to(_pad_gate_cols(params["whh_f"], H, Hp), 0, Hp)   # (Hp, 4Hp)
    b_f = _pad_gate_cols(params["b_f"], H, Hp)                       # (1, 4Hp)
    wih_b = _pad_gate_cols(params["wih_b"], H, Hp)                   # (D, 4Hp)
    b_b = _pad_gate_cols(params["b_b"], H, Hp)                       # (1, 4Hp)
    wlin_f = _pad_to(_pad_to(params["wlin"][:H], 0, Hp), 1, Pp)      # (Hp, Pp)
    wlin_b = _pad_to(_pad_to(params["wlin"][H:], 0, Hp), 1, Pp)      # (Hp, Pp)
    blin = _pad_to(params["blin"], 1, Pp)                            # (1, Pp)

    # ---- explicit VMEM budget (sized to fit v7x's 64 MiB per TC) ----
    est_bytes = 4 * (
        2 * S * Bt * D                                    # emb tile (double buf)
        + S * Bt * 4 * Hp                                 # gx scratch
        + 2 * (2 * D * 4 * Hp + Hp * 4 * Hp + 2 * 4 * Hp
               + 2 * Hp * Pp + Pp)                        # resident weights
        + 2 * Bt * Pp                                     # output tile (double buf)
    )
    vmem_limit = int(min(max(2 * est_bytes, 16 * 1024 * 1024),
                         64 * 1024 * 1024))

    vmem_full = pl.BlockSpec(memory_space=pltpu.MemorySpace.VMEM)
    out = pl.pallas_call(
        _disambiguation_lstm_kernel,
        out_shape=jax.ShapeDtypeStruct((n_bt, Bt, Pp), jnp.float32),
        grid_spec=pltpu.PrefetchScalarGridSpec(
            num_scalar_prefetch=0,
            grid=(n_bt,),
            in_specs=[
                pl.BlockSpec((None, S * Bt, D), lambda b: (b, 0, 0)),  # emb tile
                vmem_full, vmem_full, vmem_full,      # wih_f, whh_f, b_f
                vmem_full, vmem_full,                 # wih_b, b_b
                vmem_full, vmem_full, vmem_full,      # wlin_f, wlin_b, blin
            ],
            out_specs=pl.BlockSpec((None, Bt, Pp), lambda b: (b, 0, 0)),
            scratch_shapes=[pltpu.VMEM((S * Bt, 4 * Hp), jnp.float32)],
        ),
        compiler_params=pltpu.CompilerParams(
            dimension_semantics=("parallel",),   # batch tiles -> both v7x TCs
            vmem_limit_bytes=vmem_limit,
        ),
    )(emb, wih_f, whh_f, b_f, wih_b, b_b, wlin_f, wlin_b, blin)

    return out.reshape(B_pad, Pp)[:B, :P]


def make_params(key, n_word, word_dim, word_hidden, n_pronounce):
    """Deterministic synthetic parameters (PyTorch-style uniform init)."""
    ks = jax.random.split(key, 12)
    H = word_hidden
    s_lstm = 1.0 / jnp.sqrt(H)
    s_lin = 1.0 / jnp.sqrt(2 * H)

    def u(k, shape, s):
        return jax.random.uniform(k, shape, jnp.float32, -s, s)

    return {
        "embedding": jax.random.normal(ks[0], (n_word, word_dim), jnp.float32),
        # forward direction (stored in x @ W layout: (in, 4H))
        "wih_f": u(ks[1], (word_dim, 4 * H), s_lstm),
        "whh_f": u(ks[2], (H, 4 * H), s_lstm),
        "b_f":   u(ks[3], (1, 4 * H), s_lstm) + u(ks[4], (1, 4 * H), s_lstm),
        # reverse direction (whh_b only used by the reference; it multiplies h0=0)
        "wih_b": u(ks[5], (word_dim, 4 * H), s_lstm),
        "whh_b": u(ks[6], (H, 4 * H), s_lstm),
        "b_b":   u(ks[7], (1, 4 * H), s_lstm) + u(ks[8], (1, 4 * H), s_lstm),
        # final linear
        "wlin":  u(ks[9], (2 * H, n_pronounce), s_lin),
        "blin":  u(ks[10], (1, n_pronounce), s_lin),
    }


def reference_forward(x_idx, params):
    """Pure-JAX reference matching the PyTorch forward semantics."""
    emb = jnp.take(params["embedding"], x_idx, axis=0)               # (B, S, D)
    B, S, _ = emb.shape
    H = params["whh_f"].shape[0]

    def cell(x_t, h, c, wih, whh, b):
        gates = x_t @ wih + h @ whh + b
        i = jax.nn.sigmoid(gates[:, :H])
        f = jax.nn.sigmoid(gates[:, H:2 * H])
        g = jnp.tanh(gates[:, 2 * H:3 * H])
        o = jax.nn.sigmoid(gates[:, 3 * H:])
        c = f * c + i * g
        h = o * jnp.tanh(c)
        return h, c

    h = jnp.zeros((B, H), jnp.float32)
    c = jnp.zeros((B, H), jnp.float32)
    for t in range(S):
        h, c = cell(emb[:, t, :], h, c,
                    params["wih_f"], params["whh_f"], params["b_f"])
    hb = jnp.zeros((B, H), jnp.float32)
    cb = jnp.zeros((B, H), jnp.float32)
    hb, cb = cell(emb[:, S - 1, :], hb, cb,
                  params["wih_b"], params["whh_b"], params["b_b"])
    feats = jnp.concatenate([h, hb], axis=-1)
    return feats @ params["wlin"] + params["blin"]


if __name__ == "__main__":
    n_word, word_dim, word_hidden, n_pronounce = 16, 32, 32, 8
    batch, seq = 2, 8

    key = jax.random.PRNGKey(0)
    k_param, k_idx = jax.random.split(key)
    params = make_params(k_param, n_word, word_dim, word_hidden, n_pronounce)
    x_idx = jax.random.randint(k_idx, (batch, seq), 0, n_word, jnp.int32)

    out = jax.block_until_ready(disambiguation_lstm_forward(x_idx, params))
    ref = jax.block_until_ready(reference_forward(x_idx, params))

    assert out.shape == (batch, n_pronounce)
    assert jnp.allclose(out, ref, atol=1e-4, rtol=1e-4), \
        float(jnp.max(jnp.abs(out - ref)))
    print("KERNEL_OK")
</pallas_src>

<mosaic_0001>
module attributes {stable_mosaic.version = 11 : i64} {
  func.func @_disambiguation_lstm_kernel(%arg0: i32, %arg1: memref<1x64x32xf32, #tpu.memory_space<vmem>>, %arg2: memref<32x512xf32, #tpu.memory_space<vmem>>, %arg3: memref<128x512xf32, #tpu.memory_space<vmem>>, %arg4: memref<1x512xf32, #tpu.memory_space<vmem>>, %arg5: memref<32x512xf32, #tpu.memory_space<vmem>>, %arg6: memref<1x512xf32, #tpu.memory_space<vmem>>, %arg7: memref<128x128xf32, #tpu.memory_space<vmem>>, %arg8: memref<128x128xf32, #tpu.memory_space<vmem>>, %arg9: memref<1x128xf32, #tpu.memory_space<vmem>>, %arg10: memref<1x8x128xf32, #tpu.memory_space<vmem>>, %arg11: memref<64x512xf32, #tpu.memory_space<vmem>>) attributes {dimension_semantics = [#tpu.dimension_semantics<parallel>], iteration_bounds = array<i64: 1>, scalar_prefetch = 0 : i64, scratch_operands = 1 : i64, tpu.core_type = #tpu.core_type<tc>, window_params = [{transform_indices = @transform_0, window_bounds = array<i64: 1, 64, 32>}, {pipeline_mode = #tpu.pipeline_mode<synchronous>, transform_indices = @transform_1, window_bounds = array<i64: 32, 512>}, {pipeline_mode = #tpu.pipeline_mode<synchronous>, transform_indices = @transform_2, window_bounds = array<i64: 128, 512>}, {pipeline_mode = #tpu.pipeline_mode<synchronous>, transform_indices = @transform_3, window_bounds = array<i64: 1, 512>}, {pipeline_mode = #tpu.pipeline_mode<synchronous>, transform_indices = @transform_4, window_bounds = array<i64: 32, 512>}, {pipeline_mode = #tpu.pipeline_mode<synchronous>, transform_indices = @transform_5, window_bounds = array<i64: 1, 512>}, {pipeline_mode = #tpu.pipeline_mode<synchronous>, transform_indices = @transform_6, window_bounds = array<i64: 128, 128>}, {pipeline_mode = #tpu.pipeline_mode<synchronous>, transform_indices = @transform_7, window_bounds = array<i64: 128, 128>}, {pipeline_mode = #tpu.pipeline_mode<synchronous>, transform_indices = @transform_8, window_bounds = array<i64: 1, 128>}, {transform_indices = @transform_9, window_bounds = array<i64: 1, 8, 128>}]} {
    %c0 = arith.constant 0 : index
    %c0_0 = arith.constant 0 : index
    %c0_1 = arith.constant 0 : index
    %0 = vector.load %arg1[%c0, %c0_0, %c0_1] : memref<1x64x32xf32, #tpu.memory_space<vmem>>, vector<1x64x32xf32>
    %1 = vector.shape_cast %0 : vector<1x64x32xf32> to vector<64x32xf32>
    %c0_2 = arith.constant 0 : index
    %c0_3 = arith.constant 0 : index
    %2 = vector.load %arg2[%c0_2, %c0_3] : memref<32x512xf32, #tpu.memory_space<vmem>>, vector<32x512xf32>
    %cst = arith.constant dense<0.000000e+00> : vector<64x512xf32>
    %3 = tpu.matmul %1, %2, %cst {dimension_numbers = #tpu.dot_dimension_numbers<[1], [0], [0], [1], [0, 0, 1, 1], [], []>} : vector<64x32xf32>, vector<32x512xf32>, vector<64x512xf32> -> vector<64x512xf32>
    %c0_4 = arith.constant 0 : index
    %c0_5 = arith.constant 0 : index
    %4 = vector.load %arg4[%c0_4, %c0_5] : memref<1x512xf32, #tpu.memory_space<vmem>>, vector<1x512xf32>
    %5 = vector.broadcast %4 : vector<1x512xf32> to vector<64x512xf32>
    %6 = arith.addf %3, %5 : vector<64x512xf32>
    %c0_6 = arith.constant 0 : index
    %c0_7 = arith.constant 0 : index
    %7 = vector.load %arg11[%c0_6, %c0_7] : memref<64x512xf32, #tpu.memory_space<vmem>>, vector<64x512xf32>
    tpu.vector_store %arg11[%c0_6, %c0_7], %6 {strides = array<i32>} : memref<64x512xf32, #tpu.memory_space<vmem>>, vector<64x512xf32>,
    %cst_8 = arith.constant 0.000000e+00 : f32
    %8 = vector.broadcast %cst_8 : f32 to vector<8x128xf32>
    %cst_9 = arith.constant 0.000000e+00 : f32
    %9 = vector.broadcast %cst_9 : f32 to vector<8x128xf32>
    %c0_i32 = arith.constant 0 : i32
    %c8_i32 = arith.constant 8 : i32
    %10 = arith.muli %c0_i32, %c8_i32 : i32
    %11 = tpu.assume_multiple %10, 8 : i32
    %12 = arith.index_cast %11 : i32 to index
    %c0_10 = arith.constant 0 : index
    %13 = vector.load %arg11[%12, %c0_10] : memref<64x512xf32, #tpu.memory_space<vmem>>, vector<8x512xf32>
    %c0_11 = arith.constant 0 : index
    %c0_12 = arith.constant 0 : index
    %14 = vector.load %arg3[%c0_11, %c0_12] : memref<128x512xf32, #tpu.memory_space<vmem>>, vector<128x512xf32>
    %cst_13 = arith.constant dense<0.000000e+00> : vector<8x512xf32>
    %15 = tpu.matmul %8, %14, %cst_13 {dimension_numbers = #tpu.dot_dimension_numbers<[1], [0], [0], [1], [0, 0, 1, 1], [], []>} : vector<8x128xf32>, vector<128x512xf32>, vector<8x512xf32> -> vector<8x512xf32>
    %16 = arith.addf %13, %15 : vector<8x512xf32>
    %17 = vector.extract_strided_slice %16 {offsets = [0, 0], sizes = [8, 128], strides = [1, 1]} : vector<8x512xf32> to vector<8x128xf32>
    %18 = arith.negf %17 : vector<8x128xf32>
    %19 = math.exp %18 : vector<8x128xf32>
    %cst_14 = arith.constant 1.000000e+00 : f32
    %20 = vector.broadcast %cst_14 : f32 to vector<8x128xf32>
    %21 = arith.addf %20, %19 : vector<8x128xf32>
    %22 = arith.divf %20, %21 : vector<8x128xf32>
    %23 = vector.extract_strided_slice %16 {offsets = [0, 128], sizes = [8, 128], strides = [1, 1]} : vector<8x512xf32> to vector<8x128xf32>
    %24 = arith.negf %23 : vector<8x128xf32>
    %25 = math.exp %24 : vector<8x128xf32>
    %cst_15 = arith.constant 1.000000e+00 : f32
    %26 = vector.broadcast %cst_15 : f32 to vector<8x128xf32>
    %27 = arith.addf %26, %25 : vector<8x128xf32>
    %28 = arith.divf %26, %27 : vector<8x128xf32>
    %29 = vector.extract_strided_slice %16 {offsets = [0, 256], sizes = [8, 128], strides = [1, 1]} : vector<8x512xf32> to vector<8x128xf32>
    %30 = math.tanh %29 : vector<8x128xf32>
    %31 = vector.extract_strided_slice %16 {offsets = [0, 384], sizes = [8, 128], strides = [1, 1]} : vector<8x512xf32> to vector<8x128xf32>
    %32 = arith.negf %31 : vector<8x128xf32>
    %33 = math.exp %32 : vector<8x128xf32>
    %cst_16 = arith.constant 1.000000e+00 : f32
    %34 = vector.broadcast %cst_16 : f32 to vector<8x128xf32>
    %35 = arith.addf %34, %33 : vector<8x128xf32>
    %36 = arith.divf %34, %35 : vector<8x128xf32>
    %37 = arith.mulf %28, %9 : vector<8x128xf32>
    %38 = arith.mulf %22, %30 : vector<8x128xf32>
    %39 = arith.addf %37, %38 : vector<8x128xf32>
    %40 = math.tanh %39 : vector<8x128xf32>
    %41 = arith.mulf %36, %40 : vector<8x128xf32>
    %c1_i32 = arith.constant 1 : i32
    %c8_i32_17 = arith.constant 8 : i32
    %42 = arith.muli %c1_i32, %c8_i32_17 : i32
    %43 = tpu.assume_multiple %42, 8 : i32
    %44 = arith.index_cast %43 : i32 to index
    %c0_18 = arith.constant 0 : index
    %45 = vector.load %arg11[%44, %c0_18] : memref<64x512xf32, #tpu.memory_space<vmem>>, vector<8x512xf32>
    %c0_19 = arith.constant 0 : index
    %c0_20 = arith.constant 0 : index
    %46 = vector.load %arg3[%c0_19, %c0_20] : memref<128x512xf32, #tpu.memory_space<vmem>>, vector<128x512xf32>
    %cst_21 = arith.constant dense<0.000000e+00> : vector<8x512xf32>
    %47 = tpu.matmul %41, %46, %cst_21 {dimension_numbers = #tpu.dot_dimension_numbers<[1], [0], [0], [1], [0, 0, 1, 1], [], []>} : vector<8x128xf32>, vector<128x512xf32>, vector<8x512xf32> -> vector<8x512xf32>
    %48 = arith.addf %45, %47 : vector<8x512xf32>
    %49 = vector.extract_strided_slice %48 {offsets = [0, 0], sizes = [8, 128], strides = [1, 1]} : vector<8x512xf32> to vector<8x128xf32>
    %50 = arith.negf %49 : vector<8x128xf32>
    %51 = math.exp %50 : vector<8x128xf32>
    %cst_22 = arith.constant 1.000000e+00 : f32
    %52 = vector.broadcast %cst_22 : f32 to vector<8x128xf32>
    %53 = arith.addf %52, %51 : vector<8x128xf32>
    %54 = arith.divf %52, %53 : vector<8x128xf32>
    %55 = vector.extract_strided_slice %48 {offsets = [0, 128], sizes = [8, 128], strides = [1, 1]} : vector<8x512xf32> to vector<8x128xf32>
    %56 = arith.negf %55 : vector<8x128xf32>
    %57 = math.exp %56 : vector<8x128xf32>
    %cst_23 = arith.constant 1.000000e+00 : f32
    %58 = vector.broadcast %cst_23 : f32 to vector<8x128xf32>
    %59 = arith.addf %58, %57 : vector<8x128xf32>
    %60 = arith.divf %58, %59 : vector<8x128xf32>
    %61 = vector.extract_strided_slice %48 {offsets = [0, 256], sizes = [8, 128], strides = [1, 1]} : vector<8x512xf32> to vector<8x128xf32>
    %62 = math.tanh %61 : vector<8x128xf32>
    %63 = vector.extract_strided_slice %48 {offsets = [0, 384], sizes = [8, 128], strides = [1, 1]} : vector<8x512xf32> to vector<8x128xf32>
    %64 = arith.negf %63 : vector<8x128xf32>
    %65 = math.exp %64 : vector<8x128xf32>
    %cst_24 = arith.constant 1.000000e+00 : f32
    %66 = vector.broadcast %cst_24 : f32 to vector<8x128xf32>
    %67 = arith.addf %66, %65 : vector<8x128xf32>
    %68 = arith.divf %66, %67 : vector<8x128xf32>
    %69 = arith.mulf %60, %39 : vector<8x128xf32>
    %70 = arith.mulf %54, %62 : vector<8x128xf32>
    %71 = arith.addf %69, %70 : vector<8x128xf32>
    %72 = math.tanh %71 : vector<8x128xf32>
    %73 = arith.mulf %68, %72 : vector<8x128xf32>
    %c2_i32 = arith.constant 2 : i32
    %c8_i32_25 = arith.constant 8 : i32
    %74 = arith.muli %c2_i32, %c8_i32_25 : i32
    %75 = tpu.assume_multiple %74, 8 : i32
    %76 = arith.index_cast %75 : i32 to index
    %c0_26 = arith.constant 0 : index
    %77 = vector.load %arg11[%76, %c0_26] : memref<64x512xf32, #tpu.memory_space<vmem>>, vector<8x512xf32>
    %c0_27 = arith.constant 0 : index
    %c0_28 = arith.constant 0 : index
    %78 = vector.load %arg3[%c0_27, %c0_28] : memref<128x512xf32, #tpu.memory_space<vmem>>, vector<128x512xf32>
    %cst_29 = arith.constant dense<0.000000e+00> : vector<8x512xf32>
    %79 = tpu.matmul %73, %78, %cst_29 {dimension_numbers = #tpu.dot_dimension_numbers<[1], [0], [0], [1], [0, 0, 1, 1], [], []>} : vector<8x128xf32>, vector<128x512xf32>, vector<8x512xf32> -> vector<8x512xf32>
    %80 = arith.addf %77, %79 : vector<8x512xf32>
    %81 = vector.extract_strided_slice %80 {offsets = [0, 0], sizes = [8, 128], strides = [1, 1]} : vector<8x512xf32> to vector<8x128xf32>
    %82 = arith.negf %81 : vector<8x128xf32>
    %83 = math.exp %82 : vector<8x128xf32>
    %cst_30 = arith.constant 1.000000e+00 : f32
    %84 = vector.broadcast %cst_30 : f32 to vector<8x128xf32>
    %85 = arith.addf %84, %83 : vector<8x128xf32>
    %86 = arith.divf %84, %85 : vector<8x128xf32>
    %87 = vector.extract_strided_slice %80 {offsets = [0, 128], sizes = [8, 128], strides = [1, 1]} : vector<8x512xf32> to vector<8x128xf32>
    %88 = arith.negf %87 : vector<8x128xf32>
    %89 = math.exp %88 : vector<8x128xf32>
    %cst_31 = arith.constant 1.000000e+00 : f32
    %90 = vector.broadcast %cst_31 : f32 to vector<8x128xf32>
    %91 = arith.addf %90, %89 : vector<8x128xf32>
    %92 = arith.divf %90, %91 : vector<8x128xf32>
    %93 = vector.extract_strided_slice %80 {offsets = [0, 256], sizes = [8, 128], strides = [1, 1]} : vector<8x512xf32> to vector<8x128xf32>
    %94 = math.tanh %93 : vector<8x128xf32>
    %95 = vector.extract_strided_slice %80 {offsets = [0, 384], sizes = [8, 128], strides = [1, 1]} : vector<8x512xf32> to vector<8x128xf32>
    %96 = arith.negf %95 : vector<8x128xf32>
    %97 = math.exp %96 : vector<8x128xf32>
    %cst_32 = arith.constant 1.000000e+00 : f32
    %98 = vector.broadcast %cst_32 : f32 to vector<8x128xf32>
    %99 = arith.addf %98, %97 : vector<8x128xf32>
    %100 = arith.divf %98, %99 : vector<8x128xf32>
    %101 = arith.mulf %92, %71 : vector<8x128xf32>
    %102 = arith.mulf %86, %94 : vector<8x128xf32>
    %103 = arith.addf %101, %102 : vector<8x128xf32>
    %104 = math.tanh %103 : vector<8x128xf32>
    %105 = arith.mulf %100, %104 : vector<8x128xf32>
    %c3_i32 = arith.constant 3 : i32
    %c8_i32_33 = arith.constant 8 : i32
    %106 = arith.muli %c3_i32, %c8_i32_33 : i32
    %107 = tpu.assume_multiple %106, 8 : i32
    %108 = arith.index_cast %107 : i32 to index
    %c0_34 = arith.constant 0 : index
    %109 = vector.load %arg11[%108, %c0_34] : memref<64x512xf32, #tpu.memory_space<vmem>>, vector<8x512xf32>
    %c0_35 = arith.constant 0 : index
    %c0_36 = arith.constant 0 : index
    %110 = vector.load %arg3[%c0_35, %c0_36] : memref<128x512xf32, #tpu.memory_space<vmem>>, vector<128x512xf32>
    %cst_37 = arith.constant dense<0.000000e+00> : vector<8x512xf32>
    %111 = tpu.matmul %105, %110, %cst_37 {dimension_numbers = #tpu.dot_dimension_numbers<[1], [0], [0], [1], [0, 0, 1, 1], [], []>} : vector<8x128xf32>, vector<128x512xf32>, vector<8x512xf32> -> vector<8x512xf32>
    %112 = arith.addf %109, %111 : vector<8x512xf32>
    %113 = vector.extract_strided_slice %112 {offsets = [0, 0], sizes = [8, 128], strides = [1, 1]} : vector<8x512xf32> to vector<8x128xf32>
    %114 = arith.negf %113 : vector<8x128xf32>
    %115 = math.exp %114 : vector<8x128xf32>
    %cst_38 = arith.constant 1.000000e+00 : f32
    %116 = vector.broadcast %cst_38 : f32 to vector<8x128xf32>
    %117 = arith.addf %116, %115 : vector<8x128xf32>
    %118 = arith.divf %116, %117 : vector<8x128xf32>
    %119 = vector.extract_strided_slice %112 {offsets = [0, 128], sizes = [8, 128], strides = [1, 1]} : vector<8x512xf32> to vector<8x128xf32>
    %120 = arith.negf %119 : vector<8x128xf32>
    %121 = math.exp %120 : vector<8x128xf32>
    %cst_39 = arith.constant 1.000000e+00 : f32
    %122 = vector.broadcast %cst_39 : f32 to vector<8x128xf32>
    %123 = arith.addf %122, %121 : vector<8x128xf32>
    %124 = arith.divf %122, %123 : vector<8x128xf32>
    %125 = vector.extract_strided_slice %112 {offsets = [0, 256], sizes = [8, 128], strides = [1, 1]} : vector<8x512xf32> to vector<8x128xf32>
    %126 = math.tanh %125 : vector<8x128xf32>
    %127 = vector.extract_strided_slice %112 {offsets = [0, 384], sizes = [8, 128], strides = [1, 1]} : vector<8x512xf32> to vector<8x128xf32>
    %128 = arith.negf %127 : vector<8x128xf32>
    %129 = math.exp %128 : vector<8x128xf32>
    %cst_40 = arith.constant 1.000000e+00 : f32
    %130 = vector.broadcast %cst_40 : f32 to vector<8x128xf32>
    %131 = arith.addf %130, %129 : vector<8x128xf32>
    %132 = arith.divf %130, %131 : vector<8x128xf32>
    %133 = arith.mulf %124, %103 : vector<8x128xf32>
    %134 = arith.mulf %118, %126 : vector<8x128xf32>
    %135 = arith.addf %133, %134 : vector<8x128xf32>
    %136 = math.tanh %135 : vector<8x128xf32>
    %137 = arith.mulf %132, %136 : vector<8x128xf32>
    %c4_i32 = arith.constant 4 : i32
    %c8_i32_41 = arith.constant 8 : i32
    %138 = arith.muli %c4_i32, %c8_i32_41 : i32
    %139 = tpu.assume_multiple %138, 8 : i32
    %140 = arith.index_cast %139 : i32 to index
    %c0_42 = arith.constant 0 : index
    %141 = vector.load %arg11[%140, %c0_42] : memref<64x512xf32, #tpu.memory_space<vmem>>, vector<8x512xf32>
    %c0_43 = arith.constant 0 : index
    %c0_44 = arith.constant 0 : index
    %142 = vector.load %arg3[%c0_43, %c0_44] : memref<128x512xf32, #tpu.memory_space<vmem>>, vector<128x512xf32>
    %cst_45 = arith.constant dense<0.000000e+00> : vector<8x512xf32>
    %143 = tpu.matmul %137, %142, %cst_45 {dimension_numbers = #tpu.dot_dimension_numbers<[1], [0], [0], [1], [0, 0, 1, 1], [], []>} : vector<8x128xf32>, vector<128x512xf32>, vector<8x512xf32> -> vector<8x512xf32>
    %144 = arith.addf %141, %143 : vector<8x512xf32>
    %145 = vector.extract_strided_slice %144 {offsets = [0, 0], sizes = [8, 128], strides = [1, 1]} : vector<8x512xf32> to vector<8x128xf32>
    %146 = arith.negf %145 : vector<8x128xf32>
    %147 = math.exp %146 : vector<8x128xf32>
    %cst_46 = arith.constant 1.000000e+00 : f32
    %148 = vector.broadcast %cst_46 : f32 to vector<8x128xf32>
    %149 = arith.addf %148, %147 : vector<8x128xf32>
    %150 = arith.divf %148, %149 : vector<8x128xf32>
    %151 = vector.extract_strided_slice %144 {offsets = [0, 128], sizes = [8, 128], strides = [1, 1]} : vector<8x512xf32> to vector<8x128xf32>
    %152 = arith.negf %151 : vector<8x128xf32>
    %153 = math.exp %152 : vector<8x128xf32>
    %cst_47 = arith.constant 1.000000e+00 : f32
    %154 = vector.broadcast %cst_47 : f32 to vector<8x128xf32>
    %155 = arith.addf %154, %153 : vector<8x128xf32>
    %156 = arith.divf %154, %155 : vector<8x128xf32>
    %157 = vector.extract_strided_slice %144 {offsets = [0, 256], sizes = [8, 128], strides = [1, 1]} : vector<8x512xf32> to vector<8x128xf32>
    %158 = math.tanh %157 : vector<8x128xf32>
    %159 = vector.extract_strided_slice %144 {offsets = [0, 384], sizes = [8, 128], strides = [1, 1]} : vector<8x512xf32> to vector<8x128xf32>
    %160 = arith.negf %159 : vector<8x128xf32>
    %161 = math.exp %160 : vector<8x128xf32>
    %cst_48 = arith.constant 1.000000e+00 : f32
    %162 = vector.broadcast %cst_48 : f32 to vector<8x128xf32>
    %163 = arith.addf %162, %161 : vector<8x128xf32>
    %164 = arith.divf %162, %163 : vector<8x128xf32>
    %165 = arith.mulf %156, %135 : vector<8x128xf32>
    %166 = arith.mulf %150, %158 : vector<8x128xf32>
    %167 = arith.addf %165, %166 : vector<8x128xf32>
    %168 = math.tanh %167 : vector<8x128xf32>
    %169 = arith.mulf %164, %168 : vector<8x128xf32>
    %c5_i32 = arith.constant 5 : i32
    %c8_i32_49 = arith.constant 8 : i32
    %170 = arith.muli %c5_i32, %c8_i32_49 : i32
    %171 = tpu.assume_multiple %170, 8 : i32
    %172 = arith.index_cast %171 : i32 to index
    %c0_50 = arith.constant 0 : index
    %173 = vector.load %arg11[%172, %c0_50] : memref<64x512xf32, #tpu.memory_space<vmem>>, vector<8x512xf32>
    %c0_51 = arith.constant 0 : index
    %c0_52 = arith.constant 0 : index
    %174 = vector.load %arg3[%c0_51, %c0_52] : memref<128x512xf32, #tpu.memory_space<vmem>>, vector<128x512xf32>
    %cst_53 = arith.constant dense<0.000000e+00> : vector<8x512xf32>
    %175 = tpu.matmul %169, %174, %cst_53 {dimension_numbers = #tpu.dot_dimension_numbers<[1], [0], [0], [1], [0, 0, 1, 1], [], []>} : vector<8x128xf32>, vector<128x512xf32>, vector<8x512xf32> -> vector<8x512xf32>
    %176 = arith.addf %173, %175 : vector<8x512xf32>
    %177 = vector.extract_strided_slice %176 {offsets = [0, 0], sizes = [8, 128], strides = [1, 1]} : vector<8x512xf32> to vector<8x128xf32>
    %178 = arith.negf %177 : vector<8x128xf32>
    %179 = math.exp %178 : vector<8x128xf32>
    %cst_54 = arith.constant 1.000000e+00 : f32
    %180 = vector.broadcast %cst_54 : f32 to vector<8x128xf32>
    %181 = arith.addf %180, %179 : vector<8x128xf32>
    %182 = arith.divf %180, %181 : vector<8x128xf32>
    %183 = vector.extract_strided_slice %176 {offsets = [0, 128], sizes = [8, 128], strides = [1, 1]} : vector<8x512xf32> to vector<8x128xf32>
    %184 = arith.negf %183 : vector<8x128xf32>
    %185 = math.exp %184 : vector<8x128xf32>
    %cst_55 = arith.constant 1.000000e+00 : f32
    %186 = vector.broadcast %cst_55 : f32 to vector<8x128xf32>
    %187 = arith.addf %186, %185 : vector<8x128xf32>
    %188 = arith.divf %186, %187 : vector<8x128xf32>
    %189 = vector.extract_strided_slice %176 {offsets = [0, 256], sizes = [8, 128], strides = [1, 1]} : vector<8x512xf32> to vector<8x128xf32>
    %190 = math.tanh %189 : vector<8x128xf32>
    %191 = vector.extract_strided_slice %176 {offsets = [0, 384], sizes = [8, 128], strides = [1, 1]} : vector<8x512xf32> to vector<8x128xf32>
    %192 = arith.negf %191 : vector<8x128xf32>
    %193 = math.exp %192 : vector<8x128xf32>
    %cst_56 = arith.constant 1.000000e+00 : f32
    %194 = vector.broadcast %cst_56 : f32 to vector<8x128xf32>
    %195 = arith.addf %194, %193 : vector<8x128xf32>
    %196 = arith.divf %194, %195 : vector<8x128xf32>
    %197 = arith.mulf %188, %167 : vector<8x128xf32>
    %198 = arith.mulf %182, %190 : vector<8x128xf32>
    %199 = arith.addf %197, %198 : vector<8x128xf32>
    %200 = math.tanh %199 : vector<8x128xf32>
    %201 = arith.mulf %196, %200 : vector<8x128xf32>
    %c6_i32 = arith.constant 6 : i32
    %c8_i32_57 = arith.constant 8 : i32
    %202 = arith.muli %c6_i32, %c8_i32_57 : i32
    %203 = tpu.assume_multiple %202, 8 : i32
    %204 = arith.index_cast %203 : i32 to index
    %c0_58 = arith.constant 0 : index
    %205 = vector.load %arg11[%204, %c0_58] : memref<64x512xf32, #tpu.memory_space<vmem>>, vector<8x512xf32>
    %c0_59 = arith.constant 0 : index
    %c0_60 = arith.constant 0 : index
    %206 = vector.load %arg3[%c0_59, %c0_60] : memref<128x512xf32, #tpu.memory_space<vmem>>, vector<128x512xf32>
    %cst_61 = arith.constant dense<0.000000e+00> : vector<8x512xf32>
    %207 = tpu.matmul %201, %206, %cst_61 {dimension_numbers = #tpu.dot_dimension_numbers<[1], [0], [0], [1], [0, 0, 1, 1], [], []>} : vector<8x128xf32>, vector<128x512xf32>, vector<8x512xf32> -> vector<8x512xf32>
    %208 = arith.addf %205, %207 : vector<8x512xf32>
    %209 = vector.extract_strided_slice %208 {offsets = [0, 0], sizes = [8, 128], strides = [1, 1]} : vector<8x512xf32> to vector<8x128xf32>
    %210 = arith.negf %209 : vector<8x128xf32>
    %211 = math.exp %210 : vector<8x128xf32>
    %cst_62 = arith.constant 1.000000e+00 : f32
    %212 = vector.broadcast %cst_62 : f32 to vector<8x128xf32>
    %213 = arith.addf %212, %211 : vector<8x128xf32>
    %214 = arith.divf %212, %213 : vector<8x128xf32>
    %215 = vector.extract_strided_slice %208 {offsets = [0, 128], sizes = [8, 128], strides = [1, 1]} : vector<8x512xf32> to vector<8x128xf32>
    %216 = arith.negf %215 : vector<8x128xf32>
    %217 = math.exp %216 : vector<8x128xf32>
    %cst_63 = arith.constant 1.000000e+00 : f32
    %218 = vector.broadcast %cst_63 : f32 to vector<8x128xf32>
    %219 = arith.addf %218, %217 : vector<8x128xf32>
    %220 = arith.divf %218, %219 : vector<8x128xf32>
    %221 = vector.extract_strided_slice %208 {offsets = [0, 256], sizes = [8, 128], strides = [1, 1]} : vector<8x512xf32> to vector<8x128xf32>
    %222 = math.tanh %221 : vector<8x128xf32>
    %223 = vector.extract_strided_slice %208 {offsets = [0, 384], sizes = [8, 128], strides = [1, 1]} : vector<8x512xf32> to vector<8x128xf32>
    %224 = arith.negf %223 : vector<8x128xf32>
    %225 = math.exp %224 : vector<8x128xf32>
    %cst_64 = arith.constant 1.000000e+00 : f32
    %226 = vector.broadcast %cst_64 : f32 to vector<8x128xf32>
    %227 = arith.addf %226, %225 : vector<8x128xf32>
    %228 = arith.divf %226, %227 : vector<8x128xf32>
    %229 = arith.mulf %220, %199 : vector<8x128xf32>
    %230 = arith.mulf %214, %222 : vector<8x128xf32>
    %231 = arith.addf %229, %230 : vector<8x128xf32>
    %232 = math.tanh %231 : vector<8x128xf32>
    %233 = arith.mulf %228, %232 : vector<8x128xf32>
    %c7_i32 = arith.constant 7 : i32
    %c8_i32_65 = arith.constant 8 : i32
    %234 = arith.muli %c7_i32, %c8_i32_65 : i32
    %235 = tpu.assume_multiple %234, 8 : i32
    %236 = arith.index_cast %235 : i32 to index
    %c0_66 = arith.constant 0 : index
    %237 = vector.load %arg11[%236, %c0_66] : memref<64x512xf32, #tpu.memory_space<vmem>>, vector<8x512xf32>
    %c0_67 = arith.constant 0 : index
    %c0_68 = arith.constant 0 : index
    %238 = vector.load %arg3[%c0_67, %c0_68] : memref<128x512xf32, #tpu.memory_space<vmem>>, vector<128x512xf32>
    %cst_69 = arith.constant dense<0.000000e+00> : vector<8x512xf32>
    %239 = tpu.matmul %233, %238, %cst_69 {dimension_numbers = #tpu.dot_dimension_numbers<[1], [0], [0], [1], [0, 0, 1, 1], [], []>} : vector<8x128xf32>, vector<128x512xf32>, vector<8x512xf32> -> vector<8x512xf32>
    %240 = arith.addf %237, %239 : vector<8x512xf32>
    %241 = vector.extract_strided_slice %240 {offsets = [0, 0], sizes = [8, 128], strides = [1, 1]} : vector<8x512xf32> to vector<8x128xf32>
    %242 = arith.negf %241 : vector<8x128xf32>
    %243 = math.exp %242 : vector<8x128xf32>
    %cst_70 = arith.constant 1.000000e+00 : f32
    %244 = vector.broadcast %cst_70 : f32 to vector<8x128xf32>
    %245 = arith.addf %244, %243 : vector<8x128xf32>
    %246 = arith.divf %244, %245 : vector<8x128xf32>
    %247 = vector.extract_strided_slice %240 {offsets = [0, 128], sizes = [8, 128], strides = [1, 1]} : vector<8x512xf32> to vector<8x128xf32>
    %248 = arith.negf %247 : vector<8x128xf32>
    %249 = math.exp %248 : vector<8x128xf32>
    %cst_71 = arith.constant 1.000000e+00 : f32
    %250 = vector.broadcast %cst_71 : f32 to vector<8x128xf32>
    %251 = arith.addf %250, %249 : vector<8x128xf32>
    %252 = arith.divf %250, %251 : vector<8x128xf32>
    %253 = vector.extract_strided_slice %240 {offsets = [0, 256], sizes = [8, 128], strides = [1, 1]} : vector<8x512xf32> to vector<8x128xf32>
    %254 = math.tanh %253 : vector<8x128xf32>
    %255 = vector.extract_strided_slice %240 {offsets = [0, 384], sizes = [8, 128], strides = [1, 1]} : vector<8x512xf32> to vector<8x128xf32>
    %256 = arith.negf %255 : vector<8x128xf32>
    %257 = math.exp %256 : vector<8x128xf32>
    %cst_72 = arith.constant 1.000000e+00 : f32
    %258 = vector.broadcast %cst_72 : f32 to vector<8x128xf32>
    %259 = arith.addf %258, %257 : vector<8x128xf32>
    %260 = arith.divf %258, %259 : vector<8x128xf32>
    %261 = arith.mulf %252, %231 : vector<8x128xf32>
    %262 = arith.mulf %246, %254 : vector<8x128xf32>
    %263 = arith.addf %261, %262 : vector<8x128xf32>
    %264 = math.tanh %263 : vector<8x128xf32>
    %265 = arith.mulf %260, %264 : vector<8x128xf32>
    %c8_i32_73 = arith.constant 8 : i32
    %c0_74 = arith.constant 0 : index
    %c56 = arith.constant 56 : index
    %c0_75 = arith.constant 0 : index
    %266 = vector.load %arg1[%c0_74, %c56, %c0_75] : memref<1x64x32xf32, #tpu.memory_space<vmem>>, vector<1x8x32xf32>
    %267 = vector.shape_cast %266 : vector<1x8x32xf32> to vector<8x32xf32>
    %c0_76 = arith.constant 0 : index
    %c0_77 = arith.constant 0 : index
    %268 = vector.load %arg5[%c0_76, %c0_77] : memref<32x512xf32, #tpu.memory_space<vmem>>, vector<32x512xf32>
    %cst_78 = arith.constant dense<0.000000e+00> : vector<8x512xf32>
    %269 = tpu.matmul %267, %268, %cst_78 {dimension_numbers = #tpu.dot_dimension_numbers<[1], [0], [0], [1], [0, 0, 1, 1], [], []>} : vector<8x32xf32>, vector<32x512xf32>, vector<8x512xf32> -> vector<8x512xf32>
    %c0_79 = arith.constant 0 : index
    %c0_80 = arith.constant 0 : index
    %270 = vector.load %arg6[%c0_79, %c0_80] : memref<1x512xf32, #tpu.memory_space<vmem>>, vector<1x512xf32>
    %271 = vector.broadcast %270 : vector<1x512xf32> to vector<8x512xf32>
    %272 = arith.addf %269, %271 : vector<8x512xf32>
    %273 = vector.extract_strided_slice %272 {offsets = [0, 0], sizes = [8, 128], strides = [1, 1]} : vector<8x512xf32> to vector<8x128xf32>
    %274 = arith.negf %273 : vector<8x128xf32>
    %275 = math.exp %274 : vector<8x128xf32>
    %cst_81 = arith.constant 1.000000e+00 : f32
    %276 = vector.broadcast %cst_81 : f32 to vector<8x128xf32>
    %277 = arith.addf %276, %275 : vector<8x128xf32>
    %278 = arith.divf %276, %277 : vector<8x128xf32>
    %279 = vector.extract_strided_slice %272 {offsets = [0, 128], sizes = [8, 128], strides = [1, 1]} : vector<8x512xf32> to vector<8x128xf32>
    %280 = arith.negf %279 : vector<8x128xf32>
    %281 = math.exp %280 : vector<8x128xf32>
    %cst_82 = arith.constant 1.000000e+00 : f32
    %282 = vector.broadcast %cst_82 : f32 to vector<8x128xf32>
    %283 = arith.addf %282, %281 : vector<8x128xf32>
    %284 = arith.divf %282, %283 : vector<8x128xf32>
    %285 = vector.extract_strided_slice %272 {offsets = [0, 256], sizes = [8, 128], strides = [1, 1]} : vector<8x512xf32> to vector<8x128xf32>
    %286 = math.tanh %285 : vector<8x128xf32>
    %287 = vector.extract_strided_slice %272 {offsets = [0, 384], sizes = [8, 128], strides = [1, 1]} : vector<8x512xf32> to vector<8x128xf32>
    %288 = arith.negf %287 : vector<8x128xf32>
    %289 = math.exp %288 : vector<8x128xf32>
    %cst_83 = arith.constant 1.000000e+00 : f32
    %290 = vector.broadcast %cst_83 : f32 to vector<8x128xf32>
    %291 = arith.addf %290, %289 : vector<8x128xf32>
    %292 = arith.divf %290, %291 : vector<8x128xf32>
    %293 = arith.mulf %284, %9 : vector<8x128xf32>
    %294 = arith.mulf %278, %286 : vector<8x128xf32>
    %295 = arith.addf %293, %294 : vector<8x128xf32>
    %296 = math.tanh %295 : vector<8x128xf32>
    %297 = arith.mulf %292, %296 : vector<8x128xf32>
    %c0_84 = arith.constant 0 : index
    %c0_85 = arith.constant 0 : index
    %298 = vector.load %arg7[%c0_84, %c0_85] : memref<128x128xf32, #tpu.memory_space<vmem>>, vector<128x128xf32>
    %cst_86 = arith.constant dense<0.000000e+00> : vector<8x128xf32>
    %299 = tpu.matmul %265, %298, %cst_86 {dimension_numbers = #tpu.dot_dimension_numbers<[1], [0], [0], [1], [0, 0, 1, 1], [], []>} : vector<8x128xf32>, vector<128x128xf32>, vector<8x128xf32> -> vector<8x128xf32>
    %c0_87 = arith.constant 0 : index
    %c0_88 = arith.constant 0 : index
    %300 = vector.load %arg8[%c0_87, %c0_88] : memref<128x128xf32, #tpu.memory_space<vmem>>, vector<128x128xf32>
    %cst_89 = arith.constant dense<0.000000e+00> : vector<8x128xf32>
    %301 = tpu.matmul %297, %300, %cst_89 {dimension_numbers = #tpu.dot_dimension_numbers<[1], [0], [0], [1], [0, 0, 1, 1], [], []>} : vector<8x128xf32>, vector<128x128xf32>, vector<8x128xf32> -> vector<8x128xf32>
    %302 = arith.addf %299, %301 : vector<8x128xf32>
    %c0_90 = arith.constant 0 : index
    %c0_91 = arith.constant 0 : index
    %303 = vector.load %arg9[%c0_90, %c0_91] : memref<1x128xf32, #tpu.memory_space<vmem>>, vector<1x128xf32>
    %304 = vector.broadcast %303 : vector<1x128xf32> to vector<8x128xf32>
    %305 = arith.addf %302, %304 : vector<8x128xf32>
    %c0_92 = arith.constant 0 : index
    %c0_93 = arith.constant 0 : index
    %c0_94 = arith.constant 0 : index
    %306 = vector.load %arg10[%c0_92, %c0_93, %c0_94] : memref<1x8x128xf32, #tpu.memory_space<vmem>>, vector<1x8x128xf32>
    %307 = vector.shape_cast %306 : vector<1x8x128xf32> to vector<8x128xf32>
    %308 = vector.shape_cast %305 : vector<8x128xf32> to vector<1x8x128xf32>
    tpu.vector_store %arg10[%c0_92, %c0_93, %c0_94], %308 {strides = array<i32>} : memref<1x8x128xf32, #tpu.memory_space<vmem>>, vector<1x8x128xf32>,
    return
  }
  func.func @transform_0(%arg0: i32) -> (i32, i32, i32) {
    %c0_i32 = arith.constant 0 : i32
    %c0_i32_0 = arith.constant 0 : i32
    %c0_i32_1 = arith.constant 0 : i32
    return %arg0, %c0_i32, %c0_i32_0 : i32, i32, i32
  }
  func.func @transform_1(%arg0: i32) -> (i32, i32) {
    %c0_i32 = arith.constant 0 : i32
    %c0_i32_0 = arith.constant 0 : i32
    %c0_i32_1 = arith.constant 0 : i32
    return %c0_i32, %c0_i32_0 : i32, i32
  }
  func.func @transform_2(%arg0: i32) -> (i32, i32) {
    %c0_i32 = arith.constant 0 : i32
    %c0_i32_0 = arith.constant 0 : i32
    %c0_i32_1 = arith.constant 0 : i32
    return %c0_i32, %c0_i32_0 : i32, i32
  }
  func.func @transform_3(%arg0: i32) -> (i32, i32) {
    %c0_i32 = arith.constant 0 : i32
    %c0_i32_0 = arith.constant 0 : i32
    %c0_i32_1 = arith.constant 0 : i32
    return %c0_i32, %c0_i32_0 : i32, i32
  }
  func.func @transform_4(%arg0: i32) -> (i32, i32) {
    %c0_i32 = arith.constant 0 : i32
    %c0_i32_0 = arith.constant 0 : i32
    %c0_i32_1 = arith.constant 0 : i32
    return %c0_i32, %c0_i32_0 : i32, i32
  }
  func.func @transform_5(%arg0: i32) -> (i32, i32) {
    %c0_i32 = arith.constant 0 : i32
    %c0_i32_0 = arith.constant 0 : i32
    %c0_i32_1 = arith.constant 0 : i32
    return %c0_i32, %c0_i32_0 : i32, i32
  }
  func.func @transform_6(%arg0: i32) -> (i32, i32) {
    %c0_i32 = arith.constant 0 : i32
    %c0_i32_0 = arith.constant 0 : i32
    %c0_i32_1 = arith.constant 0 : i32
    return %c0_i32, %c0_i32_0 : i32, i32
  }
  func.func @transform_7(%arg0: i32) -> (i32, i32) {
    %c0_i32 = arith.constant 0 : i32
    %c0_i32_0 = arith.constant 0 : i32
    %c0_i32_1 = arith.constant 0 : i32
    return %c0_i32, %c0_i32_0 : i32, i32
  }
  func.func @transform_8(%arg0: i32) -> (i32, i32) {
    %c0_i32 = arith.constant 0 : i32
    %c0_i32_0 = arith.constant 0 : i32
    %c0_i32_1 = arith.constant 0 : i32
    return %c0_i32, %c0_i32_0 : i32, i32
  }
  func.func @transform_9(%arg0: i32) -> (i32, i32, i32) {
    %c0_i32 = arith.constant 0 : i32
    %c0_i32_0 = arith.constant 0 : i32
    %c0_i32_1 = arith.constant 0 : i32
    return %arg0, %c0_i32, %c0_i32_0 : i32, i32, i32
  }
}

</mosaic_0001>

<bundles_post_ra>
// kernel: disambiguation_lstm_forward.1
= control target key start
LH: loop header
LB: loop body
LE: loop exit
PB: predicated region body
PF: predicated region fallthrough
CT: control target
= control target key end

     0   :  { %vm66_vm0 = vcmask 261120   ;;  %s3852_s1 = inlined_call_operand.vmem [shape: f32[32,512], index: 1, kind: input, shape index: {}]   ;;  %s3853_s0 = inlined_call_operand.vmem [shape: f32[1,64,32], index: 0, kind: input, shape index: {}]   ;;  %s3854_s2 = inlined_call_operand.vmem [shape: f32[128,512], index: 2, kind: input, shape index: {}]   ;;  %s3855_s3 = inlined_call_operand.vmem [shape: f32[1,512], index: 3, kind: input, shape index: {}]   ;;  %s3856_s4 = inlined_call_operand.vmem [shape: f32[32,512], index: 4, kind: input, shape index: {}]   ;;  %s3857_s6 = inlined_call_operand.vmem [shape: f32[128,128], index: 6, kind: input, shape index: {}]   ;;  %s3858_s7 = inlined_call_operand.vmem [shape: f32[128,128], index: 7, kind: input, shape index: {}]   ;;  %s3859_s5 = inlined_call_operand.vmem [shape: f32[1,512], index: 5, kind: input, shape index: {}]   ;;  %s3860_s8 = inlined_call_operand.vmem [shape: f32[1,128], index: 8, kind: input, shape index: {}]   ;;  %s3861_s9 = inlined_call_operand.vmem [shape: f32[1,8,128], index: 9, kind: output, shape index: {}]  }
   0x1   :  { %v52_v0 = vld [vmem:[%s3852_s1 + $0x60] sm:$0xff]  ;;  %v53_v1 = vld [vmem:[%s3852_s1 + $0x68] sm:$0xff]  ;;  %v2209_v9 = vld [vmem:[%s3853_s0 + $0x30] sm:$0xff] }
   0x2   :  { %v48_v2 = vld [vmem:[%s3852_s1 + $0x40] sm:$0xff]  ;;  %103 = vmatpush.msra.mxu0 %v52_v0  ;;  %1908 = vmatpush.msra.mxu2 %v52_v0  ;;  %v49_v3 = vld [vmem:[%s3852_s1 + $0x48] sm:$0xff]  ;;  %v55_v10 = vld [vmem:[%s3852_s1 + $0x78] sm:$0xff] }
   0x3   :  { %144 = vmatpush.msra.mxu1 %v53_v1  ;;  %1912 = vmatpush.msra.mxu3 %v53_v1  ;;  %v44_v4 = vld [vmem:[%s3852_s1 + $0x20] sm:$0xff]  ;;  %v45_v5 = vld [vmem:[%s3852_s1 + $0x28] sm:$0xff]  ;;  %v54_v11 = vld [vmem:[%s3852_s1 + $0x70] sm:$0xff] }
   0x4   :  { %104 = vmatpush.msra.mxu0 %v48_v2  ;;  %1909 = vmatpush.msra.mxu2 %v48_v2  ;;  %v40_v6 = vld [vmem:[%s3852_s1] sm:$0xff]  ;;  %v41_v7 = vld [vmem:[%s3852_s1 + $0x8] sm:$0xff]  ;;  %v51_v14 = vld [vmem:[%s3852_s1 + $0x58] sm:$0xff] }
   0x5   :  { %145 = vmatpush.msra.mxu1 %v49_v3  ;;  %1913 = vmatpush.msra.mxu3 %v49_v3  ;;  %v2204_v8 = vld [vmem:[%s3853_s0] sm:$0xff]  ;;  %v2229_v13 = vld [vmem:[%s3854_s2 + $0x1e8] sm:$0xff]  ;;  %v50_v15 = vld [vmem:[%s3852_s1 + $0x50] sm:$0xff] }
   0x6   :  { %105 = vmatpush.msra.mxu0 %v44_v4  ;;  %1910 = vmatpush.msra.mxu2 %v44_v4  ;;  %v2224_v12 = vld [vmem:[%s3854_s2 + $0x1e0] sm:$0xff]  ;;  %3959 = vst [vmem:[#allocation4_spill] sm:$0xff] %v2229_v13  ;;  %v2249_v17 = vld [vmem:[%s3854_s2 + $0x1c8] sm:$0xff]  ;;  %v47_v18 = vld [vmem:[%s3852_s1 + $0x38] sm:$0xff] }
   0x7   :  { %146 = vmatpush.msra.mxu1 %v45_v5  ;;  %1914 = vmatpush.msra.mxu3 %v45_v5  ;;  %3958 = vst [vmem:[#allocation3_spill] sm:$0xff] %v2224_v12  ;;  %v2244_v16 = vld [vmem:[%s3854_s2 + $0x1c0] sm:$0xff]  ;;  %v46_v19 = vld [vmem:[%s3852_s1 + $0x30] sm:$0xff]  ;;  %v2267_v21 = vld [vmem:[%s3854_s2 + $0x1a8] sm:$0xff] }
   0x8   :  { %106 = vmatpush.msra.mxu0 %v40_v6  ;;  %1911 = vmatpush.msra.mxu2 %v40_v6  ;;  %3960 = vst [vmem:[#allocation5_spill] sm:$0xff] %v2244_v16  ;;  %v2262_v20 = vld [vmem:[%s3854_s2 + $0x1a0] sm:$0xff]  ;;  %v2272_v22 = vld [vmem:[%s3853_s0 + $0x8] sm:$0xff]  ;;  %v2277_v23 = vld [vmem:[%s3853_s0 + $0x38] sm:$0xff] }
   0x9   :  { %147 = vmatpush.msra.mxu1 %v41_v7  ;;  %1915 = vmatpush.msra.mxu3 %v41_v7  ;;  %v43_v24 = vld [vmem:[%s3852_s1 + $0x18] sm:$0xff]  ;;  %v42_v25 = vld [vmem:[%s3852_s1 + $0x10] sm:$0xff]  ;;  %v2301_v27 = vld [vmem:[%s3854_s2 + $0x180] sm:$0xff] }
   0xa   :  { %1845 = vmatmul.msk.f32.vlgmr.msra.gmra.mxu0 %vm66_vm0, %v2204_v8  ;;  %1851 = vmatmul.msk.f32.vlgmr.msra.gmra.mxu2 %vm66_vm0, %v2209_v9  ;;  %v2296_v26 = vld [vmem:[%s3854_s2 + $0x1f8] sm:$0xff]  ;;  %v2310_v28 = vld [vmem:[%s3854_s2 + $0x188] sm:$0xff]  ;;  %v2315_v29 = vld [vmem:[%s3854_s2 + $0x1f0] sm:$0xff] }
   0xb   :  { %1853 = vmatmul.msk.f32.vlgmr.msra.gmra.mxu1 %vm66_vm0, %v2204_v8  ;;  %1859 = vmatmul.msk.f32.vlgmr.msra.gmra.mxu3 %vm66_vm0, %v2209_v9  ;;  %v2320_v30 = vld [vmem:[%s3854_s2 + $0x1d8] sm:$0xff]  ;;  %v2325_v31 = vld [vmem:[%s3854_s2 + $0x160] sm:$0xff]  ;;  %v2332_v32 = vld [vmem:[%s3854_s2 + $0x168] sm:$0xff] }
   0xc   :  { %226 = vmatpush.msrb.mxu3 %v55_v10  ;;  %185 = vmatpush.msrb.mxu2 %v54_v11  ;;  %v2337_v33 = vld [vmem:[%s3854_s2 + $0x1d0] sm:$0xff]  ;;  %v2343_v34 = vld [vmem:[%s3854_s2 + $0x1b8] sm:$0xff]  ;;  %v2349_v35 = vld [vmem:[%s3854_s2 + $0x140] sm:$0xff] }
   0xd   :  { %358 = vmatpush.msrb.mxu0 %v2224_v12  ;;  %378 = vmatpush.msrb.mxu1 %v2229_v13  ;;  %v2354_v36 = vld [vmem:[%s3853_s0 + $0x10] sm:$0xff]  ;;  %v2365_v37 = vld [vmem:[%s3854_s2 + $0x148] sm:$0xff]  ;;  %v2370_v38 = vld [vmem:[%s3854_s2 + $0x198] sm:$0xff] }
   0xe   :  { %227 = vmatpush.msrb.mxu3 %v51_v14  ;;  %186 = vmatpush.msrb.mxu2 %v50_v15  ;;  %v2379_v39 = vld [vmem:[%s3854_s2 + $0x120] sm:$0xff]  ;;  %v2384_v40 = vld [vmem:[%s3854_s2 + $0x1b0] sm:$0xff]  ;;  %v2393_v41 = vld [vmem:[%s3854_s2 + $0x128] sm:$0xff] }
   0xf   :  { %359 = vmatpush.msrb.mxu0 %v2244_v16  ;;  %379 = vmatpush.msrb.mxu1 %v2249_v17  ;;  %v2398_v42 = vld [vmem:[%s3854_s2 + $0x178] sm:$0xff]  ;;  %v2405_v43 = vld [vmem:[%s3854_s2 + $0x100] sm:$0xff]  ;;  %v2410_v44 = vld [vmem:[%s3854_s2 + $0x190] sm:$0xff] }
  0x10   :  { %228 = vmatpush.msrb.mxu3 %v47_v18  ;;  %187 = vmatpush.msrb.mxu2 %v46_v19  ;;  %v2416_v45 = vld [vmem:[%s3854_s2 + $0x108] sm:$0xff]  ;;  %v2422_v46 = vld [vmem:[%s3854_s2 + $0x158] sm:$0xff]  ;;  %v2429_v47 = vld [vmem:[%s3854_s2 + $0xe0] sm:$0xff] }
  0x11   :  { %360 = vmatpush.msrb.mxu0 %v2262_v20  ;;  %380 = vmatpush.msrb.mxu1 %v2267_v21  ;;  %v2434_v48 = vld [vmem:[%s3854_s2 + $0x170] sm:$0xff]  ;;  %v2439_v49 = vld [vmem:[%s3853_s0 + $0x18] sm:$0xff]  ;;  %v2449_v50 = vld [vmem:[%s3854_s2 + $0xe8] sm:$0xff] }
  0x12   :  { %1846 = vmatmul.msk.f32.gmra.mxu0 %vm66_vm0, %v2272_v22  ;;  %1852 = vmatmul.msk.f32.gmra.mxu2 %vm66_vm0, %v2277_v23  ;;  %v2454_v51 = vld [vmem:[%s3854_s2 + $0xc0] sm:$0xff]  ;;  %v2464_v52 = vld [vmem:[%s3854_s2 + $0x138] sm:$0xff]  ;;  %v2469_v53 = vld [vmem:[%s3854_s2 + $0x150] sm:$0xff] }
  0x13   :  { %1854 = vmatmul.msk.f32.gmra.mxu1 %vm66_vm0, %v2272_v22  ;;  %1860 = vmatmul.msk.f32.gmra.mxu3 %vm66_vm0, %v2277_v23  ;;  %v2478_v54 = vld [vmem:[%s3854_s2 + $0xc8] sm:$0xff]  ;;  %v2483_v55 = vld [vmem:[%s3854_s2 + $0xa0] sm:$0xff]  ;;  %v2490_v56 = vld [vmem:[%s3854_s2 + $0x118] sm:$0xff] }
  0x14   :  { %229 = vmatpush.msrb.mxu3 %v43_v24  ;;  %188 = vmatpush.msrb.mxu2 %v42_v25  ;;  %3961 = vst [vmem:[#allocation6_spill] sm:$0xff] %v2483_v55  ;;  %v2495_v57 = vld [vmem:[%s3854_s2 + $0x130] sm:$0xff]  ;;  %v2500_v58 = vld [vmem:[%s3854_s2 + $0xa8] sm:$0xff]  ;;  %v2505_v59 = vld [vmem:[%s3854_s2 + $0x80] sm:$0xff] }
  0x15   :  { %361 = vmatpush.msrb.mxu0 %v2301_v27  ;;  %381 = vmatpush.msrb.mxu1 %v2310_v28  ;;  %3962 = vst [vmem:[#allocation7_spill] sm:$0xff] %v2500_v58  ;;  %v2514_v60 = vld [vmem:[%s3854_s2 + $0xf8] sm:$0xff]  ;;  %v2519_v61 = vld [vmem:[%s3854_s2 + $0x110] sm:$0xff]  ;;  %v2524_v62 = vld [vmem:[%s3853_s0 + $0x20] sm:$0xff] }
  0x16   :  { %418 = vmatpush.msra.mxu3 %v2296_v26  ;;  %398 = vmatpush.msra.mxu2 %v2315_v29  ;;  %3963 = vst [vmem:[#allocation8_spill] sm:$0xff] %v2505_v59  ;;  %v2533_v63 = vld [vmem:[%s3854_s2 + $0x88] sm:$0xff]  ;;  %v2538_v0 = vld [vmem:[%s3854_s2 + $0x60] sm:$0xff]  ;;  %v2549_v1 = vld [vmem:[%s3854_s2 + $0xd8] sm:$0xff] }
  0x17   :  { %362 = vmatpush.msrb.mxu0 %v2325_v31  ;;  %382 = vmatpush.msrb.mxu1 %v2332_v32  ;;  %3964 = vst [vmem:[#allocation9_spill] sm:$0xff] %v2533_v63  ;;  %v2554_v2 = vld [vmem:[%s3854_s2 + $0xf0] sm:$0xff]  ;;  %v2563_v3 = vld [vmem:[%s3854_s2 + $0x68] sm:$0xff]  ;;  %v2568_v4 = vld [vmem:[%s3854_s2 + $0x40] sm:$0xff] }
  0x18   :  { %419 = vmatpush.msra.mxu3 %v2320_v30  ;;  %399 = vmatpush.msra.mxu2 %v2337_v33  ;;  %3965 = vst [vmem:[#allocation10_spill] sm:$0xff] %v2538_v0  ;;  %v2575_v5 = vld [vmem:[%s3854_s2 + $0xb8] sm:$0xff]  ;;  %v2580_v6 = vld [vmem:[%s3854_s2 + $0xd0] sm:$0xff]  ;;  %v2585_v7 = vld [vmem:[%s3854_s2 + $0x48] sm:$0xff] }
  0x19   :  { %363 = vmatpush.msrb.mxu0 %v2349_v35  ;;  %383 = vmatpush.msrb.mxu1 %v2365_v37  ;;  %3966 = vst [vmem:[#allocation11_spill] sm:$0xff] %v2563_v3  ;;  %v2599_v10 = vld [vmem:[%s3854_s2 + $0x98] sm:$0xff]  ;;  %v2604_v11 = vld [vmem:[%s3854_s2 + $0xb0] sm:$0xff]  ;;  %v37_v14 = vld [vmem:[%s3853_s0 + $0x28] sm:$0xff] }
  0x1a   :  { %420 = vmatpush.msra.mxu3 %v2343_v34  ;;  %1847 = vmatmul.msk.f32.gmra.mxu0 %vm66_vm0, %v2354_v36  ;;  %3967 = vst [vmem:[#allocation12_spill] sm:$0xff] %v2568_v4  ;;  %v2616_v15 = vld [vmem:[%s3854_s2 + $0x28] sm:$0xff]  ;;  %v2621_v18 = vld [vmem:[%s3854_s2] sm:$0xff]  ;;  %v2631_v19 = vld [vmem:[%s3854_s2 + $0x78] sm:$0xff] }
  0x1b   :  { %1861 = vmatmul.msk.f32.vlgmr.msrb.gmra.mxu2 %vm66_vm0, %v2204_v8  ;;  %1855 = vmatmul.msk.f32.gmra.mxu1 %vm66_vm0, %v2354_v36  ;;  %3968 = vst [vmem:[#allocation13_spill] sm:$0xff] %v2575_v5  ;;  %v2644_v24 = vld [vmem:[%s3854_s2 + $0x8] sm:$0xff]  ;;  %v2651_v25 = vld [vmem:[%s3854_s2 + $0x58] sm:$0xff] }
  0x1c   :  { %1869 = vmatmul.msk.f32.vlgmr.msrb.gmra.mxu3 %vm66_vm0, %v2204_v8  ;;  %364 = vmatpush.msrb.mxu0 %v2379_v39  ;;  %3969 = vst [vmem:[#allocation14_spill] sm:$0xff] %v2585_v7  ;;  %v2590_v8 = vld [vmem:[%s3854_s2 + $0x20] sm:$0xff] }
  0x1d   :  { %421 = vmatpush.msra.mxu3 %v2370_v38  ;;  %400 = vmatpush.msra.mxu2 %v2384_v40  ;;  %3970 = vst [vmem:[#allocation15_spill] sm:$0xff] %v2590_v8 }
  0x1e   :  { %384 = vmatpush.msrb.mxu1 %v2393_v41  ;;  %365 = vmatpush.msrb.mxu0 %v2405_v43  ;;  %3971 = vst [vmem:[#allocation16_spill] sm:$0xff] %v2599_v10 }
  0x1f   :  { %422 = vmatpush.msra.mxu3 %v2398_v42  ;;  %401 = vmatpush.msra.mxu2 %v2410_v44  ;;  %3972 = vst [vmem:[#allocation17_spill] sm:$0xff] %v2604_v11 }
  0x20   :  { %385 = vmatpush.msrb.mxu1 %v2416_v45  ;;  %366 = vmatpush.msrb.mxu0 %v2429_v47  ;;  %3973 = vst [vmem:[#allocation18_spill] sm:$0xff] %v2616_v15 }
  0x21   :  { %423 = vmatpush.msra.mxu3 %v2422_v46  ;;  %402 = vmatpush.msra.mxu2 %v2434_v48  ;;  %3974 = vst [vmem:[#allocation19_spill] sm:$0xff] %v2621_v18 }
  0x22   :  { %1848 = vmatmul.msk.f32.gmra.mxu0 %vm66_vm0, %v2439_v49  ;;  %386 = vmatpush.msrb.mxu1 %v2449_v50  ;;  %3975 = vst [vmem:[#allocation20_spill] sm:$0xff] %v2631_v19 }
  0x23   :  { %1862 = vmatmul.msk.f32.gmra.mxu2 %vm66_vm0, %v2272_v22  ;;  %1856 = vmatmul.msk.f32.gmra.mxu1 %vm66_vm0, %v2439_v49  ;;  %3977 = vst [vmem:[#allocation22_spill] sm:$0xff] %v2644_v24 }
  0x24   :  { %1870 = vmatmul.msk.f32.gmra.mxu3 %vm66_vm0, %v2272_v22  ;;  %367 = vmatpush.msrb.mxu0 %v2454_v51  ;;  %v2636_v22 = vld [vmem:[%s3854_s2 + $0x90] sm:$0xff]  ;;  %3978 = vst [vmem:[#allocation23_spill] sm:$0xff] %v2651_v25 }
  0x25   :  { %424 = vmatpush.msra.mxu3 %v2464_v52  ;;  %403 = vmatpush.msra.mxu2 %v2469_v53  ;;  %3976 = vst [vmem:[#allocation21_spill] sm:$0xff] %v2636_v22 }
  0x26   :  { %387 = vmatpush.msrb.mxu1 %v2478_v54  ;;  %368 = vmatpush.msrb.mxu0 %v2483_v55 }
  0x27   :  { %425 = vmatpush.msra.mxu3 %v2490_v56  ;;  %404 = vmatpush.msra.mxu2 %v2495_v57 }
  0x28   :  { %388 = vmatpush.msrb.mxu1 %v2500_v58  ;;  %369 = vmatpush.msrb.mxu0 %v2505_v59 }
  0x29   :  { %426 = vmatpush.msra.mxu3 %v2514_v60  ;;  %405 = vmatpush.msra.mxu2 %v2519_v61 }
  0x2a   :  { %1849 = vmatmul.msk.f32.gmra.mxu0 %vm66_vm0, %v2524_v62  ;;  %389 = vmatpush.msrb.mxu1 %v2533_v63 }
  0x2b   :  { %1863 = vmatmul.msk.f32.gmra.mxu2 %vm66_vm0, %v2354_v36  ;;  %1857 = vmatmul.msk.f32.gmra.mxu1 %vm66_vm0, %v2524_v62 }
  0x2c   :  { %1871 = vmatmul.msk.f32.gmra.mxu3 %vm66_vm0, %v2354_v36  ;;  %370 = vmatpush.msrb.mxu0 %v2538_v0  ;;  %v2656_v36 = vld [vmem:[%s3854_s2 + $0x70] sm:$0xff] }
  0x2d   :  { %427 = vmatpush.msra.mxu3 %v2549_v1  ;;  %406 = vmatpush.msra.mxu2 %v2554_v2  ;;  %3979 = vst [vmem:[#allocation24_spill] sm:$0xff] %v2656_v36 }
  0x2e   :  { %390 = vmatpush.msrb.mxu1 %v2563_v3  ;;  %371 = vmatpush.msrb.mxu0 %v2568_v4 }
  0x2f   :  { %428 = vmatpush.msra.mxu3 %v2575_v5  ;;  %407 = vmatpush.msra.mxu2 %v2580_v6 }
  0x30   :  { %391 = vmatpush.msrb.mxu1 %v2585_v7  ;;  %372 = vmatpush.msrb.mxu0 %v2590_v8 }
  0x31   :  { %429 = vmatpush.msra.mxu3 %v2599_v10  ;;  %408 = vmatpush.msra.mxu2 %v2604_v11 }
  0x32   :  { %1850 = vmatmul.msk.f32.gmra.mxu0 %vm66_vm0, %v37_v14  ;;  %392 = vmatpush.msrb.mxu1 %v2616_v15 }
  0x33   :  { %1864 = vmatmul.msk.f32.gmra.mxu2 %vm66_vm0, %v2439_v49  ;;  %1858 = vmatmul.msk.f32.gmra.mxu1 %vm66_vm0, %v37_v14 }
  0x34   :  { %1872 = vmatmul.msk.f32.gmra.mxu3 %vm66_vm0, %v2439_v49  ;;  %373 = vmatpush.msrb.mxu0 %v2621_v18  ;;  %v2664_v49 = vld [vmem:[%s3854_s2 + $0x38] sm:$0xff]  ;;  %v2669_v18 = vld [vmem:[%s3854_s2 + $0x50] sm:$0xff] }
  0x35   :  { %430 = vmatpush.msra.mxu3 %v2631_v19  ;;  %409 = vmatpush.msra.mxu2 %v2636_v22  ;;  %3980 = vst [vmem:[#allocation25_spill] sm:$0xff] %v2664_v49 }
  0x36   :  { %393 = vmatpush.msrb.mxu1 %v2644_v24  ;;  %3981 = vst [vmem:[#allocation26_spill] sm:$0xff] %v2669_v18  ;;  %512 = vmatpush.msra.mxu0 %v2224_v12  ;;  %v2681_v24 = vld [vmem:[%s3854_s2 + $0x18] sm:$0xff]  ;;  %v2686_v12 = vld [vmem:[%s3854_s2 + $0x30] sm:$0xff] }
  0x37   :  { %431 = vmatpush.msra.mxu3 %v2651_v25  ;;  %410 = vmatpush.msra.mxu2 %v2656_v36  ;;  %3982 = vst [vmem:[#allocation27_spill] sm:$0xff] %v2681_v24 }
  0x38   :  { %532 = vmatpush.msra.mxu1 %v2229_v13  ;;  %513 = vmatpush.msra.mxu0 %v2244_v16  ;;  %3983 = vst [vmem:[#allocation28_spill] sm:$0xff] %v2686_v12  ;;  %v2126_v13 = vmov 0.0   ;;  %v2697_v16 = vld [vmem:[%s3854_s2 + $0x10] sm:$0xff] }
  0x39   :  { %432 = vmatpush.msra.mxu3 %v2664_v49  ;;  %411 = vmatpush.msra.mxu2 %v2669_v18  ;;  %3984 = vst [vmem:[#allocation29_spill] sm:$0xff] %v2697_v16 }
  0x3a   :  { %374 = vmatmul.f32.vlgmr.msrb.gmra.mxu0 %v2126_v13  ;;  %533 = vmatpush.msra.mxu1 %v2249_v17 }
  0x3b   :  { %1865 = vmatmul.msk.f32.gmra.mxu2 %vm66_vm0, %v2524_v62  ;;  %394 = vmatmul.f32.vlgmr.msrb.gmra.mxu1 %v2126_v13 }
  0x3c   :  { %1873 = vmatmul.msk.f32.gmra.mxu3 %vm66_vm0, %v2524_v62  ;;  %412 = vmatpush.msra.mxu2 %v2686_v12  ;;  %v3987_v62 = vld [vmem:[#allocation3_spill] sm:$0xff] }
  0x3d   :  { %433 = vmatpush.msra.mxu3 %v2681_v24  ;;  %514 = vmatpush.msra.mxu0 %v2262_v20 }
  0x3e   :  { %413 = vmatpush.msra.mxu2 %v2697_v16  ;;  %534 = vmatpush.msra.mxu1 %v2267_v21 }
  0x3f   :  { %572 = vmatpush.msrb.mxu3 %v2296_v26  ;;  %515 = vmatpush.msra.mxu0 %v2301_v27 }
  0x40   :  { %552 = vmatpush.msrb.mxu2 %v2315_v29  ;;  %535 = vmatpush.msra.mxu1 %v2310_v28 }
  0x41   :  { %573 = vmatpush.msrb.mxu3 %v2320_v30  ;;  %516 = vmatpush.msra.mxu0 %v2325_v31 }
  0x42   :  { %553 = vmatpush.msrb.mxu2 %v2337_v33  ;;  %536 = vmatpush.msra.mxu1 %v2332_v32 }
  0x43   :  { %574 = vmatpush.msrb.mxu3 %v2343_v34  ;;  %1866 = vmatmul.msk.f32.gmra.mxu2 %vm66_vm0, %v37_v14 }
  0x44   :  { %1874 = vmatmul.msk.f32.gmra.mxu3 %vm66_vm0, %v37_v14  ;;  %554 = vmatpush.msrb.mxu2 %v2384_v40  ;;  %v3989_v14 = vld [vmem:[#allocation5_spill] sm:$0xff] }
  0x45   :  { %575 = vmatpush.msrb.mxu3 %v2370_v38  ;;  %517 = vmatpush.msra.mxu0 %v2349_v35 }
  0x46   :  { %555 = vmatpush.msrb.mxu2 %v2410_v44  ;;  %537 = vmatpush.msra.mxu1 %v2365_v37 }
  0x47   :  { %576 = vmatpush.msrb.mxu3 %v2398_v42  ;;  %518 = vmatpush.msra.mxu0 %v2379_v39 }
  0x48   :  { %556 = vmatpush.msrb.mxu2 %v2434_v48  ;;  %538 = vmatpush.msra.mxu1 %v2393_v41 }
  0x49   :  { %577 = vmatpush.msrb.mxu3 %v2422_v46  ;;  %519 = vmatpush.msra.mxu0 %v2405_v43 }
  0x4a   :  { %557 = vmatpush.msrb.mxu2 %v2469_v53  ;;  %539 = vmatpush.msra.mxu1 %v2416_v45 }
  0x4b   :  { %1867 = vmatmul.msk.f32.gmra.mxu2 %vm66_vm0, %v2209_v9  ;;  %578 = vmatpush.msrb.mxu3 %v2464_v52 }
  0x4c   :  { %1875 = vmatmul.msk.f32.gmra.mxu3 %vm66_vm0, %v2209_v9  ;;  %558 = vmatpush.msrb.mxu2 %v2495_v57  ;;  %v3985_v9 = vld [vmem:[#allocation19_spill] sm:$0xff] }
  0x4d   :  { %579 = vmatpush.msrb.mxu3 %v2490_v56  ;;  %520 = vmatpush.msra.mxu0 %v2429_v47 }
  0x4e   :  { %559 = vmatpush.msrb.mxu2 %v2519_v61  ;;  %540 = vmatpush.msra.mxu1 %v2449_v50 }
  0x4f   :  { %580 = vmatpush.msrb.mxu3 %v2514_v60  ;;  %521 = vmatpush.msra.mxu0 %v2454_v51 }
  0x50   :  { %560 = vmatpush.msrb.mxu2 %v2554_v2  ;;  %541 = vmatpush.msra.mxu1 %v2478_v54 }
  0x51   :  { %581 = vmatpush.msrb.mxu3 %v2549_v1  ;;  %522 = vmatpush.msra.mxu0 %v2483_v55 }
  0x52   :  { %561 = vmatpush.msrb.mxu2 %v2580_v6  ;;  %542 = vmatpush.msra.mxu1 %v2500_v58 }
  0x53   :  { %1868 = vmatmul.msk.f32.gmra.mxu2 %vm66_vm0, %v2277_v23  ;;  %582 = vmatpush.msrb.mxu3 %v2575_v5 }
  0x54   :  { %1876 = vmatmul.msk.f32.gmra.mxu3 %vm66_vm0, %v2277_v23  ;;  %562 = vmatpush.msrb.mxu2 %v2604_v11  ;;  %v3986_v23 = vld [vmem:[#allocation22_spill] sm:$0xff] }
  0x55   :  { %523 = vmatpush.msra.mxu0 %v2505_v59  ;;  %543 = vmatpush.msra.mxu1 %v2533_v63 }
  0x56   :  { %563 = vmatpush.msrb.mxu2 %v2636_v22  ;;  %583 = vmatpush.msrb.mxu3 %v2599_v10 }
  0x57   :  { %524 = vmatpush.msra.mxu0 %v2538_v0  ;;  %544 = vmatpush.msra.mxu1 %v2563_v3 }
  0x58   :  { %564 = vmatpush.msrb.mxu2 %v2656_v36  ;;  %584 = vmatpush.msrb.mxu3 %v2631_v19 }
  0x59   :  { %525 = vmatpush.msra.mxu0 %v2568_v4  ;;  %545 = vmatpush.msra.mxu1 %v2585_v7 }
  0x5a   :  { %585 = vmatpush.msrb.mxu3 %v2651_v25  ;;  %565 = vmatpush.msrb.mxu2 %v2669_v18 }
  0x5b   :  { %414 = vmatmul.f32.vlgmr.msra.gmra.mxu2 %v2126_v13  ;;  %526 = vmatpush.msra.mxu0 %v2590_v8 }
  0x5c   :  { %434 = vmatmul.f32.vlgmr.msra.gmra.mxu3 %v2126_v13  ;;  %546 = vmatpush.msra.mxu1 %v2616_v15  ;;  %v3988_v13 = vld [vmem:[#allocation4_spill] sm:$0xff] }
  0x5d   :  { %566 = vmatpush.msrb.mxu2 %v2686_v12  ;;  %586 = vmatpush.msrb.mxu3 %v2664_v49 }
  0x5e   :  { %527 = vmatpush.msra.mxu0 %v3985_v9  ;;  %547 = vmatpush.msra.mxu1 %v3986_v23 }
  0x5f   :  { %567 = vmatpush.msrb.mxu2 %v2697_v16  ;;  %587 = vmatpush.msrb.mxu3 %v2681_v24 }
  0x60   :  { %666 = vmatpush.msrb.mxu0 %v3987_v62  ;;  %686 = vmatpush.msrb.mxu1 %v3988_v13 }
  0x61   :  { %706 = vmatpush.msra.mxu2 %v2315_v29  ;;  %726 = vmatpush.msra.mxu3 %v2296_v26 }
  0x62   :  { %667 = vmatpush.msrb.mxu0 %v3989_v14  ;;  %687 = vmatpush.msrb.mxu1 %v2249_v17 }
  0x63   :  { %707 = vmatpush.msra.mxu2 %v2337_v33  ;;  %727 = vmatpush.msra.mxu3 %v2320_v30 }
  0x64   :  { %668 = vmatpush.msrb.mxu0 %v2262_v20  ;;  %688 = vmatpush.msrb.mxu1 %v2267_v21 }
  0x65   :  { %708 = vmatpush.msra.mxu2 %v2384_v40  ;;  %728 = vmatpush.msra.mxu3 %v2343_v34 }
  0x66   :  { %669 = vmatpush.msrb.mxu0 %v2301_v27  ;;  %689 = vmatpush.msrb.mxu1 %v2310_v28 }
  0x67   :  { %709 = vmatpush.msra.mxu2 %v2410_v44  ;;  %729 = vmatpush.msra.mxu3 %v2370_v38 }
  0x68   :  { %670 = vmatpush.msrb.mxu0 %v2325_v31  ;;  %690 = vmatpush.msrb.mxu1 %v2332_v32 }
  0x69   :  { %710 = vmatpush.msra.mxu2 %v2434_v48  ;;  %730 = vmatpush.msra.mxu3 %v2398_v42 }
  0x6a   :  { %671 = vmatpush.msrb.mxu0 %v2349_v35  ;;  %691 = vmatpush.msrb.mxu1 %v2365_v37 }
  0x6b   :  { %711 = vmatpush.msra.mxu2 %v2469_v53  ;;  %731 = vmatpush.msra.mxu3 %v2422_v46 }
  0x6c   :  { %672 = vmatpush.msrb.mxu0 %v2379_v39  ;;  %692 = vmatpush.msrb.mxu1 %v2393_v41 }
  0x6d   :  { %712 = vmatpush.msra.mxu2 %v2495_v57  ;;  %732 = vmatpush.msra.mxu3 %v2464_v52 }
  0x6e   :  { %673 = vmatpush.msrb.mxu0 %v2405_v43  ;;  %693 = vmatpush.msrb.mxu1 %v2416_v45 }
  0x6f   :  { %713 = vmatpush.msra.mxu2 %v2519_v61  ;;  %733 = vmatpush.msra.mxu3 %v2490_v56 }
  0x70   :  { %674 = vmatpush.msrb.mxu0 %v2429_v47  ;;  %694 = vmatpush.msrb.mxu1 %v2449_v50 }
  0x71   :  { %714 = vmatpush.msra.mxu2 %v2554_v2  ;;  %734 = vmatpush.msra.mxu3 %v2514_v60 }
  0x72   :  { %675 = vmatpush.msrb.mxu0 %v2454_v51  ;;  %695 = vmatpush.msrb.mxu1 %v2478_v54 }
  0x73   :  { %715 = vmatpush.msra.mxu2 %v2580_v6  ;;  %735 = vmatpush.msra.mxu3 %v2549_v1 }
  0x74   :  { %676 = vmatpush.msrb.mxu0 %v2483_v55  ;;  %696 = vmatpush.msrb.mxu1 %v2500_v58 }
  0x75   :  { %716 = vmatpush.msra.mxu2 %v2604_v11  ;;  %736 = vmatpush.msra.mxu3 %v2575_v5 }
  0x76   :  { %677 = vmatpush.msrb.mxu0 %v2505_v59  ;;  %697 = vmatpush.msrb.mxu1 %v2533_v63 }
  0x77   :  { %717 = vmatpush.msra.mxu2 %v2636_v22  ;;  %737 = vmatpush.msra.mxu3 %v2599_v10 }
  0x78   :  { %678 = vmatpush.msrb.mxu0 %v2538_v0  ;;  %698 = vmatpush.msrb.mxu1 %v2563_v3 }
  0x79   :  { %718 = vmatpush.msra.mxu2 %v2656_v36  ;;  %738 = vmatpush.msra.mxu3 %v2631_v19 }
  0x7a   :  { %679 = vmatpush.msrb.mxu0 %v2568_v4  ;;  %699 = vmatpush.msrb.mxu1 %v2585_v7 }
  0x7b   :  { %719 = vmatpush.msra.mxu2 %v2669_v18  ;;  %739 = vmatpush.msra.mxu3 %v2651_v25  ;;  %v56_v25 = vld [vmem:[%s3855_s3] sm:$0xf] }
  0x7c   :  { %680 = vmatpush.msrb.mxu0 %v2590_v8  ;;  %700 = vmatpush.msrb.mxu1 %v2616_v15  ;;  %v58_v18 = vperm.slane %v56_v25, 0  ;;  %v59_v15 = vperm.slane %v56_v25, 1 }
  0x7d   :  { %720 = vmatpush.msra.mxu2 %v2686_v12  ;;  %740 = vmatpush.msra.mxu3 %v2664_v49 }
  0x7e   :  { %681 = vmatpush.msrb.mxu0 %v3985_v9  ;;  %701 = vmatpush.msrb.mxu1 %v3986_v23 }
  0x7f   :  { %721 = vmatpush.msra.mxu2 %v2697_v16  ;;  %741 = vmatpush.msra.mxu3 %v2681_v24 }
  0x87   :  { %v108_v7 = vpop.f32.mrf.mxu0 }
  0x88   :  { %v149_v8 = vpop.f32.mrf.mxu1 }
  0x8d   :  { %v126_v4 = vpop.f32.mrf.mxu2 }
  0x8e   :  { %v2842_v12 = vadd.f32 %v126_v4, %v58_v18  ;;  %v167_v49 = vpop.f32.mrf.mxu3 }
  0x8f   :  { %v2844_v19 = vadd.f32 %v167_v49, %v59_v15  ;;  %v111_v9 = vpop.f32.mrf.mxu0 }
  0x90   :  { %3990 = vst [vmem:[#allocation3_spill] sm:$0xff] %v2842_v12  ;;  %v2846_v23 = vadd.f32 %v111_v9, %v58_v18  ;;  %v152_v16 = vpop.f32.mrf.mxu1 }
  0x91   :  { %3991 = vst [vmem:[#allocation4_spill] sm:$0xff] %v2844_v19  ;;  %v2848_v36 = vadd.f32 %v152_v16, %v59_v15 }
  0x92   :  { %3992 = vst [vmem:[#allocation5_spill] sm:$0xff] %v2846_v23 }
  0x93   :  { %3993 = vst [vmem:[#allocation30_spill] sm:$0xff] %v2848_v36 }
  0x95   :  { %v129_v24 = vpop.f32.mrf.mxu2 }
  0x96   :  { %v2850_v3 = vadd.f32 %v129_v24, %v58_v18  ;;  %v170_v0 = vpop.f32.mrf.mxu3  ;;  %v2866_v24 = vperm.slane %v56_v25, 2 }
  0x97   :  { %v2852_v10 = vadd.f32 %v170_v0, %v59_v15  ;;  %v114_v22 = vpop.f32.mrf.mxu0  ;;  %v61_v0 = vperm.slane %v56_v25, 3 }
  0x98   :  { %3994 = vst [vmem:[#allocation31_spill] sm:$0xff] %v2850_v3  ;;  %v2854_v63 = vadd.f32 %v114_v22, %v58_v18  ;;  %v155_v4 = vpop.f32.mrf.mxu1 }
  0x99   :  { %3995 = vst [vmem:[#allocation32_spill] sm:$0xff] %v2852_v10  ;;  %v2856_v12 = vadd.f32 %v155_v4, %v59_v15 }
  0x9a   :  { %3996 = vst [vmem:[#allocation33_spill] sm:$0xff] %v2854_v63 }
  0x9b   :  { %3997 = vst [vmem:[#allocation34_spill] sm:$0xff] %v2856_v12 }
  0x9e   :  { %v2858_v49 = vpop.f32.mrf.mxu2 }
  0x9f   :  { %v2860_v19 = vpop.f32.mrf.mxu3  ;;  %v117_v9 = vpop.f32.mrf.mxu0 }
  0xa0   :  { %v2862_v23 = vadd.f32 %v117_v9, %v58_v18  ;;  %v158_v16 = vpop.f32.mrf.mxu1 }
  0xa1   :  { %v2864_v36 = vadd.f32 %v158_v16, %v59_v15 }
  0xa2   :  { %3998 = vst [vmem:[#allocation35_spill] sm:$0xff] %v2862_v23 }
  0xa3   :  { %3999 = vst [vmem:[#allocation36_spill] sm:$0xff] %v2864_v36 }
  0xa6   :  { %v193_v10 = vpop.f32.mrf.mxu2 }
  0xa7   :  { %v2869_v22 = vadd.f32 %v193_v10, %v2866_v24  ;;  %v234_v3 = vpop.f32.mrf.mxu3  ;;  %v120_v12 = vpop.f32.mrf.mxu0 }
  0xa8   :  { %v2871_v4 = vadd.f32 %v234_v3, %v61_v0  ;;  %v2873_v63 = vadd.f32 %v120_v12, %v58_v18  ;;  %v161_v59 = vpop.f32.mrf.mxu1 }
  0xa9   :  { %4000 = vst [vmem:[#allocation37_spill] sm:$0xff] %v2869_v22  ;;  %v2875_v5 = vadd.f32 %v161_v59, %v59_v15 }
  0xaa   :  { %4001 = vst [vmem:[#allocation38_spill] sm:$0xff] %v2871_v4  ;;  %v109_v4 = vadd.f32 %v108_v7, %v58_v18 }
  0xab   :  { %4002 = vst [vmem:[#allocation39_spill] sm:$0xff] %v2873_v63 }
  0xac   :  { %4003 = vst [vmem:[#allocation40_spill] sm:$0xff] %v2875_v5 }
  0xae   :  { %v196_v9 = vpop.f32.mrf.mxu2 }
  0xaf   :  { %v2878_v16 = vadd.f32 %v196_v9, %v2866_v24  ;;  %v237_v36 = vpop.f32.mrf.mxu3  ;;  %v123_v25 = vpop.f32.mrf.mxu0 }
  0xb0   :  { %v2880_v23 = vadd.f32 %v237_v36, %v61_v0  ;;  %v2882_v11 = vadd.f32 %v123_v25, %v58_v18  ;;  %v164_v10 = vpop.f32.mrf.mxu1 }
  0xb1   :  { %4004 = vst [vmem:[#allocation41_spill] sm:$0xff] %v2878_v16  ;;  %v2884_v22 = vadd.f32 %v164_v10, %v59_v15  ;;  %v150_v16 = vadd.f32 %v149_v8, %v59_v15 }
  0xb2   :  { %4005 = vst [vmem:[#allocation42_spill] sm:$0xff] %v2880_v23 }
  0xb3   :  { %4006 = vst [vmem:[#allocation43_spill] sm:$0xff] %v2882_v11 }
  0xb4   :  { %4007 = vst [vmem:[#allocation44_spill] sm:$0xff] %v2884_v22 }
  0xb6   :  { %v199_v3 = vpop.f32.mrf.mxu2 }
  0xb7   :  { %v2887_v12 = vadd.f32 %v199_v3, %v2866_v24  ;;  %v240_v63 = vpop.f32.mrf.mxu3  ;;  %v375_v5 = vpop.f32.mrf.mxu0 }
  0xb8   :  { %v2889_v59 = vadd.f32 %v240_v63, %v61_v0  ;;  %v395_v9 = vpop.f32.mrf.mxu1  ;;  %v438_v58 = vadd.f32 %v375_v5, %v109_v4 }
  0xb9   :  { %4008 = vst [vmem:[#allocation45_spill] sm:$0xff] %v2887_v12  ;;  %v439_v36 = vadd.f32 %v395_v9, %v150_v16 }
  0xba   :  { %4009 = vst [vmem:[#allocation46_spill] sm:$0xff] %v2889_v59  ;;  %v1877_v10 = vmul.f32 -1.442695, %v438_v58 }
  0xbb   :  { %v1878_v55 = vmul.f32 -1.442695, %v439_v36 }
  0xbc   :  { %1918 = vpow2.f32 %v1877_v10 }
  0xbd   :  { %1920 = vpow2.f32 %v1878_v55 }
  0xbe   :  { %v202_v23 = vpop.f32.mrf.mxu2 }
  0xbf   :  { %v2892_v25 = vadd.f32 %v202_v23, %v2866_v24  ;;  %v243_v11 = vpop.f32.mrf.mxu3 }
  0xc0   :  { %v2894_v22 = vadd.f32 %v243_v11, %v61_v0 }
  0xc1   :  { %4010 = vst [vmem:[#allocation47_spill] sm:$0xff] %v2892_v25 }
  0xc2   :  { %4011 = vst [vmem:[#allocation48_spill] sm:$0xff] %v2894_v22  ;;  %v1919_v5 = vpop.eup %1918 }
  0xc3   :  { %v1921_v8 = vpop.eup %1920  ;;  %v445_v15 = vadd.f32 1.0, %v1919_v5 }
  0xc4   :  { %v464_v4 = vadd.f32 1.0, %v1921_v8 }
  0xc5   :  { %1922 = vrcp.f32 %v445_v15  ;;  %vm451_vm3 = vweird.f32 %v445_v15 }
  0xc6   :  { %v205_v3 = vpop.f32.mrf.mxu2  ;;  %1924 = vrcp.f32 %v464_v4  ;;  %v476_v59 = vand.u32 2147483648, %v464_v4  ;;  %vm470_vm4 = vweird.f32 %v464_v4 }
  0xc7   :  { %v2897_v63 = vadd.f32 %v205_v3, %v2866_v24  ;;  %v246_v7 = vpop.f32.mrf.mxu3 }
  0xc8   :  { %v2899_v18 = vadd.f32 %v246_v7, %v61_v0 }
  0xc9   :  { %4012 = vst [vmem:[#allocation49_spill] sm:$0xff] %v2897_v63  ;;  %v232_v63 = vadd.f32 %v2860_v19, %v61_v0  ;;  %v457_v19 = vand.u32 2147483648, %v445_v15 }
  0xca   :  { %4013 = vst [vmem:[#allocation50_spill] sm:$0xff] %v2899_v18 }
  0xcb   :  { %v1923_v9 = vpop.eup %1922 }
  0xcc   :  { %v1925_v3 = vpop.eup %1924  ;;  %v447_v5 = vmul.f32 %v1923_v9, %v445_v15  ;;  %vm452_vm1 = vweird.f32 %v1923_v9 }
  0xcd   :  { %v466_v8 = vmul.f32 %v1925_v3, %v464_v4  ;;  %vm471_vm2 = vweird.f32 %v1925_v3  ;;  %vm453_vm5 = vmor %vm451_vm3, %vm452_vm1 }
  0xce   :  { %v208_v23 = vpop.f32.mrf.mxu2  ;;  %vm472_vm6 = vmor %vm470_vm4, %vm471_vm2 }
  0xcf   :  { %v2902_v16 = vadd.f32 %v208_v23, %v2866_v24  ;;  %v249_v58 = vpop.f32.mrf.mxu3  ;;  %v448_v23 = vsub.f32 1.0, %v447_v5  ;;  %v474_v5 = vand.u32 2147483647, %v464_v4 }
  0xd0   :  { %v2904_v11 = vadd.f32 %v249_v58, %v61_v0 }
  0xd1   :  { %4014 = vst [vmem:[#allocation51_spill] sm:$0xff] %v2902_v16  ;;  %v467_v16 = vsub.f32 1.0, %v466_v8  ;;  %vm475_vm8 = vcmp.eq.f32.partialorder %v474_v5, 8.507059e+37 }
  0xd2   :  { %4015 = vst [vmem:[#allocation52_spill] sm:$0xff] %v2904_v11  ;;  %v191_v11 = vadd.f32 %v2858_v49, %v2866_v24 }
  0xd6   :  { %v211_v55 = vpop.f32.mrf.mxu2 }
  0xd7   :  { %v2907_v36 = vadd.f32 %v211_v55, %v2866_v24  ;;  %v252_v10 = vpop.f32.mrf.mxu3  ;;  %v468_v55 = vmul.f32 %v1925_v3, %v467_v16 }
  0xd8   :  { %v2909_v7 = vadd.f32 %v252_v10, %v61_v0  ;;  %v455_v0 = vand.u32 2147483647, %v445_v15 }
  0xd9   :  { %4016 = vst [vmem:[#allocation53_spill] sm:$0xff] %v2907_v36  ;;  %v449_v36 = vmul.f32 %v1923_v9, %v448_v23 }
  0xda   :  { %4017 = vst [vmem:[#allocation54_spill] sm:$0xff] %v2909_v7  ;;  %v469_v7 = vadd.f32 %v1925_v3, %v468_v55  ;;  %vm456_vm7 = vcmp.eq.f32.partialorder %v455_v0, 8.507059e+37 }
  0xdb   :  { %v450_v10 = vadd.f32 %v1923_v9, %v449_v36 }
  0xdc   :  { %v473_v24 = vsel %vm472_vm6, %v1925_v3, %v469_v7 }
  0xdd   :  { %v454_v49 = vsel %vm453_vm5, %v1923_v9, %v450_v10 }
  0xde   :  { %v415_v18 = vpop.f32.mrf.mxu2 }
  0xdf   :  { %v435_v58 = vpop.f32.mrf.mxu3  ;;  %v440_v22 = vadd.f32 %v415_v18, %v191_v11  ;;  %v477_v18 = vor.u32 1.1754944e-38, %v476_v59 }
  0xe0   :  { %v441_v25 = vadd.f32 %v435_v58, %v232_v63 }
  0xe1   :  { %v478_v16 = vsel %vm475_vm8, %v477_v18, %v473_v24  ;;  %v4045_v18 = vld [vmem:[#allocation37_spill] sm:$0xff] }
  0xe2   :  { %v1879_v12 = vmul.f32 -1.442695, %v441_v25  ;;  %v500_v36 = vmul.f32 0.0, %v478_v16 }
  0xe4   :  { %1926 = vpow2.f32 %v1879_v12  ;;  %v458_v12 = vor.u32 1.1754944e-38, %v457_v19 }
  0xe5   :  { %1928 = vtanh.f32 %v440_v22 }
  0xe6   :  { %v459_v22 = vsel %vm456_vm7, %v458_v12, %v454_v49 }
  0xea   :  { %v1927_v8 = vpop.eup %1926 }
  0xeb   :  { %v484_v25 = vadd.f32 1.0, %v1927_v8  ;;  %v1929_v63 = vpop.eup %1928 }
  0xec   :  { %v501_v11 = vmul.f32 %v1929_v63, %v459_v22 }
  0xed   :  { %1930 = vrcp.f32 %v484_v25  ;;  %v496_v9 = vand.u32 2147483648, %v484_v25  ;;  %v494_v7 = vand.u32 2147483647, %v484_v25  ;;  %vm490_vm10 = vweird.f32 %v484_v25 }
  0xee   :  { %v2914_v58 = vadd.f32 %v501_v11, %v500_v36 }
  0xef   :  { %v497_v55 = vor.u32 1.1754944e-38, %v496_v9  ;;  %vm495_vm12 = vcmp.eq.f32.partialorder %v494_v7, 8.507059e+37 }
  0xf0   :  { %1932 = vtanh.f32 %v2914_v58 }
  0xf3   :  { %v1931_v23 = vpop.eup %1930 }
  0xf4   :  { %v486_v15 = vmul.f32 %v1931_v23, %v484_v25  ;;  %vm491_vm9 = vweird.f32 %v1931_v23 }
  0xf5   :  { %vm492_vm11 = vmor %vm490_vm10, %vm491_vm9 }
  0xf6   :  { %v487_v4 = vsub.f32 1.0, %v486_v15  ;;  %v1933_v19 = vpop.eup %1932 }
  0xf8   :  { %v488_v3 = vmul.f32 %v1931_v23, %v487_v4 }
  0xfa   :  { %v489_v59 = vadd.f32 %v1931_v23, %v488_v3 }
  0xfc   :  { %v493_v10 = vsel %vm492_vm11, %v1931_v23, %v489_v59 }
  0xfd   :  { %v498_v0 = vsel %vm495_vm12, %v497_v55, %v493_v10 }
  0xfe   :  { %v504_v5 = vmul.f32 %v1933_v19, %v498_v0 }
 0x100   :  { %528 = vmatmul.f32.vlgmr.msra.gmra.mxu0 %v504_v5  ;;  %548 = vmatmul.f32.vlgmr.msra.gmra.mxu1 %v504_v5 }
 0x101   :  { %568 = vmatmul.f32.vlgmr.msrb.gmra.mxu2 %v504_v5  ;;  %588 = vmatmul.f32.vlgmr.msrb.gmra.mxu3 %v504_v5 }
 0x102   :  { %820 = vmatpush.msra.mxu0 %v3987_v62  ;;  %840 = vmatpush.msra.mxu1 %v3988_v13 }
 0x103   :  { %860 = vmatpush.msrb.mxu2 %v2315_v29  ;;  %880 = vmatpush.msrb.mxu3 %v2296_v26  ;;  %v4021_v26 = vld [vmem:[#allocation13_spill] sm:$0xff] }
 0x104   :  { %821 = vmatpush.msra.mxu0 %v3989_v14  ;;  %841 = vmatpush.msra.mxu1 %v2249_v17  ;;  %v4018_v17 = vld [vmem:[#allocation6_spill] sm:$0xff]  ;;  %v4024_v29 = vld [vmem:[#allocation21_spill] sm:$0xff] }
 0x105   :  { %861 = vmatpush.msrb.mxu2 %v2337_v33  ;;  %881 = vmatpush.msrb.mxu3 %v2320_v30  ;;  %v4025_v30 = vld [vmem:[#allocation16_spill] sm:$0xff] }
 0x106   :  { %822 = vmatpush.msra.mxu0 %v2262_v20  ;;  %842 = vmatpush.msra.mxu1 %v2267_v21  ;;  %v4019_v20 = vld [vmem:[#allocation7_spill] sm:$0xff]  ;;  %v4020_v21 = vld [vmem:[#allocation17_spill] sm:$0xff]  ;;  %v4028_v33 = vld [vmem:[#allocation24_spill] sm:$0xff] }
 0x107   :  { %862 = vmatpush.msrb.mxu2 %v2384_v40  ;;  %882 = vmatpush.msrb.mxu3 %v2343_v34  ;;  %v4029_v34 = vld [vmem:[#allocation20_spill] sm:$0xff]  ;;  %v4034_v40 = vld [vmem:[#allocation15_spill] sm:$0xff] }
 0x108   :  { %823 = vmatpush.msra.mxu0 %v2301_v27  ;;  %843 = vmatpush.msra.mxu1 %v2310_v28  ;;  %v4022_v27 = vld [vmem:[#allocation8_spill] sm:$0xff]  ;;  %v4023_v28 = vld [vmem:[#allocation9_spill] sm:$0xff] }
 0x109   :  { %863 = vmatpush.msrb.mxu2 %v2410_v44  ;;  %883 = vmatpush.msrb.mxu3 %v2370_v38  ;;  %v4032_v38 = vld [vmem:[#allocation26_spill] sm:$0xff]  ;;  %v4038_v44 = vld [vmem:[#allocation19_spill] sm:$0xff] }
 0x10a   :  { %824 = vmatpush.msra.mxu0 %v2325_v31  ;;  %844 = vmatpush.msra.mxu1 %v2332_v32  ;;  %v4026_v31 = vld [vmem:[#allocation10_spill] sm:$0xff]  ;;  %v4027_v32 = vld [vmem:[#allocation11_spill] sm:$0xff] }
 0x10b   :  { %864 = vmatpush.msrb.mxu2 %v2434_v48  ;;  %884 = vmatpush.msrb.mxu3 %v2398_v42  ;;  %v4036_v42 = vld [vmem:[#allocation28_spill] sm:$0xff] }
 0x10c   :  { %825 = vmatpush.msra.mxu0 %v2349_v35  ;;  %845 = vmatpush.msra.mxu1 %v2365_v37  ;;  %v4030_v35 = vld [vmem:[#allocation12_spill] sm:$0xff]  ;;  %v4031_v37 = vld [vmem:[#allocation14_spill] sm:$0xff] }
 0x10d   :  { %865 = vmatpush.msrb.mxu2 %v2469_v53  ;;  %885 = vmatpush.msrb.mxu3 %v2422_v46  ;;  %v4040_v46 = vld [vmem:[#allocation29_spill] sm:$0xff]  ;;  %v4043_v53 = vld [vmem:[#allocation30_spill] sm:$0xff] }
 0x10e   :  { %826 = vmatpush.msra.mxu0 %v2379_v39  ;;  %846 = vmatpush.msra.mxu1 %v2393_v41  ;;  %v4033_v39 = vld [vmem:[#allocation23_spill] sm:$0xff]  ;;  %v4035_v41 = vld [vmem:[#allocation18_spill] sm:$0xff] }
 0x10f   :  { %866 = vmatpush.msrb.mxu2 %v2495_v57  ;;  %886 = vmatpush.msrb.mxu3 %v2464_v52 }
 0x110   :  { %827 = vmatpush.msra.mxu0 %v2405_v43  ;;  %847 = vmatpush.msra.mxu1 %v2416_v45  ;;  %v4037_v43 = vld [vmem:[#allocation25_spill] sm:$0xff]  ;;  %v4039_v45 = vld [vmem:[#allocation22_spill] sm:$0xff] }
 0x111   :  { %867 = vmatpush.msrb.mxu2 %v2519_v61  ;;  %887 = vmatpush.msrb.mxu3 %v2490_v56  ;;  %v4044_v61 = vld [vmem:[#allocation38_spill] sm:$0xff] }
 0x112   :  { %828 = vmatpush.msra.mxu0 %v2429_v47  ;;  %848 = vmatpush.msra.mxu1 %v2449_v50  ;;  %v4041_v47 = vld [vmem:[#allocation27_spill] sm:$0xff] }
 0x113   :  { %868 = vmatpush.msrb.mxu2 %v2554_v2  ;;  %888 = vmatpush.msrb.mxu3 %v2514_v60 }
 0x114   :  { %829 = vmatpush.msra.mxu0 %v2454_v51  ;;  %849 = vmatpush.msra.mxu1 %v2478_v54  ;;  %v4042_v51 = vld [vmem:[#allocation5_spill] sm:$0xff] }
 0x115   :  { %869 = vmatpush.msrb.mxu2 %v2580_v6  ;;  %889 = vmatpush.msrb.mxu3 %v2549_v1 }
 0x116   :  { %830 = vmatpush.msra.mxu0 %v4018_v17  ;;  %850 = vmatpush.msra.mxu1 %v4019_v20 }
 0x117   :  { %870 = vmatpush.msrb.mxu2 %v4020_v21  ;;  %890 = vmatpush.msrb.mxu3 %v4021_v26 }
 0x118   :  { %831 = vmatpush.msra.mxu0 %v4022_v27  ;;  %851 = vmatpush.msra.mxu1 %v4023_v28 }
 0x119   :  { %871 = vmatpush.msrb.mxu2 %v4024_v29  ;;  %891 = vmatpush.msrb.mxu3 %v4025_v30 }
 0x11a   :  { %832 = vmatpush.msra.mxu0 %v4026_v31  ;;  %852 = vmatpush.msra.mxu1 %v4027_v32 }
 0x11b   :  { %872 = vmatpush.msrb.mxu2 %v4028_v33  ;;  %892 = vmatpush.msrb.mxu3 %v4029_v34 }
 0x11c   :  { %833 = vmatpush.msra.mxu0 %v4030_v35  ;;  %853 = vmatpush.msra.mxu1 %v4031_v37 }
 0x11d   :  { %873 = vmatpush.msrb.mxu2 %v4032_v38  ;;  %893 = vmatpush.msrb.mxu3 %v4033_v39 }
 0x11e   :  { %834 = vmatpush.msra.mxu0 %v4034_v40  ;;  %854 = vmatpush.msra.mxu1 %v4035_v41 }
 0x11f   :  { %874 = vmatpush.msrb.mxu2 %v4036_v42  ;;  %894 = vmatpush.msrb.mxu3 %v4037_v43 }
 0x120   :  { %835 = vmatpush.msra.mxu0 %v4038_v44  ;;  %855 = vmatpush.msra.mxu1 %v4039_v45 }
 0x121   :  { %875 = vmatpush.msrb.mxu2 %v4040_v46  ;;  %895 = vmatpush.msrb.mxu3 %v4041_v47 }
 0x17d   :  { %v529_v48 = vpop.f32.mrf.mxu0  ;;  %v549_v50 = vpop.f32.mrf.mxu1 }
 0x17e   :  { %v592_v52 = vadd.f32 %v529_v48, %v4042_v51  ;;  %v593_v54 = vadd.f32 %v549_v50, %v4043_v53 }
 0x180   :  { %v1880_v56 = vmul.f32 -1.442695, %v592_v52  ;;  %v1881_v57 = vmul.f32 -1.442695, %v593_v54 }
 0x182   :  { %1934 = vpow2.f32 %v1880_v56  ;;  %v2998_v56 = vld [vmem:[%s3854_s2 + $0x1e8] sm:$0xff] }
 0x183   :  { %1936 = vpow2.f32 %v1881_v57  ;;  %v3004_v57 = vld [vmem:[%s3854_s2 + $0x1f0] sm:$0xff] }
 0x184   :  { %v589_v60 = vpop.f32.mrf.mxu3  ;;  %v569_v49 = vpop.f32.mrf.mxu2 }
 0x185   :  { %v595_v1 = vadd.f32 %v589_v60, %v4044_v61  ;;  %v594_v12 = vadd.f32 %v569_v49, %v4045_v18  ;;  %v3010_v60 = vld [vmem:[%s3854_s2 + $0x1f8] sm:$0xff]  ;;  %v3016_v61 = vld [vmem:[%s3854_s2 + $0x1c0] sm:$0xff] }
 0x186   :  { %v3058_v49 = vld [vmem:[%s3854_s2 + $0x1b8] sm:$0xff] }
 0x187   :  { %v1882_v2 = vmul.f32 -1.442695, %v595_v1  ;;  %v3022_v1 = vld [vmem:[%s3854_s2 + $0x1c8] sm:$0xff]  ;;  %v3082_v18 = vld [vmem:[%s3854_s2 + $0x198] sm:$0xff] }
 0x188   :  { %v1935_v62 = vpop.eup %1934 }
 0x189   :  { %v1937_v13 = vpop.eup %1936  ;;  %v599_v14 = vadd.f32 1.0, %v1935_v62  ;;  %1938 = vpow2.f32 %v1882_v2  ;;  %v3028_v2 = vld [vmem:[%s3854_s2 + $0x1d0] sm:$0xff]  ;;  %v3034_v62 = vld [vmem:[%s3854_s2 + $0x1d8] sm:$0xff] }
 0x18a   :  { %v618_v8 = vadd.f32 1.0, %v1937_v13  ;;  %v3040_v13 = vld [vmem:[%s3854_s2 + $0x1a0] sm:$0xff] }
 0x18b   :  { %1940 = vrcp.f32 %v599_v14  ;;  %v611_v15 = vand.u32 2147483648, %v599_v14  ;;  %v609_v3 = vand.u32 2147483647, %v599_v14  ;;  %vm605_vm15 = vweird.f32 %v599_v14 }
 0x18c   :  { %1942 = vrcp.f32 %v618_v8  ;;  %v630_v4 = vand.u32 2147483648, %v618_v8  ;;  %v628_v59 = vand.u32 2147483647, %v618_v8  ;;  %vm624_vm1 = vweird.f32 %v618_v8 }
 0x18d   :  { %v612_v19 = vor.u32 1.1754944e-38, %v611_v15  ;;  %vm610_vm4 = vcmp.eq.f32.partialorder %v609_v3, 8.507059e+37  ;;  %v3124_v15 = vld [vmem:[%s3854_s2 + $0x150] sm:$0xff]  ;;  %v3142_v3 = vld [vmem:[%s3854_s2 + $0x128] sm:$0xff] }
 0x18e   :  { %v631_v17 = vor.u32 1.1754944e-38, %v630_v4  ;;  %vm629_vm5 = vcmp.eq.f32.partialorder %v628_v59, 8.507059e+37  ;;  %v3130_v4 = vld [vmem:[%s3854_s2 + $0x158] sm:$0xff] }
 0x18f   :  { %v1939_v24 = vpop.eup %1938  ;;  %v3154_v59 = vld [vmem:[%s3854_s2 + $0x138] sm:$0xff] }
 0x190   :  { %v638_v25 = vadd.f32 1.0, %v1939_v24  ;;  %v3064_v24 = vld [vmem:[%s3854_s2 + $0x180] sm:$0xff] }
 0x191   :  { %v1941_v63 = vpop.eup %1940 }
 0x192   :  { %v1943_v22 = vpop.eup %1942  ;;  %v601_v16 = vmul.f32 %v1941_v63, %v599_v14  ;;  %1944 = vrcp.f32 %v638_v25  ;;  %vm606_vm13 = vweird.f32 %v1941_v63  ;;  %v650_v44 = vand.u32 2147483648, %v638_v25  ;;  %v3046_v14 = vld [vmem:[%s3854_s2 + $0x1a8] sm:$0xff] }
 0x193   :  { %v620_v11 = vmul.f32 %v1943_v22, %v618_v8  ;;  %1946 = vtanh.f32 %v594_v12  ;;  %vm625_vm14 = vweird.f32 %v1943_v22  ;;  %vm607_vm2 = vmor %vm605_vm15, %vm606_vm13  ;;  %vm644_vm7 = vweird.f32 %v638_v25  ;;  %v3052_v8 = vld [vmem:[%s3854_s2 + $0x1b0] sm:$0xff]  ;;  %v3088_v12 = vld [vmem:[%s3854_s2 + $0x160] sm:$0xff] }
 0x194   :  { %v602_v36 = vsub.f32 1.0, %v601_v16  ;;  %vm626_vm3 = vmor %vm624_vm1, %vm625_vm14  ;;  %v648_v48 = vand.u32 2147483647, %v638_v25  ;;  %v651_v51 = vor.u32 1.1754944e-38, %v650_v44  ;;  %v3100_v16 = vld [vmem:[%s3854_s2 + $0x170] sm:$0xff]  ;;  %v3271_v44 = vld [vmem:[%s3854_s2 + $0x68] sm:$0xff] }
 0x195   :  { %v621_v23 = vsub.f32 1.0, %v620_v11  ;;  %v3106_v11 = vld [vmem:[%s3854_s2 + $0x178] sm:$0xff]  ;;  %4054 = vst [vmem:[#allocation10_spill] sm:$0xff] %v3271_v44 }
 0x196   :  { %v603_v9 = vmul.f32 %v1941_v63, %v602_v36  ;;  %vm649_vm9 = vcmp.eq.f32.partialorder %v648_v48, 8.507059e+37  ;;  %v3112_v36 = vld [vmem:[%s3854_s2 + $0x140] sm:$0xff]  ;;  %v3285_v48 = vld [vmem:[%s3854_s2 + $0x48] sm:$0xff] }
 0x197   :  { %v622_v7 = vmul.f32 %v1943_v22, %v621_v23  ;;  %v3118_v23 = vld [vmem:[%s3854_s2 + $0x148] sm:$0xff]  ;;  %4056 = vst [vmem:[#allocation24_spill] sm:$0xff] %v3285_v48 }
 0x198   :  { %v1945_v55 = vpop.eup %1944  ;;  %v604_v10 = vadd.f32 %v1941_v63, %v603_v9  ;;  %v3136_v9 = vld [vmem:[%s3854_s2 + $0x120] sm:$0xff] }
 0x199   :  { %v623_v0 = vadd.f32 %v1943_v22, %v622_v7  ;;  %v640_v5 = vmul.f32 %v1945_v55, %v638_v25  ;;  %v1947_v26 = vpop.eup %1946  ;;  %vm645_vm6 = vweird.f32 %v1945_v55  ;;  %v3070_v25 = vld [vmem:[%s3854_s2 + $0x188] sm:$0xff]  ;;  %v3148_v7 = vld [vmem:[%s3854_s2 + $0x130] sm:$0xff] }
 0x19a   :  { %v608_v20 = vsel %vm607_vm2, %v1941_v63, %v604_v10  ;;  %vm646_vm8 = vmor %vm644_vm7, %vm645_vm6  ;;  %v3076_v63 = vld [vmem:[%s3854_s2 + $0x190] sm:$0xff]  ;;  %v3166_v10 = vld [vmem:[%s3854_s2 + $0x108] sm:$0xff] }
 0x19b   :  { %v613_v27 = vsel %vm610_vm4, %v612_v19, %v608_v20  ;;  %v627_v28 = vsel %vm626_vm3, %v1943_v22, %v623_v0  ;;  %v641_v30 = vsub.f32 1.0, %v640_v5  ;;  %v3094_v22 = vld [vmem:[%s3854_s2 + $0x168] sm:$0xff]  ;;  %v3172_v19 = vld [vmem:[%s3854_s2 + $0x110] sm:$0xff]  ;;  %v3178_v0 = vld [vmem:[%s3854_s2 + $0x118] sm:$0xff] }
 0x19c   :  { %v632_v31 = vsel %vm629_vm5, %v631_v17, %v627_v28  ;;  %v655_v32 = vmul.f32 %v1947_v26, %v613_v27  ;;  %v3184_v5 = vld [vmem:[%s3854_s2 + $0xe0] sm:$0xff]  ;;  %v3190_v17 = vld [vmem:[%s3854_s2 + $0xe8] sm:$0xff]  ;;  %v3196_v20 = vld [vmem:[%s3854_s2 + $0xf0] sm:$0xff] }
 0x19d   :  { %v654_v35 = vmul.f32 %v632_v31, %v2914_v58  ;;  %v642_v37 = vmul.f32 %v1945_v55, %v641_v30  ;;  %v2992_v58 = vld [vmem:[%s3854_s2 + $0x1e0] sm:$0xff]  ;;  %v3202_v26 = vld [vmem:[%s3854_s2 + $0xf8] sm:$0xff]  ;;  %v3214_v28 = vld [vmem:[%s3854_s2 + $0xc8] sm:$0xff] }
 0x19e   :  { %v3208_v27 = vld [vmem:[%s3854_s2 + $0xc0] sm:$0xff]  ;;  %v3221_v30 = vld [vmem:[%s3854_s2 + $0xd8] sm:$0xff] }
 0x19f   :  { %v2986_v40 = vadd.f32 %v655_v32, %v654_v35  ;;  %v643_v41 = vadd.f32 %v1945_v55, %v642_v37  ;;  %4046 = vst [vmem:[#allocation6_spill] sm:$0xff] %v3221_v30  ;;  %v3227_v31 = vld [vmem:[%s3854_s2 + $0xa0] sm:$0xff]  ;;  %v3233_v32 = vld [vmem:[%s3854_s2 + $0xa8] sm:$0xff] }
 0x1a0   :  { %4047 = vst [vmem:[#allocation7_spill] sm:$0xff] %v3227_v31  ;;  %v3246_v35 = vld [vmem:[%s3854_s2 + $0x80] sm:$0xff]  ;;  %v3252_v37 = vld [vmem:[%s3854_s2 + $0x88] sm:$0xff] }
 0x1a1   :  { %1948 = vtanh.f32 %v2986_v40  ;;  %v647_v50 = vsel %vm646_vm8, %v1945_v55, %v643_v41  ;;  %v3160_v55 = vld [vmem:[%s3854_s2 + $0x100] sm:$0xff]  ;;  %4048 = vst [vmem:[#allocation17_spill] sm:$0xff] %v3233_v32 }
 0x1a2   :  { %v652_v53 = vsel %vm649_vm9, %v651_v51, %v647_v50  ;;  %4050 = vst [vmem:[#allocation8_spill] sm:$0xff] %v3246_v35  ;;  %v3265_v41 = vld [vmem:[%s3854_s2 + $0x60] sm:$0xff]  ;;  %v4060_v51 = vld [vmem:[#allocation33_spill] sm:$0xff] }
 0x1a3   :  { %4051 = vst [vmem:[#allocation9_spill] sm:$0xff] %v3252_v37 }
 0x1a4   :  { %4053 = vst [vmem:[#allocation16_spill] sm:$0xff] %v3265_v41 }
 0x1a7   :  { %v1949_v52 = vpop.eup %1948 }
 0x1a8   :  { %v658_v54 = vmul.f32 %v1949_v52, %v652_v53 }
 0x1aa   :  { %682 = vmatmul.f32.vlgmr.msrb.gmra.mxu0 %v658_v54  ;;  %702 = vmatmul.f32.vlgmr.msrb.gmra.mxu1 %v658_v54 }
 0x1ab   :  { %722 = vmatmul.f32.vlgmr.msra.gmra.mxu2 %v658_v54  ;;  %742 = vmatmul.f32.vlgmr.msra.gmra.mxu3 %v658_v54 }
 0x1ac   :  { %974 = vmatpush.msrb.mxu0 %v2992_v58  ;;  %994 = vmatpush.msrb.mxu1 %v2998_v56 }
 0x1ad   :  { %1014 = vmatpush.msra.mxu2 %v3004_v57  ;;  %1034 = vmatpush.msra.mxu3 %v3010_v60 }
 0x1ae   :  { %975 = vmatpush.msrb.mxu0 %v3016_v61  ;;  %995 = vmatpush.msrb.mxu1 %v3022_v1 }
 0x1af   :  { %1015 = vmatpush.msra.mxu2 %v3028_v2  ;;  %1035 = vmatpush.msra.mxu3 %v3034_v62 }
 0x1b0   :  { %976 = vmatpush.msrb.mxu0 %v3040_v13  ;;  %996 = vmatpush.msrb.mxu1 %v3046_v14 }
 0x1b1   :  { %1016 = vmatpush.msra.mxu2 %v3052_v8  ;;  %1036 = vmatpush.msra.mxu3 %v3058_v49 }
 0x1b2   :  { %977 = vmatpush.msrb.mxu0 %v3064_v24  ;;  %997 = vmatpush.msrb.mxu1 %v3070_v25 }
 0x1b3   :  { %1017 = vmatpush.msra.mxu2 %v3076_v63  ;;  %1037 = vmatpush.msra.mxu3 %v3082_v18 }
 0x1b4   :  { %978 = vmatpush.msrb.mxu0 %v3088_v12  ;;  %998 = vmatpush.msrb.mxu1 %v3094_v22 }
 0x1b5   :  { %1018 = vmatpush.msra.mxu2 %v3100_v16  ;;  %1038 = vmatpush.msra.mxu3 %v3106_v11 }
 0x1b6   :  { %979 = vmatpush.msrb.mxu0 %v3112_v36  ;;  %999 = vmatpush.msrb.mxu1 %v3118_v23 }
 0x1b7   :  { %1019 = vmatpush.msra.mxu2 %v3124_v15  ;;  %1039 = vmatpush.msra.mxu3 %v3130_v4 }
 0x1b8   :  { %980 = vmatpush.msrb.mxu0 %v3136_v9  ;;  %1000 = vmatpush.msrb.mxu1 %v3142_v3 }
 0x1b9   :  { %1020 = vmatpush.msra.mxu2 %v3148_v7  ;;  %1040 = vmatpush.msra.mxu3 %v3154_v59 }
 0x1ba   :  { %981 = vmatpush.msrb.mxu0 %v3160_v55  ;;  %1001 = vmatpush.msrb.mxu1 %v3166_v10 }
 0x1bb   :  { %1021 = vmatpush.msra.mxu2 %v3172_v19  ;;  %1041 = vmatpush.msra.mxu3 %v3178_v0 }
 0x1bc   :  { %982 = vmatpush.msrb.mxu0 %v3184_v5  ;;  %1002 = vmatpush.msrb.mxu1 %v3190_v17 }
 0x1bd   :  { %1022 = vmatpush.msra.mxu2 %v3196_v20  ;;  %1042 = vmatpush.msra.mxu3 %v3202_v26 }
 0x1be   :  { %983 = vmatpush.msrb.mxu0 %v3208_v27  ;;  %1003 = vmatpush.msrb.mxu1 %v3214_v28 }
 0x1bf   :  { %1023 = vmatpush.msra.mxu2 %v2580_v6  ;;  %1043 = vmatpush.msra.mxu3 %v3221_v30  ;;  %v3240_v6 = vld [vmem:[%s3854_s2 + $0xb8] sm:$0xff] }
 0x1c0   :  { %984 = vmatpush.msrb.mxu0 %v3227_v31  ;;  %1004 = vmatpush.msrb.mxu1 %v3233_v32  ;;  %4049 = vst [vmem:[#allocation13_spill] sm:$0xff] %v3240_v6 }
 0x1c1   :  { %1024 = vmatpush.msra.mxu2 %v4020_v21  ;;  %1044 = vmatpush.msra.mxu3 %v3240_v6  ;;  %v3259_v21 = vld [vmem:[%s3854_s2 + $0x98] sm:$0xff] }
 0x1c2   :  { %985 = vmatpush.msrb.mxu0 %v3246_v35  ;;  %1005 = vmatpush.msrb.mxu1 %v3252_v37  ;;  %4052 = vst [vmem:[#allocation21_spill] sm:$0xff] %v3259_v21 }
 0x1c3   :  { %1025 = vmatpush.msra.mxu2 %v4024_v29  ;;  %1045 = vmatpush.msra.mxu3 %v3259_v21  ;;  %v3279_v29 = vld [vmem:[%s3854_s2 + $0x40] sm:$0xff] }
 0x1c4   :  { %986 = vmatpush.msrb.mxu0 %v3265_v41  ;;  %1006 = vmatpush.msrb.mxu1 %v3271_v44  ;;  %4055 = vst [vmem:[#allocation11_spill] sm:$0xff] %v3279_v29 }
 0x1c5   :  { %1026 = vmatpush.msra.mxu2 %v4028_v33  ;;  %1046 = vmatpush.msra.mxu3 %v4029_v34  ;;  %v3293_v33 = vld [vmem:[%s3854_s2 + $0x20] sm:$0xff]  ;;  %v3299_v34 = vld [vmem:[%s3854_s2 + $0x28] sm:$0xff] }
 0x1c6   :  { %987 = vmatpush.msrb.mxu0 %v3279_v29  ;;  %1007 = vmatpush.msrb.mxu1 %v3285_v48  ;;  %4057 = vst [vmem:[#allocation20_spill] sm:$0xff] %v3293_v33 }
 0x1c7   :  { %1027 = vmatpush.msra.mxu2 %v4032_v38  ;;  %1047 = vmatpush.msra.mxu3 %v4033_v39  ;;  %4058 = vst [vmem:[#allocation12_spill] sm:$0xff] %v3299_v34  ;;  %v3307_v38 = vld [vmem:[%s3854_s2] sm:$0xff] }
 0x1c8   :  { %988 = vmatpush.msrb.mxu0 %v3293_v33  ;;  %1008 = vmatpush.msrb.mxu1 %v3299_v34  ;;  %4059 = vst [vmem:[#allocation14_spill] sm:$0xff] %v3307_v38  ;;  %v4062_v33 = vld [vmem:[#allocation42_spill] sm:$0xff] }
 0x1c9   :  { %1028 = vmatpush.msra.mxu2 %v4036_v42  ;;  %1048 = vmatpush.msra.mxu3 %v4037_v43  ;;  %v4061_v42 = vld [vmem:[#allocation34_spill] sm:$0xff] }
 0x1ca   :  { %989 = vmatpush.msrb.mxu0 %v3307_v38  ;;  %1009 = vmatpush.msrb.mxu1 %v4039_v45 }
 0x1cb   :  { %1029 = vmatpush.msra.mxu2 %v4040_v46  ;;  %1049 = vmatpush.msra.mxu3 %v4041_v47 }
 0x227   :  { %v683_v39 = vpop.f32.mrf.mxu0  ;;  %v703_v50 = vpop.f32.mrf.mxu1 }
 0x228   :  { %v746_v52 = vadd.f32 %v683_v39, %v4060_v51  ;;  %v747_v53 = vadd.f32 %v703_v50, %v4061_v42  ;;  %v4063_v50 = vld [vmem:[#allocation41_spill] sm:$0xff] }
 0x22a   :  { %v1883_v43 = vmul.f32 -1.442695, %v746_v52  ;;  %v1884_v54 = vmul.f32 -1.442695, %v747_v53 }
 0x22c   :  { %1950 = vpow2.f32 %v1883_v43 }
 0x22d   :  { %1952 = vpow2.f32 %v1884_v54 }
 0x22e   :  { %v743_v34 = vpop.f32.mrf.mxu3  ;;  %v723_v47 = vpop.f32.mrf.mxu2 }
 0x22f   :  { %v749_v48 = vadd.f32 %v743_v34, %v4062_v33  ;;  %v748_v52 = vadd.f32 %v723_v47, %v4063_v50 }
 0x231   :  { %v1885_v38 = vmul.f32 -1.442695, %v749_v48 }
 0x232   :  { %v1951_v29 = vpop.eup %1950 }
 0x233   :  { %v1953_v45 = vpop.eup %1952  ;;  %v753_v44 = vadd.f32 1.0, %v1951_v29  ;;  %1954 = vpow2.f32 %v1885_v38 }
 0x234   :  { %v772_v46 = vadd.f32 1.0, %v1953_v45 }
 0x235   :  { %1956 = vrcp.f32 %v753_v44  ;;  %v765_v48 = vand.u32 2147483648, %v753_v44  ;;  %v763_v38 = vand.u32 2147483647, %v753_v44  ;;  %vm759_vm12 = vweird.f32 %v753_v44 }
 0x236   :  { %1958 = vrcp.f32 %v772_v46  ;;  %v784_v34 = vand.u32 2147483648, %v772_v46  ;;  %v782_v21 = vand.u32 2147483647, %v772_v46  ;;  %vm778_vm13 = vweird.f32 %v772_v46 }
 0x237   :  { %v766_v47 = vor.u32 1.1754944e-38, %v765_v48  ;;  %vm764_vm1 = vcmp.eq.f32.partialorder %v763_v38, 8.507059e+37 }
 0x238   :  { %vm783_vm2 = vcmp.eq.f32.partialorder %v782_v21, 8.507059e+37 }
 0x239   :  { %v1955_v41 = vpop.eup %1954 }
 0x23a   :  { %v792_v39 = vadd.f32 1.0, %v1955_v41 }
 0x23b   :  { %v1957_v51 = vpop.eup %1956 }
 0x23c   :  { %v1959_v42 = vpop.eup %1958  ;;  %v755_v53 = vmul.f32 %v1957_v51, %v753_v44  ;;  %1960 = vrcp.f32 %v792_v39  ;;  %vm760_vm10 = vweird.f32 %v1957_v51  ;;  %v804_v48 = vand.u32 2147483648, %v792_v39 }
 0x23d   :  { %v774_v43 = vmul.f32 %v1959_v42, %v772_v46  ;;  %1962 = vtanh.f32 %v748_v52  ;;  %vm779_vm11 = vweird.f32 %v1959_v42  ;;  %vm761_vm14 = vmor %vm759_vm12, %vm760_vm10  ;;  %vm798_vm4 = vweird.f32 %v792_v39 }
 0x23e   :  { %v756_v54 = vsub.f32 1.0, %v755_v53  ;;  %vm780_vm15 = vmor %vm778_vm13, %vm779_vm11  ;;  %v785_v53 = vor.u32 1.1754944e-38, %v784_v34  ;;  %v805_v38 = vor.u32 1.1754944e-38, %v804_v48  ;;  %v4082_v48 = vld [vmem:[#allocation20_spill] sm:$0xff] }
 0x23f   :  { %v775_v33 = vsub.f32 1.0, %v774_v43 }
 0x240   :  { %v757_v29 = vmul.f32 %v1957_v51, %v756_v54 }
 0x241   :  { %v776_v45 = vmul.f32 %v1959_v42, %v775_v33 }
 0x242   :  { %v1961_v37 = vpop.eup %1960  ;;  %v758_v41 = vadd.f32 %v1957_v51, %v757_v29 }
 0x243   :  { %v777_v50 = vadd.f32 %v1959_v42, %v776_v45  ;;  %v794_v35 = vmul.f32 %v1961_v37, %v792_v39  ;;  %v1963_v52 = vpop.eup %1962  ;;  %vm799_vm3 = vweird.f32 %v1961_v37  ;;  %v4071_v45 = vld [vmem:[#allocation9_spill] sm:$0xff] }
 0x244   :  { %v762_v43 = vsel %vm761_vm14, %v1957_v51, %v758_v41  ;;  %v802_v51 = vand.u32 2147483647, %v792_v39  ;;  %vm800_vm5 = vmor %vm798_vm4, %vm799_vm3  ;;  %v4070_v39 = vld [vmem:[#allocation8_spill] sm:$0xff]  ;;  %v3380_v41 = vld [vmem:[%s3854_s2 + $0x90] sm:$0xff] }
 0x245   :  { %v767_v6 = vsel %vm764_vm1, %v766_v47, %v762_v43  ;;  %v781_v54 = vsel %vm780_vm15, %v1959_v42, %v777_v50  ;;  %v795_v32 = vsub.f32 1.0, %v794_v35  ;;  %4072 = vst [vmem:[#allocation15_spill] sm:$0xff] %v3380_v41  ;;  %v4073_v47 = vld [vmem:[#allocation21_spill] sm:$0xff]  ;;  %v4074_v50 = vld [vmem:[#allocation16_spill] sm:$0xff] }
 0x246   :  { %v786_v33 = vsel %vm783_vm2, %v785_v53, %v781_v54  ;;  %v809_v31 = vmul.f32 %v1963_v52, %v767_v6  ;;  %vm803_vm6 = vcmp.eq.f32.partialorder %v802_v51, 8.507059e+37  ;;  %v3371_v6 = vld [vmem:[%s3854_s2 + $0xb0] sm:$0xff]  ;;  %v4075_v53 = vld [vmem:[#allocation10_spill] sm:$0xff]  ;;  %v4078_v54 = vld [vmem:[#allocation11_spill] sm:$0xff] }
 0x247   :  { %v808_v30 = vmul.f32 %v786_v33, %v2986_v40  ;;  %v796_v29 = vmul.f32 %v1961_v37, %v795_v32  ;;  %v3362_v40 = vld [vmem:[%s3854_s2 + $0xd0] sm:$0xff]  ;;  %4068 = vst [vmem:[#allocation23_spill] sm:$0xff] %v3371_v6  ;;  %v3395_v52 = vld [vmem:[%s3854_s2 + $0x78] sm:$0xff]  ;;  %v4079_v33 = vld [vmem:[#allocation24_spill] sm:$0xff] }
 0x248   :  { %4064 = vst [vmem:[#allocation26_spill] sm:$0xff] %v3362_v40  ;;  %v4067_v32 = vld [vmem:[#allocation17_spill] sm:$0xff]  ;;  %v4083_v51 = vld [vmem:[#allocation12_spill] sm:$0xff] }
 0x249   :  { %v3318_v44 = vadd.f32 %v809_v31, %v808_v30  ;;  %v797_v46 = vadd.f32 %v1961_v37, %v796_v29  ;;  %v4065_v30 = vld [vmem:[#allocation6_spill] sm:$0xff]  ;;  %v4066_v31 = vld [vmem:[#allocation7_spill] sm:$0xff]  ;;  %v3389_v43 = vld [vmem:[%s3854_s2 + $0x70] sm:$0xff]  ;;  %4077 = vst [vmem:[#allocation28_spill] sm:$0xff] %v3395_v52 }
 0x24a   :  { %4076 = vst [vmem:[#allocation18_spill] sm:$0xff] %v3389_v43  ;;  %v3403_v29 = vld [vmem:[%s3854_s2 + $0x50] sm:$0xff] }
 0x24b   :  { %1964 = vtanh.f32 %v3318_v44  ;;  %v801_v34 = vsel %vm800_vm5, %v1961_v37, %v797_v46  ;;  %v4069_v37 = vld [vmem:[#allocation13_spill] sm:$0xff]  ;;  %4080 = vst [vmem:[#allocation25_spill] sm:$0xff] %v3403_v29  ;;  %v3409_v46 = vld [vmem:[%s3854_s2 + $0x58] sm:$0xff] }
 0x24c   :  { %v806_v35 = vsel %vm803_vm6, %v805_v38, %v801_v34  ;;  %4081 = vst [vmem:[#allocation19_spill] sm:$0xff] %v3409_v46  ;;  %v3417_v34 = vld [vmem:[%s3854_s2 + $0x30] sm:$0xff]  ;;  %v3423_v38 = vld [vmem:[%s3854_s2 + $0x38] sm:$0xff] }
 0x24d   :  { %4084 = vst [vmem:[#allocation22_spill] sm:$0xff] %v3417_v34 }
 0x24e   :  { %4085 = vst [vmem:[#allocation29_spill] sm:$0xff] %v3423_v38 }
 0x251   :  { %v1965_v21 = vpop.eup %1964 }
 0x252   :  { %v812_v42 = vmul.f32 %v1965_v21, %v806_v35  ;;  %v4086_v21 = vld [vmem:[#allocation14_spill] sm:$0xff]  ;;  %v3430_v35 = vld [vmem:[%s3854_s2 + $0x8] sm:$0xff] }
 0x253   :  { %4087 = vst [vmem:[#allocation27_spill] sm:$0xff] %v3430_v35 }
 0x254   :  { %836 = vmatmul.f32.vlgmr.msra.gmra.mxu0 %v812_v42  ;;  %856 = vmatmul.f32.vlgmr.msra.gmra.mxu1 %v812_v42 }
 0x255   :  { %876 = vmatmul.f32.vlgmr.msrb.gmra.mxu2 %v812_v42  ;;  %896 = vmatmul.f32.vlgmr.msrb.gmra.mxu3 %v812_v42  ;;  %v3436_v42 = vld [vmem:[%s3854_s2 + $0x10] sm:$0xff] }
 0x256   :  { %1128 = vmatpush.msra.mxu0 %v2992_v58  ;;  %1148 = vmatpush.msra.mxu1 %v2998_v56  ;;  %4088 = vst [vmem:[#allocation5_spill] sm:$0xff] %v3436_v42 }
 0x257   :  { %1168 = vmatpush.msrb.mxu2 %v3004_v57  ;;  %1188 = vmatpush.msrb.mxu3 %v3010_v60 }
 0x258   :  { %1129 = vmatpush.msra.mxu0 %v3016_v61  ;;  %1149 = vmatpush.msra.mxu1 %v3022_v1 }
 0x259   :  { %1169 = vmatpush.msrb.mxu2 %v3028_v2  ;;  %1189 = vmatpush.msrb.mxu3 %v3034_v62 }
 0x25a   :  { %1130 = vmatpush.msra.mxu0 %v3040_v13  ;;  %1150 = vmatpush.msra.mxu1 %v3046_v14 }
 0x25b   :  { %1170 = vmatpush.msrb.mxu2 %v3052_v8  ;;  %1190 = vmatpush.msrb.mxu3 %v3058_v49 }
 0x25c   :  { %1131 = vmatpush.msra.mxu0 %v3064_v24  ;;  %1151 = vmatpush.msra.mxu1 %v3070_v25 }
 0x25d   :  { %1171 = vmatpush.msrb.mxu2 %v3076_v63  ;;  %1191 = vmatpush.msrb.mxu3 %v3082_v18 }
 0x25e   :  { %1132 = vmatpush.msra.mxu0 %v3088_v12  ;;  %1152 = vmatpush.msra.mxu1 %v3094_v22 }
 0x25f   :  { %1172 = vmatpush.msrb.mxu2 %v3100_v16  ;;  %1192 = vmatpush.msrb.mxu3 %v3106_v11 }
 0x260   :  { %1133 = vmatpush.msra.mxu0 %v3112_v36  ;;  %1153 = vmatpush.msra.mxu1 %v3118_v23 }
 0x261   :  { %1173 = vmatpush.msrb.mxu2 %v3124_v15  ;;  %1193 = vmatpush.msrb.mxu3 %v3130_v4 }
 0x262   :  { %1134 = vmatpush.msra.mxu0 %v3136_v9  ;;  %1154 = vmatpush.msra.mxu1 %v3142_v3 }
 0x263   :  { %1174 = vmatpush.msrb.mxu2 %v3148_v7  ;;  %1194 = vmatpush.msrb.mxu3 %v3154_v59 }
 0x264   :  { %1135 = vmatpush.msra.mxu0 %v3160_v55  ;;  %1155 = vmatpush.msra.mxu1 %v3166_v10 }
 0x265   :  { %1175 = vmatpush.msrb.mxu2 %v3172_v19  ;;  %1195 = vmatpush.msrb.mxu3 %v3178_v0 }
 0x266   :  { %1136 = vmatpush.msra.mxu0 %v3184_v5  ;;  %1156 = vmatpush.msra.mxu1 %v3190_v17 }
 0x267   :  { %1176 = vmatpush.msrb.mxu2 %v3196_v20  ;;  %1196 = vmatpush.msrb.mxu3 %v3202_v26 }
 0x268   :  { %1137 = vmatpush.msra.mxu0 %v3208_v27  ;;  %1157 = vmatpush.msra.mxu1 %v3214_v28 }
 0x269   :  { %1177 = vmatpush.msrb.mxu2 %v3362_v40  ;;  %1197 = vmatpush.msrb.mxu3 %v4065_v30 }
 0x26a   :  { %1138 = vmatpush.msra.mxu0 %v4066_v31  ;;  %1158 = vmatpush.msra.mxu1 %v4067_v32 }
 0x26b   :  { %1178 = vmatpush.msrb.mxu2 %v3371_v6  ;;  %1198 = vmatpush.msrb.mxu3 %v4069_v37 }
 0x26c   :  { %1139 = vmatpush.msra.mxu0 %v4070_v39  ;;  %1159 = vmatpush.msra.mxu1 %v4071_v45 }
 0x26d   :  { %1179 = vmatpush.msrb.mxu2 %v3380_v41  ;;  %1199 = vmatpush.msrb.mxu3 %v4073_v47 }
 0x26e   :  { %1140 = vmatpush.msra.mxu0 %v4074_v50  ;;  %1160 = vmatpush.msra.mxu1 %v4075_v53 }
 0x26f   :  { %1180 = vmatpush.msrb.mxu2 %v3389_v43  ;;  %1200 = vmatpush.msrb.mxu3 %v3395_v52  ;;  %v4092_v52 = vld [vmem:[#allocation46_spill] sm:$0xff] }
 0x270   :  { %1141 = vmatpush.msra.mxu0 %v4078_v54  ;;  %1161 = vmatpush.msra.mxu1 %v4079_v33 }
 0x271   :  { %1181 = vmatpush.msrb.mxu2 %v3403_v29  ;;  %1201 = vmatpush.msrb.mxu3 %v3409_v46  ;;  %v4091_v46 = vld [vmem:[#allocation36_spill] sm:$0xff] }
 0x272   :  { %1142 = vmatpush.msra.mxu0 %v4082_v48  ;;  %1162 = vmatpush.msra.mxu1 %v4083_v51  ;;  %v4090_v51 = vld [vmem:[#allocation35_spill] sm:$0xff] }
 0x273   :  { %1182 = vmatpush.msrb.mxu2 %v3417_v34  ;;  %1202 = vmatpush.msrb.mxu3 %v3423_v38  ;;  %v3442_v38 = vld [vmem:[%s3854_s2 + $0x18] sm:$0xff] }
 0x274   :  { %1143 = vmatpush.msra.mxu0 %v4086_v21  ;;  %1163 = vmatpush.msra.mxu1 %v3430_v35  ;;  %4089 = vst [vmem:[#allocation30_spill] sm:$0xff] %v3442_v38 }
 0x275   :  { %1183 = vmatpush.msrb.mxu2 %v3436_v42  ;;  %1203 = vmatpush.msrb.mxu3 %v3442_v38 }
 0x2d1   :  { %v837_v21 = vpop.f32.mrf.mxu0  ;;  %v857_v34 = vpop.f32.mrf.mxu1 }
 0x2d2   :  { %v900_v48 = vadd.f32 %v837_v21, %v4090_v51  ;;  %v901_v35 = vadd.f32 %v857_v34, %v4091_v46  ;;  %v4093_v46 = vld [vmem:[#allocation45_spill] sm:$0xff] }
 0x2d4   :  { %v1886_v29 = vmul.f32 -1.442695, %v900_v48  ;;  %v1887_v33 = vmul.f32 -1.442695, %v901_v35 }
 0x2d6   :  { %1966 = vpow2.f32 %v1886_v29 }
 0x2d7   :  { %1968 = vpow2.f32 %v1887_v33 }
 0x2d8   :  { %v897_v54 = vpop.f32.mrf.mxu3  ;;  %v877_v38 = vpop.f32.mrf.mxu2 }
 0x2d9   :  { %v903_v42 = vadd.f32 %v897_v54, %v4092_v52  ;;  %v902_v48 = vadd.f32 %v877_v38, %v4093_v46 }
 0x2db   :  { %v1888_v43 = vmul.f32 -1.442695, %v903_v42 }
 0x2dc   :  { %v1967_v53 = vpop.eup %1966 }
 0x2dd   :  { %v1969_v50 = vpop.eup %1968  ;;  %v907_v47 = vadd.f32 1.0, %v1967_v53  ;;  %1970 = vpow2.f32 %v1888_v43 }
 0x2de   :  { %v926_v41 = vadd.f32 1.0, %v1969_v50 }
 0x2df   :  { %1972 = vrcp.f32 %v907_v47  ;;  %v919_v54 = vand.u32 2147483648, %v907_v47  ;;  %v917_v50 = vand.u32 2147483647, %v907_v47  ;;  %vm913_vm9 = vweird.f32 %v907_v47 }
 0x2e0   :  { %1974 = vrcp.f32 %v926_v41  ;;  %v938_v42 = vand.u32 2147483648, %v926_v41  ;;  %v936_v39 = vand.u32 2147483647, %v926_v41  ;;  %vm932_vm10 = vweird.f32 %v926_v41 }
 0x2e1   :  { %v920_v38 = vor.u32 1.1754944e-38, %v919_v54  ;;  %vm918_vm13 = vcmp.eq.f32.partialorder %v917_v50, 8.507059e+37 }
 0x2e2   :  { %vm937_vm14 = vcmp.eq.f32.partialorder %v936_v39, 8.507059e+37 }
 0x2e3   :  { %v1971_v45 = vpop.eup %1970 }
 0x2e4   :  { %v946_v51 = vadd.f32 1.0, %v1971_v45 }
 0x2e5   :  { %v1973_v21 = vpop.eup %1972 }
 0x2e6   :  { %v1975_v34 = vpop.eup %1974  ;;  %v909_v29 = vmul.f32 %v1973_v21, %v907_v47  ;;  %1976 = vrcp.f32 %v946_v51  ;;  %vm914_vm7 = vweird.f32 %v1973_v21  ;;  %v958_v54 = vand.u32 2147483648, %v946_v51 }
 0x2e7   :  { %v928_v33 = vmul.f32 %v1975_v34, %v926_v41  ;;  %1978 = vtanh.f32 %v902_v48  ;;  %vm933_vm8 = vweird.f32 %v1975_v34  ;;  %vm915_vm11 = vmor %vm913_vm9, %vm914_vm7  ;;  %vm952_vm1 = vweird.f32 %v946_v51 }
 0x2e8   :  { %v910_v35 = vsub.f32 1.0, %v909_v29  ;;  %vm934_vm12 = vmor %vm932_vm10, %vm933_vm8  ;;  %v939_v29 = vor.u32 1.1754944e-38, %v938_v42  ;;  %v959_v50 = vor.u32 1.1754944e-38, %v958_v54  ;;  %v4112_v54 = vld [vmem:[#allocation20_spill] sm:$0xff] }
 0x2e9   :  { %v929_v52 = vsub.f32 1.0, %v928_v33 }
 0x2ea   :  { %v911_v53 = vmul.f32 %v1973_v21, %v910_v35 }
 0x2eb   :  { %v930_v43 = vmul.f32 %v1975_v34, %v929_v52 }
 0x2ec   :  { %v1977_v37 = vpop.eup %1976  ;;  %v912_v45 = vadd.f32 %v1973_v21, %v911_v53 }
 0x2ed   :  { %v931_v46 = vadd.f32 %v1975_v34, %v930_v43  ;;  %v948_v6 = vmul.f32 %v1977_v37, %v946_v51  ;;  %v1979_v48 = vpop.eup %1978  ;;  %vm953_vm15 = vweird.f32 %v1977_v37  ;;  %v4101_v43 = vld [vmem:[#allocation9_spill] sm:$0xff] }
 0x2ee   :  { %v916_v33 = vsel %vm915_vm11, %v1973_v21, %v912_v45  ;;  %v956_v21 = vand.u32 2147483647, %v946_v51  ;;  %vm954_vm2 = vmor %vm952_vm1, %vm953_vm15  ;;  %v4100_v51 = vld [vmem:[#allocation8_spill] sm:$0xff]  ;;  %v4102_v45 = vld [vmem:[#allocation15_spill] sm:$0xff] }
 0x2ef   :  { %v921_v32 = vsel %vm918_vm13, %v920_v38, %v916_v33  ;;  %v935_v35 = vsel %vm934_vm12, %v1975_v34, %v931_v46  ;;  %v949_v31 = vsub.f32 1.0, %v948_v6  ;;  %v4103_v38 = vld [vmem:[#allocation21_spill] sm:$0xff]  ;;  %v4104_v46 = vld [vmem:[#allocation16_spill] sm:$0xff]  ;;  %v4106_v33 = vld [vmem:[#allocation18_spill] sm:$0xff] }
 0x2f0   :  { %v940_v52 = vsel %vm937_vm14, %v939_v29, %v935_v35  ;;  %v963_v30 = vmul.f32 %v1979_v48, %v921_v32  ;;  %vm957_vm3 = vcmp.eq.f32.partialorder %v956_v21, 8.507059e+37  ;;  %v4098_v32 = vld [vmem:[#allocation23_spill] sm:$0xff]  ;;  %v4105_v29 = vld [vmem:[#allocation10_spill] sm:$0xff]  ;;  %v4107_v48 = vld [vmem:[#allocation28_spill] sm:$0xff] }
 0x2f1   :  { %v962_v40 = vmul.f32 %v940_v52, %v3318_v44  ;;  %v950_v53 = vmul.f32 %v1977_v37, %v949_v31  ;;  %v4094_v44 = vld [vmem:[#allocation26_spill] sm:$0xff]  ;;  %v4097_v31 = vld [vmem:[#allocation17_spill] sm:$0xff]  ;;  %v4108_v35 = vld [vmem:[#allocation11_spill] sm:$0xff] }
 0x2f2   :  { %v4109_v52 = vld [vmem:[#allocation24_spill] sm:$0xff] }
 0x2f3   :  { %v3450_v47 = vadd.f32 %v963_v30, %v962_v40  ;;  %v951_v41 = vadd.f32 %v1977_v37, %v950_v53  ;;  %v4095_v40 = vld [vmem:[#allocation6_spill] sm:$0xff]  ;;  %v4096_v30 = vld [vmem:[#allocation7_spill] sm:$0xff]  ;;  %v4110_v53 = vld [vmem:[#allocation25_spill] sm:$0xff] }
 0x2f4   :  { %v4113_v21 = vld [vmem:[#allocation12_spill] sm:$0xff] }
 0x2f5   :  { %1980 = vtanh.f32 %v3450_v47  ;;  %v955_v42 = vsel %vm954_vm2, %v1977_v37, %v951_v41  ;;  %v4099_v37 = vld [vmem:[#allocation13_spill] sm:$0xff]  ;;  %v4111_v41 = vld [vmem:[#allocation19_spill] sm:$0xff] }
 0x2f6   :  { %v960_v6 = vsel %vm957_vm3, %v959_v50, %v955_v42  ;;  %v4114_v42 = vld [vmem:[#allocation22_spill] sm:$0xff]  ;;  %v4115_v50 = vld [vmem:[#allocation29_spill] sm:$0xff] }
 0x2fb   :  { %v1981_v39 = vpop.eup %1980 }
 0x2fc   :  { %v966_v34 = vmul.f32 %v1981_v39, %v960_v6  ;;  %v4116_v39 = vld [vmem:[#allocation14_spill] sm:$0xff]  ;;  %v4117_v6 = vld [vmem:[#allocation27_spill] sm:$0xff] }
 0x2fe   :  { %990 = vmatmul.f32.vlgmr.msrb.gmra.mxu0 %v966_v34  ;;  %1010 = vmatmul.f32.vlgmr.msrb.gmra.mxu1 %v966_v34 }
 0x2ff   :  { %1030 = vmatmul.f32.vlgmr.msra.gmra.mxu2 %v966_v34  ;;  %1050 = vmatmul.f32.vlgmr.msra.gmra.mxu3 %v966_v34  ;;  %v4118_v34 = vld [vmem:[#allocation5_spill] sm:$0xff] }
 0x300   :  { %1282 = vmatpush.msrb.mxu0 %v2992_v58  ;;  %1302 = vmatpush.msrb.mxu1 %v2998_v56 }
 0x301   :  { %1322 = vmatpush.msra.mxu2 %v3004_v57  ;;  %1342 = vmatpush.msra.mxu3 %v3010_v60 }
 0x302   :  { %1283 = vmatpush.msrb.mxu0 %v3016_v61  ;;  %1303 = vmatpush.msrb.mxu1 %v3022_v1 }
 0x303   :  { %1323 = vmatpush.msra.mxu2 %v3028_v2  ;;  %1343 = vmatpush.msra.mxu3 %v3034_v62 }
 0x304   :  { %1284 = vmatpush.msrb.mxu0 %v3040_v13  ;;  %1304 = vmatpush.msrb.mxu1 %v3046_v14 }
 0x305   :  { %1324 = vmatpush.msra.mxu2 %v3052_v8  ;;  %1344 = vmatpush.msra.mxu3 %v3058_v49 }
 0x306   :  { %1285 = vmatpush.msrb.mxu0 %v3064_v24  ;;  %1305 = vmatpush.msrb.mxu1 %v3070_v25 }
 0x307   :  { %1325 = vmatpush.msra.mxu2 %v3076_v63  ;;  %1345 = vmatpush.msra.mxu3 %v3082_v18 }
 0x308   :  { %1286 = vmatpush.msrb.mxu0 %v3088_v12  ;;  %1306 = vmatpush.msrb.mxu1 %v3094_v22 }
 0x309   :  { %1326 = vmatpush.msra.mxu2 %v3100_v16  ;;  %1346 = vmatpush.msra.mxu3 %v3106_v11 }
 0x30a   :  { %1287 = vmatpush.msrb.mxu0 %v3112_v36  ;;  %1307 = vmatpush.msrb.mxu1 %v3118_v23 }
 0x30b   :  { %1327 = vmatpush.msra.mxu2 %v3124_v15  ;;  %1347 = vmatpush.msra.mxu3 %v3130_v4 }
 0x30c   :  { %1288 = vmatpush.msrb.mxu0 %v3136_v9  ;;  %1308 = vmatpush.msrb.mxu1 %v3142_v3 }
 0x30d   :  { %1328 = vmatpush.msra.mxu2 %v3148_v7  ;;  %1348 = vmatpush.msra.mxu3 %v3154_v59 }
 0x30e   :  { %1289 = vmatpush.msrb.mxu0 %v3160_v55  ;;  %1309 = vmatpush.msrb.mxu1 %v3166_v10 }
 0x30f   :  { %1329 = vmatpush.msra.mxu2 %v3172_v19  ;;  %1349 = vmatpush.msra.mxu3 %v3178_v0 }
 0x310   :  { %1290 = vmatpush.msrb.mxu0 %v3184_v5  ;;  %1310 = vmatpush.msrb.mxu1 %v3190_v17 }
 0x311   :  { %1330 = vmatpush.msra.mxu2 %v3196_v20  ;;  %1350 = vmatpush.msra.mxu3 %v3202_v26 }
 0x312   :  { %1291 = vmatpush.msrb.mxu0 %v3208_v27  ;;  %1311 = vmatpush.msrb.mxu1 %v3214_v28 }
 0x313   :  { %1331 = vmatpush.msra.mxu2 %v4094_v44  ;;  %1351 = vmatpush.msra.mxu3 %v4095_v40 }
 0x314   :  { %1292 = vmatpush.msrb.mxu0 %v4096_v30  ;;  %1312 = vmatpush.msrb.mxu1 %v4097_v31 }
 0x315   :  { %1332 = vmatpush.msra.mxu2 %v4098_v32  ;;  %1352 = vmatpush.msra.mxu3 %v4099_v37 }
 0x316   :  { %1293 = vmatpush.msrb.mxu0 %v4100_v51  ;;  %1313 = vmatpush.msrb.mxu1 %v4101_v43 }
 0x317   :  { %1333 = vmatpush.msra.mxu2 %v4102_v45  ;;  %1353 = vmatpush.msra.mxu3 %v4103_v38 }
 0x318   :  { %1294 = vmatpush.msrb.mxu0 %v4104_v46  ;;  %1314 = vmatpush.msrb.mxu1 %v4105_v29 }
 0x319   :  { %1334 = vmatpush.msra.mxu2 %v4106_v33  ;;  %1354 = vmatpush.msra.mxu3 %v4107_v48  ;;  %v4120_v48 = vld [vmem:[#allocation39_spill] sm:$0xff]  ;;  %v4121_v33 = vld [vmem:[#allocation40_spill] sm:$0xff] }
 0x31a   :  { %1295 = vmatpush.msrb.mxu0 %v4108_v35  ;;  %1315 = vmatpush.msrb.mxu1 %v4109_v52  ;;  %v4119_v35 = vld [vmem:[#allocation30_spill] sm:$0xff] }
 0x31b   :  { %1335 = vmatpush.msra.mxu2 %v4110_v53  ;;  %1355 = vmatpush.msra.mxu3 %v4111_v41 }
 0x31c   :  { %1296 = vmatpush.msrb.mxu0 %v4112_v54  ;;  %1316 = vmatpush.msrb.mxu1 %v4113_v21 }
 0x31d   :  { %1336 = vmatpush.msra.mxu2 %v4114_v42  ;;  %1356 = vmatpush.msra.mxu3 %v4115_v50  ;;  %v4122_v50 = vld [vmem:[#allocation48_spill] sm:$0xff] }
 0x31e   :  { %1297 = vmatpush.msrb.mxu0 %v4116_v39  ;;  %1317 = vmatpush.msrb.mxu1 %v4117_v6 }
 0x31f   :  { %1337 = vmatpush.msra.mxu2 %v4118_v34  ;;  %1357 = vmatpush.msra.mxu3 %v4119_v35 }
 0x37b   :  { %v991_v52 = vpop.f32.mrf.mxu0  ;;  %v1011_v53 = vpop.f32.mrf.mxu1 }
 0x37c   :  { %v1054_v41 = vadd.f32 %v991_v52, %v4120_v48  ;;  %v1055_v54 = vadd.f32 %v1011_v53, %v4121_v33  ;;  %v4123_v33 = vld [vmem:[#allocation47_spill] sm:$0xff] }
 0x37e   :  { %v1889_v29 = vmul.f32 -1.442695, %v1054_v41  ;;  %v1890_v21 = vmul.f32 -1.442695, %v1055_v54 }
 0x380   :  { %1982 = vpow2.f32 %v1889_v29 }
 0x381   :  { %1984 = vpow2.f32 %v1890_v21 }
 0x382   :  { %v1051_v42 = vpop.f32.mrf.mxu3  ;;  %v1031_v35 = vpop.f32.mrf.mxu2 }
 0x383   :  { %v1057_v46 = vadd.f32 %v1051_v42, %v4122_v50  ;;  %v1056_v53 = vadd.f32 %v1031_v35, %v4123_v33 }
 0x385   :  { %v1891_v39 = vmul.f32 -1.442695, %v1057_v46 }
 0x386   :  { %v1983_v38 = vpop.eup %1982 }
 0x387   :  { %v1985_v6 = vpop.eup %1984  ;;  %v1061_v45 = vadd.f32 1.0, %v1983_v38  ;;  %1986 = vpow2.f32 %v1891_v39 }
 0x388   :  { %v1080_v34 = vadd.f32 1.0, %v1985_v6 }
 0x389   :  { %1988 = vrcp.f32 %v1061_v45  ;;  %v1073_v46 = vand.u32 2147483648, %v1061_v45  ;;  %v1071_v39 = vand.u32 2147483647, %v1061_v45  ;;  %vm1067_vm6 = vweird.f32 %v1061_v45 }
 0x38a   :  { %1990 = vrcp.f32 %v1080_v34  ;;  %v1092_v50 = vand.u32 2147483648, %v1080_v34  ;;  %v1090_v51 = vand.u32 2147483647, %v1080_v34  ;;  %vm1086_vm7 = vweird.f32 %v1080_v34 }
 0x38b   :  { %v1074_v35 = vor.u32 1.1754944e-38, %v1073_v46  ;;  %vm1072_vm10 = vcmp.eq.f32.partialorder %v1071_v39, 8.507059e+37 }
 0x38c   :  { %vm1091_vm11 = vcmp.eq.f32.partialorder %v1090_v51, 8.507059e+37 }
 0x38d   :  { %v1987_v43 = vpop.eup %1986 }
 0x38e   :  { %v1100_v48 = vadd.f32 1.0, %v1987_v43 }
 0x38f   :  { %v1989_v52 = vpop.eup %1988 }
 0x390   :  { %v1991_v41 = vpop.eup %1990  ;;  %v1063_v29 = vmul.f32 %v1989_v52, %v1061_v45  ;;  %1992 = vrcp.f32 %v1100_v48  ;;  %vm1068_vm4 = vweird.f32 %v1989_v52  ;;  %v1112_v46 = vand.u32 2147483648, %v1100_v48 }
 0x391   :  { %v1082_v54 = vmul.f32 %v1991_v41, %v1080_v34  ;;  %1994 = vtanh.f32 %v1056_v53  ;;  %vm1087_vm5 = vweird.f32 %v1991_v41  ;;  %vm1069_vm8 = vmor %vm1067_vm6, %vm1068_vm4  ;;  %vm1106_vm13 = vweird.f32 %v1100_v48 }
 0x392   :  { %v1064_v21 = vsub.f32 1.0, %v1063_v29  ;;  %vm1088_vm9 = vmor %vm1086_vm7, %vm1087_vm5  ;;  %v1093_v29 = vor.u32 1.1754944e-38, %v1092_v50  ;;  %v1113_v39 = vor.u32 1.1754944e-38, %v1112_v46 }
 0x393   :  { %v1083_v42 = vsub.f32 1.0, %v1082_v54 }
 0x394   :  { %v1065_v38 = vmul.f32 %v1989_v52, %v1064_v21 }
 0x395   :  { %v1084_v6 = vmul.f32 %v1991_v41, %v1083_v42 }
 0x396   :  { %v1993_v37 = vpop.eup %1992  ;;  %v1066_v43 = vadd.f32 %v1989_v52, %v1065_v38 }
 0x397   :  { %v1085_v33 = vadd.f32 %v1991_v41, %v1084_v6  ;;  %v1102_v32 = vmul.f32 %v1993_v37, %v1100_v48  ;;  %v1995_v53 = vpop.eup %1994  ;;  %vm1107_vm12 = vweird.f32 %v1993_v37 }
 0x398   :  { %v1070_v54 = vsel %vm1069_vm8, %v1989_v52, %v1066_v43  ;;  %v1110_v52 = vand.u32 2147483647, %v1100_v48  ;;  %vm1108_vm14 = vmor %vm1106_vm13, %vm1107_vm12  ;;  %v4153_v43 = vld [vmem:[#allocation49_spill] sm:$0xff] }
 0x399   :  { %v1075_v31 = vsel %vm1072_vm10, %v1074_v35, %v1070_v54  ;;  %v1089_v21 = vsel %vm1088_vm9, %v1991_v41, %v1085_v33  ;;  %v1103_v30 = vsub.f32 1.0, %v1102_v32 }
 0x39a   :  { %v1094_v42 = vsel %vm1091_vm11, %v1093_v29, %v1089_v21  ;;  %v1117_v40 = vmul.f32 %v1995_v53, %v1075_v31  ;;  %vm1111_vm15 = vcmp.eq.f32.partialorder %v1110_v52, 8.507059e+37 }
 0x39b   :  { %v1116_v44 = vmul.f32 %v1094_v42, %v3450_v47  ;;  %v1104_v38 = vmul.f32 %v1993_v37, %v1103_v30 }
 0x39d   :  { %v3522_v45 = vadd.f32 %v1117_v40, %v1116_v44  ;;  %v1105_v34 = vadd.f32 %v1993_v37, %v1104_v38 }
 0x39f   :  { %1996 = vtanh.f32 %v3522_v45  ;;  %v1109_v50 = vsel %vm1108_vm14, %v1993_v37, %v1105_v34 }
 0x3a0   :  { %v1114_v32 = vsel %vm1111_vm15, %v1113_v39, %v1109_v50 }
 0x3a5   :  { %v1997_v51 = vpop.eup %1996 }
 0x3a6   :  { %v1120_v41 = vmul.f32 %v1997_v51, %v1114_v32 }
 0x3a8   :  { %1144 = vmatmul.f32.vlgmr.msra.gmra.mxu0 %v1120_v41  ;;  %1164 = vmatmul.f32.vlgmr.msra.gmra.mxu1 %v1120_v41 }
 0x3a9   :  { %1184 = vmatmul.f32.vlgmr.msrb.gmra.mxu2 %v1120_v41  ;;  %1204 = vmatmul.f32.vlgmr.msrb.gmra.mxu3 %v1120_v41 }
 0x3aa   :  { %1436 = vmatpush.msra.mxu0 %v2992_v58  ;;  %1456 = vmatpush.msra.mxu1 %v2998_v56  ;;  %v4124_v58 = vld [vmem:[#allocation26_spill] sm:$0xff] }
 0x3ab   :  { %1476 = vmatpush.msrb.mxu2 %v3004_v57  ;;  %1496 = vmatpush.msrb.mxu3 %v3010_v60  ;;  %v4125_v56 = vld [vmem:[#allocation6_spill] sm:$0xff]  ;;  %v4126_v57 = vld [vmem:[#allocation7_spill] sm:$0xff]  ;;  %v4127_v60 = vld [vmem:[#allocation17_spill] sm:$0xff] }
 0x3ac   :  { %1437 = vmatpush.msra.mxu0 %v3016_v61  ;;  %1457 = vmatpush.msra.mxu1 %v3022_v1  ;;  %v4128_v61 = vld [vmem:[#allocation23_spill] sm:$0xff]  ;;  %v4129_v1 = vld [vmem:[#allocation13_spill] sm:$0xff] }
 0x3ad   :  { %1477 = vmatpush.msrb.mxu2 %v3028_v2  ;;  %1497 = vmatpush.msrb.mxu3 %v3034_v62  ;;  %v4130_v2 = vld [vmem:[#allocation8_spill] sm:$0xff]  ;;  %v4131_v62 = vld [vmem:[#allocation9_spill] sm:$0xff] }
 0x3ae   :  { %1438 = vmatpush.msra.mxu0 %v3040_v13  ;;  %1458 = vmatpush.msra.mxu1 %v3046_v14  ;;  %v4132_v13 = vld [vmem:[#allocation15_spill] sm:$0xff]  ;;  %v4133_v14 = vld [vmem:[#allocation21_spill] sm:$0xff] }
 0x3af   :  { %1478 = vmatpush.msrb.mxu2 %v3052_v8  ;;  %1498 = vmatpush.msrb.mxu3 %v3058_v49  ;;  %v4134_v8 = vld [vmem:[#allocation16_spill] sm:$0xff]  ;;  %v4135_v49 = vld [vmem:[#allocation10_spill] sm:$0xff] }
 0x3b0   :  { %1439 = vmatpush.msra.mxu0 %v3064_v24  ;;  %1459 = vmatpush.msra.mxu1 %v3070_v25  ;;  %v4136_v24 = vld [vmem:[#allocation18_spill] sm:$0xff]  ;;  %v4137_v25 = vld [vmem:[#allocation28_spill] sm:$0xff] }
 0x3b1   :  { %1479 = vmatpush.msrb.mxu2 %v3076_v63  ;;  %1499 = vmatpush.msrb.mxu3 %v3082_v18  ;;  %v4138_v63 = vld [vmem:[#allocation11_spill] sm:$0xff]  ;;  %v4139_v18 = vld [vmem:[#allocation24_spill] sm:$0xff] }
 0x3b2   :  { %1440 = vmatpush.msra.mxu0 %v3088_v12  ;;  %1460 = vmatpush.msra.mxu1 %v3094_v22  ;;  %v4140_v12 = vld [vmem:[#allocation25_spill] sm:$0xff]  ;;  %v4141_v22 = vld [vmem:[#allocation19_spill] sm:$0xff] }
 0x3b3   :  { %1480 = vmatpush.msrb.mxu2 %v3100_v16  ;;  %1500 = vmatpush.msrb.mxu3 %v3106_v11  ;;  %v4142_v16 = vld [vmem:[#allocation20_spill] sm:$0xff] }
 0x3b4   :  { %1441 = vmatpush.msra.mxu0 %v3112_v36  ;;  %1461 = vmatpush.msra.mxu1 %v3118_v23  ;;  %v4143_v11 = vld [vmem:[#allocation12_spill] sm:$0xff]  ;;  %v4144_v36 = vld [vmem:[#allocation22_spill] sm:$0xff]  ;;  %v4145_v23 = vld [vmem:[#allocation29_spill] sm:$0xff] }
 0x3b5   :  { %1481 = vmatpush.msrb.mxu2 %v3124_v15  ;;  %1501 = vmatpush.msrb.mxu3 %v3130_v4  ;;  %v4146_v15 = vld [vmem:[#allocation14_spill] sm:$0xff]  ;;  %v4147_v4 = vld [vmem:[#allocation27_spill] sm:$0xff] }
 0x3b6   :  { %1442 = vmatpush.msra.mxu0 %v3136_v9  ;;  %1462 = vmatpush.msra.mxu1 %v3142_v3  ;;  %v4148_v9 = vld [vmem:[#allocation5_spill] sm:$0xff]  ;;  %v4149_v3 = vld [vmem:[#allocation30_spill] sm:$0xff] }
 0x3b7   :  { %1482 = vmatpush.msrb.mxu2 %v3148_v7  ;;  %1502 = vmatpush.msrb.mxu3 %v3154_v59 }
 0x3b8   :  { %1443 = vmatpush.msra.mxu0 %v3160_v55  ;;  %1463 = vmatpush.msra.mxu1 %v3166_v10  ;;  %v4150_v55 = vld [vmem:[#allocation43_spill] sm:$0xff] }
 0x3b9   :  { %1483 = vmatpush.msrb.mxu2 %v3172_v19  ;;  %1503 = vmatpush.msrb.mxu3 %v3178_v0  ;;  %v4151_v19 = vld [vmem:[#allocation44_spill] sm:$0xff] }
 0x3ba   :  { %1444 = vmatpush.msra.mxu0 %v3184_v5  ;;  %1464 = vmatpush.msra.mxu1 %v3190_v17 }
 0x3bb   :  { %1484 = vmatpush.msrb.mxu2 %v3196_v20  ;;  %1504 = vmatpush.msrb.mxu3 %v3202_v26  ;;  %v4152_v26 = vld [vmem:[#allocation50_spill] sm:$0xff] }
 0x3bc   :  { %1445 = vmatpush.msra.mxu0 %v3208_v27  ;;  %1465 = vmatpush.msra.mxu1 %v3214_v28 }
 0x3bd   :  { %1485 = vmatpush.msrb.mxu2 %v4124_v58  ;;  %1505 = vmatpush.msrb.mxu3 %v4125_v56 }
 0x3be   :  { %1446 = vmatpush.msra.mxu0 %v4126_v57  ;;  %1466 = vmatpush.msra.mxu1 %v4127_v60 }
 0x3bf   :  { %1486 = vmatpush.msrb.mxu2 %v4128_v61  ;;  %1506 = vmatpush.msrb.mxu3 %v4129_v1 }
 0x3c0   :  { %1447 = vmatpush.msra.mxu0 %v4130_v2  ;;  %1467 = vmatpush.msra.mxu1 %v4131_v62 }
 0x3c1   :  { %1487 = vmatpush.msrb.mxu2 %v4132_v13  ;;  %1507 = vmatpush.msrb.mxu3 %v4133_v14 }
 0x3c2   :  { %1448 = vmatpush.msra.mxu0 %v4134_v8  ;;  %1468 = vmatpush.msra.mxu1 %v4135_v49 }
 0x3c3   :  { %1488 = vmatpush.msrb.mxu2 %v4136_v24  ;;  %1508 = vmatpush.msrb.mxu3 %v4137_v25 }
 0x3c4   :  { %1449 = vmatpush.msra.mxu0 %v4138_v63  ;;  %1469 = vmatpush.msra.mxu1 %v4139_v18 }
 0x3c5   :  { %1489 = vmatpush.msrb.mxu2 %v4140_v12  ;;  %1509 = vmatpush.msrb.mxu3 %v4141_v22 }
 0x3c6   :  { %1450 = vmatpush.msra.mxu0 %v4142_v16  ;;  %1470 = vmatpush.msra.mxu1 %v4143_v11 }
 0x3c7   :  { %1490 = vmatpush.msrb.mxu2 %v4144_v36  ;;  %1510 = vmatpush.msrb.mxu3 %v4145_v23  ;;  %v4154_v23 = vld [vmem:[#allocation3_spill] sm:$0xff] }
 0x3c8   :  { %1451 = vmatpush.msra.mxu0 %v4146_v15  ;;  %1471 = vmatpush.msra.mxu1 %v4147_v4  ;;  %v4155_v4 = vld [vmem:[#allocation4_spill] sm:$0xff] }
 0x3c9   :  { %1491 = vmatpush.msrb.mxu2 %v4148_v9  ;;  %1511 = vmatpush.msrb.mxu3 %v4149_v3 }
 0x425   :  { %v1145_v7 = vpop.f32.mrf.mxu0  ;;  %v1165_v59 = vpop.f32.mrf.mxu1 }
 0x426   :  { %v1208_v10 = vadd.f32 %v1145_v7, %v4150_v55  ;;  %v1209_v0 = vadd.f32 %v1165_v59, %v4151_v19  ;;  %v4156_v55 = vld [vmem:[#allocation52_spill] sm:$0xff] }
 0x428   :  { %v1892_v5 = vmul.f32 -1.442695, %v1208_v10  ;;  %v1893_v17 = vmul.f32 -1.442695, %v1209_v0 }
 0x42a   :  { %1998 = vpow2.f32 %v1892_v5 }
 0x42b   :  { %2000 = vpow2.f32 %v1893_v17 }
 0x42c   :  { %v1205_v20 = vpop.f32.mrf.mxu3  ;;  %v1185_v31 = vpop.f32.mrf.mxu2 }
 0x42d   :  { %v1211_v27 = vadd.f32 %v1205_v20, %v4152_v26  ;;  %v1210_v35 = vadd.f32 %v1185_v31, %v4153_v43  ;;  %v1596_v26 = vld [vmem:[%s3856_s4 + $0x60] sm:$0xff]  ;;  %v1589_v31 = vld [vmem:[%s3856_s4 + $0x28] sm:$0xff] }
 0x42e   :  { %v1584_v43 = vld [vmem:[%s3856_s4] sm:$0xff] }
 0x42f   :  { %v1894_v28 = vmul.f32 -1.442695, %v1211_v27  ;;  %v1597_v27 = vld [vmem:[%s3856_s4 + $0x68] sm:$0xff] }
 0x430   :  { %v1999_v47 = vpop.eup %1998 }
 0x431   :  { %v2001_v44 = vpop.eup %2000  ;;  %v1215_v40 = vadd.f32 1.0, %v1999_v47  ;;  %2002 = vpow2.f32 %v1894_v28  ;;  %v1599_v28 = vld [vmem:[%s3856_s4 + $0x78] sm:$0xff]  ;;  %v1592_v47 = vld [vmem:[%s3856_s4 + $0x40] sm:$0xff] }
 0x432   :  { %v1234_v30 = vadd.f32 1.0, %v2001_v44  ;;  %v1593_v44 = vld [vmem:[%s3856_s4 + $0x48] sm:$0xff] }
 0x433   :  { %2004 = vrcp.f32 %v1215_v40  ;;  %v1227_v42 = vand.u32 2147483648, %v1215_v40  ;;  %v1225_v46 = vand.u32 2147483647, %v1215_v40  ;;  %vm1221_vm3 = vweird.f32 %v1215_v40 }
 0x434   :  { %2006 = vrcp.f32 %v1234_v30  ;;  %v1246_v38 = vand.u32 2147483648, %v1234_v30  ;;  %v1244_v50 = vand.u32 2147483647, %v1234_v30  ;;  %vm1240_vm4 = vweird.f32 %v1234_v30 }
 0x435   :  { %v1228_v32 = vor.u32 1.1754944e-38, %v1227_v42  ;;  %vm1226_vm7 = vcmp.eq.f32.partialorder %v1225_v46, 8.507059e+37  ;;  %v1598_v46 = vld [vmem:[%s3856_s4 + $0x70] sm:$0xff] }
 0x436   :  { %v1247_v56 = vor.u32 1.1754944e-38, %v1246_v38  ;;  %vm1245_vm8 = vcmp.eq.f32.partialorder %v1244_v50, 8.507059e+37 }
 0x437   :  { %v2003_v37 = vpop.eup %2002 }
 0x438   :  { %v1254_v48 = vadd.f32 1.0, %v2003_v37 }
 0x439   :  { %v2005_v6 = vpop.eup %2004 }
 0x43a   :  { %v2007_v33 = vpop.eup %2006  ;;  %v1217_v29 = vmul.f32 %v2005_v6, %v1215_v40  ;;  %2008 = vrcp.f32 %v1254_v48  ;;  %vm1222_vm1 = vweird.f32 %v2005_v6  ;;  %v1266_v25 = vand.u32 2147483648, %v1254_v48  ;;  %v1595_v40 = vld [vmem:[%s3856_s4 + $0x58] sm:$0xff] }
 0x43b   :  { %v1236_v54 = vmul.f32 %v2007_v33, %v1234_v30  ;;  %2010 = vtanh.f32 %v1210_v35  ;;  %vm1241_vm2 = vweird.f32 %v2007_v33  ;;  %vm1223_vm5 = vmor %vm1221_vm3, %vm1222_vm1  ;;  %vm1260_vm10 = vweird.f32 %v1254_v48  ;;  %v1588_v30 = vld [vmem:[%s3856_s4 + $0x20] sm:$0xff]  ;;  %v1585_v35 = vld [vmem:[%s3856_s4 + $0x8] sm:$0xff] }
 0x43c   :  { %v1218_v53 = vsub.f32 1.0, %v1217_v29  ;;  %vm1242_vm6 = vmor %vm1240_vm4, %vm1241_vm2  ;;  %v1264_v63 = vand.u32 2147483647, %v1254_v48  ;;  %v1267_v12 = vor.u32 1.1754944e-38, %v1266_v25  ;;  %v1587_v29 = vld [vmem:[%s3856_s4 + $0x18] sm:$0xff] }
 0x43d   :  { %v1237_v21 = vsub.f32 1.0, %v1236_v54 }
 0x43e   :  { %v1219_v34 = vmul.f32 %v2005_v6, %v1218_v53  ;;  %vm1265_vm12 = vcmp.eq.f32.partialorder %v1264_v63, 8.507059e+37  ;;  %v4157_v53 = vld [vmem:[#allocation51_spill] sm:$0xff] }
 0x43f   :  { %v1238_v52 = vmul.f32 %v2007_v33, %v1237_v21 }
 0x440   :  { %v2009_v39 = vpop.eup %2008  ;;  %v1220_v51 = vadd.f32 %v2005_v6, %v1219_v34 }
 0x441   :  { %v1239_v41 = vadd.f32 %v2007_v33, %v1238_v52  ;;  %v1256_v58 = vmul.f32 %v2009_v39, %v1254_v48  ;;  %v2011_v60 = vpop.eup %2010  ;;  %vm1261_vm9 = vweird.f32 %v2009_v39  ;;  %v1591_v48 = vld [vmem:[%s3856_s4 + $0x38] sm:$0xff]  ;;  %v1594_v52 = vld [vmem:[%s3856_s4 + $0x50] sm:$0xff] }
 0x442   :  { %v1224_v57 = vsel %vm1223_vm5, %v2005_v6, %v1220_v51  ;;  %vm1262_vm11 = vmor %vm1260_vm10, %vm1261_vm9 }
 0x443   :  { %v1229_v61 = vsel %vm1226_vm7, %v1228_v32, %v1224_v57  ;;  %v1243_v1 = vsel %vm1242_vm6, %v2007_v33, %v1239_v41  ;;  %v1257_v2 = vsub.f32 1.0, %v1256_v58  ;;  %v1590_v32 = vld [vmem:[%s3856_s4 + $0x30] sm:$0xff] }
 0x444   :  { %v1248_v62 = vsel %vm1245_vm8, %v1247_v56, %v1243_v1  ;;  %v1271_v13 = vmul.f32 %v2011_v60, %v1229_v61  ;;  %v1586_v61 = vld [vmem:[%s3856_s4 + $0x10] sm:$0xff] }
 0x445   :  { %v1270_v14 = vmul.f32 %v1248_v62, %v3522_v45  ;;  %v1258_v8 = vmul.f32 %v2009_v39, %v1257_v2 }
 0x447   :  { %v3594_v49 = vadd.f32 %v1271_v13, %v1270_v14  ;;  %v1259_v24 = vadd.f32 %v2009_v39, %v1258_v8 }
 0x449   :  { %2012 = vtanh.f32 %v3594_v49  ;;  %v1263_v18 = vsel %vm1262_vm11, %v2009_v39, %v1259_v24 }
 0x44a   :  { %v1268_v16 = vsel %vm1265_vm12, %v1267_v12, %v1263_v18 }
 0x44f   :  { %v2013_v22 = vpop.eup %2012 }
 0x450   :  { %v1274_v11 = vmul.f32 %v2013_v22, %v1268_v16 }
 0x452   :  { %1298 = vmatmul.f32.vlgmr.msrb.gmra.mxu0 %v1274_v11  ;;  %1318 = vmatmul.f32.vlgmr.msrb.gmra.mxu1 %v1274_v11 }
 0x453   :  { %1338 = vmatmul.f32.vlgmr.msra.gmra.mxu2 %v1274_v11  ;;  %1358 = vmatmul.f32.vlgmr.msra.gmra.mxu3 %v1274_v11 }
 0x454   :  { %1625 = vmatpush.msrb.mxu0 %v1596_v26  ;;  %1645 = vmatpush.msrb.mxu1 %v1597_v27  ;;  %v1786_v26 = vld [vmem:[%s3858_s7 + $0x70] sm:$0xff] }
 0x455   :  { %1685 = vmatpush.msra.mxu3 %v1599_v28  ;;  %1665 = vmatpush.msra.mxu2 %v1598_v46  ;;  %v1766_v27 = vld [vmem:[%s3857_s6 + $0x50] sm:$0xff]  ;;  %v1785_v28 = vld [vmem:[%s3858_s7 + $0x68] sm:$0xff] }
 0x456   :  { %1626 = vmatpush.msrb.mxu0 %v1592_v47  ;;  %1646 = vmatpush.msrb.mxu1 %v1593_v44  ;;  %v1765_v47 = vld [vmem:[%s3857_s6 + $0x48] sm:$0xff]  ;;  %v1784_v44 = vld [vmem:[%s3858_s7 + $0x60] sm:$0xff] }
 0x457   :  { %1686 = vmatpush.msra.mxu3 %v1595_v40  ;;  %1666 = vmatpush.msra.mxu2 %v1594_v52  ;;  %v1764_v40 = vld [vmem:[%s3857_s6 + $0x40] sm:$0xff] }
 0x458   :  { %1627 = vmatpush.msrb.mxu0 %v1588_v30  ;;  %1647 = vmatpush.msrb.mxu1 %v1589_v31 }
 0x459   :  { %1687 = vmatpush.msra.mxu3 %v1591_v48  ;;  %1667 = vmatpush.msra.mxu2 %v1590_v32  ;;  %v1763_v48 = vld [vmem:[%s3857_s6 + $0x38] sm:$0xff] }
 0x45a   :  { %1628 = vmatpush.msrb.mxu0 %v1584_v43  ;;  %1648 = vmatpush.msrb.mxu1 %v1585_v35  ;;  %v4159_v35 = vld [vmem:[#allocation32_spill] sm:$0xff]  ;;  %v4160_v32 = vld [vmem:[#allocation54_spill] sm:$0xff] }
 0x45b   :  { %1688 = vmatpush.msra.mxu3 %v1587_v29  ;;  %1668 = vmatpush.msra.mxu2 %v1586_v61  ;;  %v3728_v29 = vld [vmem:[%s3859_s5] sm:$0xf] }
 0x45c   :  { %v1602_v46 = vperm.slane %v3728_v29, 0  ;;  %v1603_v52 = vperm.slane %v3728_v29, 1 }
 0x4cf   :  { %v1299_v45 = vpop.f32.mrf.mxu0  ;;  %v1319_v36 = vpop.f32.mrf.mxu1 }
 0x4d0   :  { %v1362_v15 = vadd.f32 %v1299_v45, %v4154_v23  ;;  %v1363_v9 = vadd.f32 %v1319_v36, %v4155_v4 }
 0x4d2   :  { %v1895_v3 = vmul.f32 -1.442695, %v1362_v15  ;;  %v1896_v7 = vmul.f32 -1.442695, %v1363_v9 }
 0x4d4   :  { %2014 = vpow2.f32 %v1895_v3 }
 0x4d5   :  { %2016 = vpow2.f32 %v1896_v7 }
 0x4d6   :  { %v1359_v59 = vpop.f32.mrf.mxu3  ;;  %v1339_v37 = vpop.f32.mrf.mxu2 }
 0x4d7   :  { %v1365_v10 = vadd.f32 %v1359_v59, %v4156_v55  ;;  %v1364_v21 = vadd.f32 %v1339_v37, %v4157_v53  ;;  %v1583_v55 = vld [vmem:[%s3853_s0 + $0x38] sm:$0xff]  ;;  %v1762_v53 = vld [vmem:[%s3857_s6 + $0x30] sm:$0xff] }
 0x4d8   :  { %v1783_v37 = vld [vmem:[%s3858_s7 + $0x58] sm:$0xff] }
 0x4d9   :  { %v1897_v19 = vmul.f32 -1.442695, %v1365_v10  ;;  %v1771_v10 = vld [vmem:[%s3857_s6 + $0x78] sm:$0xff] }
 0x4da   :  { %v2015_v0 = vpop.eup %2014 }
 0x4db   :  { %v2017_v5 = vpop.eup %2016  ;;  %v3600_v17 = vadd.f32 1.0, %v2015_v0  ;;  %2018 = vpow2.f32 %v1897_v19  ;;  %v1770_v19 = vld [vmem:[%s3857_s6 + $0x70] sm:$0xff]  ;;  %v1769_v0 = vld [vmem:[%s3857_s6 + $0x68] sm:$0xff] }
 0x4dc   :  { %v3602_v20 = vadd.f32 1.0, %v2017_v5  ;;  %v1768_v5 = vld [vmem:[%s3857_s6 + $0x60] sm:$0xff] }
 0x4dd   :  { %2020 = vrcp.f32 %v3600_v17  ;;  %v1381_v51 = vand.u32 2147483648, %v3600_v17  ;;  %v1379_v56 = vand.u32 2147483647, %v3600_v17  ;;  %vm1375_vm15 = vweird.f32 %v3600_v17 }
 0x4de   :  { %2022 = vrcp.f32 %v3602_v20  ;;  %v1400_v41 = vand.u32 2147483648, %v3602_v20  ;;  %v1398_v60 = vand.u32 2147483647, %v3602_v20  ;;  %vm1394_vm1 = vweird.f32 %v3602_v20 }
 0x4df   :  { %v1382_v62 = vor.u32 1.1754944e-38, %v1381_v51  ;;  %vm1380_vm4 = vcmp.eq.f32.partialorder %v1379_v56, 8.507059e+37 }
 0x4e0   :  { %v1401_v8 = vor.u32 1.1754944e-38, %v1400_v41  ;;  %vm1399_vm5 = vcmp.eq.f32.partialorder %v1398_v60, 8.507059e+37  ;;  %v1759_v60 = vld [vmem:[%s3857_s6 + $0x18] sm:$0xff] }
 0x4e1   :  { %v2019_v6 = vpop.eup %2018 }
 0x4e2   :  { %v3639_v33 = vadd.f32 1.0, %v2019_v6  ;;  %v4158_v6 = vld [vmem:[#allocation31_spill] sm:$0xff] }
 0x4e3   :  { %v2021_v54 = vpop.eup %2020 }
 0x4e4   :  { %v2023_v42 = vpop.eup %2022  ;;  %v1371_v38 = vmul.f32 %v2021_v54, %v3600_v17  ;;  %2024 = vrcp.f32 %v3639_v33  ;;  %vm1376_vm13 = vweird.f32 %v2021_v54  ;;  %v1420_v15 = vand.u32 2147483648, %v3639_v33  ;;  %v1787_v17 = vld [vmem:[%s3858_s7 + $0x78] sm:$0xff] }
 0x4e5   :  { %v1390_v34 = vmul.f32 %v2023_v42, %v3602_v20  ;;  %2026 = vtanh.f32 %v1364_v21  ;;  %vm1395_vm14 = vweird.f32 %v2023_v42  ;;  %vm1377_vm2 = vmor %vm1375_vm15, %vm1376_vm13  ;;  %vm1414_vm7 = vweird.f32 %v3639_v33  ;;  %v1767_v20 = vld [vmem:[%s3857_s6 + $0x58] sm:$0xff] }
 0x4e6   :  { %v1372_v50 = vsub.f32 1.0, %v1371_v38  ;;  %vm1396_vm3 = vmor %vm1394_vm1, %vm1395_vm14  ;;  %v1418_v4 = vand.u32 2147483647, %v3639_v33  ;;  %v1421_v3 = vor.u32 1.1754944e-38, %v1420_v15  ;;  %v1781_v38 = vld [vmem:[%s3858_s7 + $0x48] sm:$0xff] }
 0x4e7   :  { %v1391_v39 = vsub.f32 1.0, %v1390_v34  ;;  %v1761_v34 = vld [vmem:[%s3857_s6 + $0x28] sm:$0xff] }
 0x4e8   :  { %v1373_v58 = vmul.f32 %v2021_v54, %v1372_v50  ;;  %vm1419_vm9 = vcmp.eq.f32.partialorder %v1418_v4, 8.507059e+37  ;;  %v1780_v50 = vld [vmem:[%s3858_s7 + $0x40] sm:$0xff] }
 0x4e9   :  { %v1392_v57 = vmul.f32 %v2023_v42, %v1391_v39  ;;  %v1760_v39 = vld [vmem:[%s3857_s6 + $0x20] sm:$0xff] }
 0x4ea   :  { %v2025_v1 = vpop.eup %2024  ;;  %v1374_v2 = vadd.f32 %v2021_v54, %v1373_v58 }
 0x4eb   :  { %v1393_v13 = vadd.f32 %v2023_v42, %v1392_v57  ;;  %v1410_v14 = vmul.f32 %v2025_v1, %v3639_v33  ;;  %v2027_v25 = vpop.eup %2026  ;;  %vm1415_vm6 = vweird.f32 %v2025_v1  ;;  %v1779_v57 = vld [vmem:[%s3858_s7 + $0x38] sm:$0xff] }
 0x4ec   :  { %v1378_v24 = vsel %vm1377_vm2, %v2021_v54, %v1374_v2  ;;  %vm1416_vm8 = vmor %vm1414_vm7, %vm1415_vm6  ;;  %v1782_v54 = vld [vmem:[%s3858_s7 + $0x50] sm:$0xff] }
 0x4ed   :  { %v1383_v63 = vsel %vm1380_vm4, %v1382_v62, %v1378_v24  ;;  %v1397_v18 = vsel %vm1396_vm3, %v2023_v42, %v1393_v13  ;;  %v1411_v12 = vsub.f32 1.0, %v1410_v14  ;;  %v1778_v62 = vld [vmem:[%s3858_s7 + $0x30] sm:$0xff] }
 0x4ee   :  { %v1402_v22 = vsel %vm1399_vm5, %v1401_v8, %v1397_v18  ;;  %v1425_v16 = vmul.f32 %v2027_v25, %v1383_v63  ;;  %v1758_v13 = vld [vmem:[%s3857_s6 + $0x10] sm:$0xff]  ;;  %v1605_v18 = vperm.slane %v3728_v29, 3 }
 0x4ef   :  { %v1424_v11 = vmul.f32 %v1402_v22, %v3594_v49  ;;  %v1412_v45 = vmul.f32 %v2025_v1, %v1411_v12  ;;  %v1777_v12 = vld [vmem:[%s3858_s7 + $0x28] sm:$0xff] }
 0x4f0   :  { %v1757_v22 = vld [vmem:[%s3857_s6 + $0x8] sm:$0xff] }
 0x4f1   :  { %v3668_v36 = vadd.f32 %v1425_v16, %v1424_v11  ;;  %v1413_v23 = vadd.f32 %v2025_v1, %v1412_v45  ;;  %v1776_v11 = vld [vmem:[%s3858_s7 + $0x20] sm:$0xff] }
 0x4f2   :  { %v1756_v45 = vld [vmem:[%s3857_s6] sm:$0xff] }
 0x4f3   :  { %2028 = vtanh.f32 %v3668_v36  ;;  %v1417_v9 = vsel %vm1416_vm8, %v2025_v1, %v1413_v23  ;;  %v1775_v23 = vld [vmem:[%s3858_s7 + $0x18] sm:$0xff] }
 0x4f4   :  { %v1422_v59 = vsel %vm1419_vm9, %v1421_v3, %v1417_v9  ;;  %v1774_v3 = vld [vmem:[%s3858_s7 + $0x10] sm:$0xff] }
 0x4f9   :  { %v2029_v7 = vpop.eup %2028 }
 0x4fa   :  { %v1428_v49 = vmul.f32 %v2029_v7, %v1422_v59 }
 0x4fc   :  { %1452 = vmatmul.f32.vlgmr.msra.gmra.mxu0 %v1428_v49  ;;  %1472 = vmatmul.f32.vlgmr.msra.gmra.mxu1 %v1428_v49 }
 0x4fd   :  { %1492 = vmatmul.f32.vlgmr.msrb.gmra.mxu2 %v1428_v49  ;;  %1512 = vmatmul.f32.vlgmr.msrb.gmra.mxu3 %v1428_v49  ;;  %v1773_v49 = vld [vmem:[%s3858_s7 + $0x8] sm:$0xff] }
 0x4fe   :  { %1808 = vmatpush.msra.mxu1 %v1771_v10  ;;  %1788 = vmatpush.msra.mxu0 %v1787_v17 }
 0x500   :  { %1809 = vmatpush.msra.mxu1 %v1770_v19  ;;  %1789 = vmatpush.msra.mxu0 %v1786_v26 }
 0x502   :  { %1810 = vmatpush.msra.mxu1 %v1769_v0  ;;  %1790 = vmatpush.msra.mxu0 %v1785_v28  ;;  %v4161_v0 = vld [vmem:[#allocation53_spill] sm:$0xff] }
 0x504   :  { %1901 = vmatmul.msk.f32.vlgmr.msrb.gmra.mxu0 %vm66_vm0, %v1583_v55  ;;  %1902 = vmatmul.msk.f32.vlgmr.msrb.gmra.mxu1 %vm66_vm0, %v1583_v55 }
 0x505   :  { %1904 = vmatmul.msk.f32.vlgmr.msra.gmra.mxu3 %vm66_vm0, %v1583_v55  ;;  %1903 = vmatmul.msk.f32.vlgmr.msra.gmra.mxu2 %vm66_vm0, %v1583_v55 }
 0x506   :  { %1811 = vmatpush.msra.mxu1 %v1768_v5  ;;  %1791 = vmatpush.msra.mxu0 %v1784_v44 }
 0x508   :  { %1812 = vmatpush.msra.mxu1 %v1767_v20  ;;  %1792 = vmatpush.msra.mxu0 %v1783_v37  ;;  %v1772_v20 = vld [vmem:[%s3858_s7] sm:$0xff] }
 0x50a   :  { %1813 = vmatpush.msra.mxu1 %v1766_v27  ;;  %1793 = vmatpush.msra.mxu0 %v1782_v54 }
 0x50c   :  { %1814 = vmatpush.msra.mxu1 %v1765_v47  ;;  %1794 = vmatpush.msra.mxu0 %v1781_v38 }
 0x50e   :  { %1815 = vmatpush.msra.mxu1 %v1764_v40  ;;  %1795 = vmatpush.msra.mxu0 %v1780_v50 }
 0x510   :  { %1816 = vmatpush.msra.mxu1 %v1763_v48  ;;  %1796 = vmatpush.msra.mxu0 %v1779_v57 }
 0x512   :  { %1817 = vmatpush.msra.mxu1 %v1762_v53  ;;  %1797 = vmatpush.msra.mxu0 %v1778_v62 }
 0x514   :  { %1818 = vmatpush.msra.mxu1 %v1761_v34  ;;  %1798 = vmatpush.msra.mxu0 %v1777_v12 }
 0x516   :  { %1819 = vmatpush.msra.mxu1 %v1760_v39  ;;  %1799 = vmatpush.msra.mxu0 %v1776_v11 }
 0x518   :  { %1820 = vmatpush.msra.mxu1 %v1759_v60  ;;  %1800 = vmatpush.msra.mxu0 %v1775_v23 }
 0x51a   :  { %1821 = vmatpush.msra.mxu1 %v1758_v13  ;;  %1801 = vmatpush.msra.mxu0 %v1774_v3 }
 0x51c   :  { %1822 = vmatpush.msra.mxu1 %v1757_v22  ;;  %1802 = vmatpush.msra.mxu0 %v1773_v49 }
 0x51e   :  { %1823 = vmatpush.msra.mxu1 %v1756_v45  ;;  %1803 = vmatpush.msra.mxu0 %v1772_v20 }
 0x579   :  { %v1453_v30 = vpop.f32.mrf.mxu0  ;;  %v1473_v31 = vpop.f32.mrf.mxu1 }
 0x57a   :  { %v1516_v43 = vadd.f32 %v1453_v30, %v4158_v6  ;;  %v1517_v33 = vadd.f32 %v1473_v31, %v4159_v35  ;;  %v1604_v31 = vperm.slane %v3728_v29, 2 }
 0x57c   :  { %v1898_v21 = vmul.f32 -1.442695, %v1516_v43  ;;  %v1899_v42 = vmul.f32 -1.442695, %v1517_v33 }
 0x57e   :  { %2030 = vpow2.f32 %v1898_v21 }
 0x57f   :  { %2032 = vpow2.f32 %v1899_v42 }
 0x580   :  { %v1513_v51 = vpop.f32.mrf.mxu3  ;;  %v1493_v4 = vpop.f32.mrf.mxu2 }
 0x581   :  { %v1519_v41 = vadd.f32 %v1513_v51, %v4160_v32  ;;  %v1630_v58 = vpop.f32.mrf.mxu0  ;;  %v1650_v56 = vpop.f32.mrf.mxu1  ;;  %v1518_v5 = vadd.f32 %v1493_v4, %v4161_v0 }
 0x582   :  { %v1631_v61 = vadd.f32 %v1630_v58, %v1602_v46  ;;  %v1651_v1 = vadd.f32 %v1650_v56, %v1603_v52 }
 0x583   :  { %v1900_v2 = vmul.f32 -1.442695, %v1519_v41 }
 0x584   :  { %v2031_v14 = vpop.eup %2030  ;;  %v1905_v8 = vmul.f32 -1.442695, %v1631_v61  ;;  %v1906_v63 = vmul.f32 -1.442695, %v1651_v1 }
 0x585   :  { %v2033_v24 = vpop.eup %2032  ;;  %v3763_v25 = vadd.f32 1.0, %v2031_v14  ;;  %2034 = vpow2.f32 %v1900_v2 }
 0x586   :  { %v3772_v16 = vadd.f32 1.0, %v2033_v24  ;;  %2036 = vpow2.f32 %v1905_v8 }
 0x587   :  { %2038 = vrcp.f32 %v3763_v25  ;;  %v1533_v40 = vand.u32 2147483647, %v3763_v25  ;;  %v1535_v6 = vand.u32 2147483648, %v3763_v25  ;;  %vm1529_vm12 = vweird.f32 %v3763_v25 }
 0x588   :  { %2040 = vrcp.f32 %v3772_v16  ;;  %v1690_v15 = vpop.f32.mrf.mxu3  ;;  %v1554_v48 = vand.u32 2147483648, %v3772_v16  ;;  %v1670_v43 = vpop.f32.mrf.mxu2  ;;  %v1552_v33 = vand.u32 2147483647, %v3772_v16  ;;  %vm1548_vm10 = vweird.f32 %v3772_v16 }
 0x589   :  { %2042 = vpow2.f32 %v1906_v63  ;;  %v1691_v9 = vadd.f32 %v1690_v15, %v1605_v18  ;;  %vm1534_vm13 = vcmp.eq.f32.partialorder %v1533_v40, 8.507059e+37  ;;  %v1671_v38 = vadd.f32 %v1670_v43, %v1604_v31 }
 0x58a   :  { %v1555_v46 = vor.u32 1.1754944e-38, %v1554_v48  ;;  %v1536_v52 = vor.u32 1.1754944e-38, %v1535_v6  ;;  %vm1553_vm1 = vcmp.eq.f32.partialorder %v1552_v33, 8.507059e+37 }
 0x58b   :  { %v2035_v7 = vpop.eup %2034  ;;  %v1907_v59 = vmul.f32 -1.442695, %v1691_v9 }
 0x58c   :  { %v2037_v55 = vpop.eup %2036  ;;  %v3791_v10 = vadd.f32 1.0, %v2035_v7 }
 0x58d   :  { %v2039_v19 = vpop.eup %2038  ;;  %v3794_v17 = vadd.f32 1.0, %v2037_v55  ;;  %2044 = vpow2.f32 %v1907_v59 }
 0x58e   :  { %v2041_v26 = vpop.eup %2040  ;;  %v1525_v27 = vmul.f32 %v2039_v19, %v3763_v25  ;;  %2046 = vrcp.f32 %v3791_v10  ;;  %vm1530_vm0 = vweird.f32 %v2039_v19  ;;  %v1574_v63 = vand.u32 2147483648, %v3791_v10 }
 0x58f   :  { %v2043_v28 = vpop.eup %2042  ;;  %v1544_v47 = vmul.f32 %v2041_v26, %v3772_v16  ;;  %2048 = vrcp.f32 %v3794_v17  ;;  %vm1549_vm11 = vweird.f32 %v2041_v26  ;;  %vm1531_vm14 = vmor %vm1529_vm12, %vm1530_vm0  ;;  %v1708_v60 = vand.u32 2147483648, %v3794_v17 }
 0x590   :  { %v1526_v44 = vsub.f32 1.0, %v1525_v27  ;;  %v3804_v30 = vadd.f32 1.0, %v2043_v28  ;;  %2050 = vtanh.f32 %v1518_v5  ;;  %vm1550_vm15 = vmor %vm1548_vm10, %vm1549_vm11  ;;  %vm1702_vm2 = vweird.f32 %v3794_v17 }
 0x591   :  { %v1545_v37 = vsub.f32 1.0, %v1544_v47  ;;  %v1706_v25 = vand.u32 2147483647, %v3794_v17  ;;  %v1709_v16 = vor.u32 1.1754944e-38, %v1708_v60  ;;  %vm1568_vm8 = vweird.f32 %v3791_v10 }
 0x592   :  { %v1527_v35 = vmul.f32 %v2039_v19, %v1526_v44  ;;  %2052 = vrcp.f32 %v3804_v30  ;;  %v1727_v22 = vand.u32 2147483648, %v3804_v30  ;;  %v1572_v7 = vand.u32 2147483647, %v3791_v10 }
 0x593   :  { %v2045_v54 = vpop.eup %2044  ;;  %v1546_v53 = vmul.f32 %v2041_v26, %v1545_v37  ;;  %vm1707_vm7 = vcmp.eq.f32.partialorder %v1706_v25, 8.507059e+37  ;;  %vm1721_vm9 = vweird.f32 %v3804_v30  ;;  %v1575_v20 = vor.u32 1.1754944e-38, %v1574_v63 }
 0x594   :  { %v3813_v29 = vpop.eup %2046  ;;  %v1528_v21 = vadd.f32 %v2039_v19, %v1527_v35  ;;  %v3815_v42 = vadd.f32 1.0, %v2045_v54  ;;  %vm1573_vm12 = vcmp.eq.f32.partialorder %v1572_v7, 8.507059e+37  ;;  %v1917_v54 = vld [vmem:[%s3860_s8] ss:$0 sm:$0xff] }
 0x595   :  { %v2049_v34 = vpop.eup %2048  ;;  %v1547_v50 = vadd.f32 %v2041_v26, %v1546_v53  ;;  %v1564_v39 = vmul.f32 %v3813_v29, %v3791_v10  ;;  %vm1569_vm4 = vweird.f32 %v3813_v29 }
 0x596   :  { %v1532_v51 = vsel %vm1531_vm14, %v2039_v19, %v1528_v21  ;;  %v1698_v32 = vmul.f32 %v2049_v34, %v3794_v17  ;;  %2054 = vrcp.f32 %v3815_v42  ;;  %v2051_v41 = vpop.eup %2050  ;;  %vm1703_vm3 = vweird.f32 %v2049_v34  ;;  %vm1570_vm0 = vmor %vm1568_vm8, %vm1569_vm4 }
 0x597   :  { %v1537_v58 = vsel %vm1534_vm13, %v1536_v52, %v1532_v51  ;;  %v1551_v56 = vsel %vm1550_vm15, %v2041_v26, %v1547_v50  ;;  %v1565_v57 = vsub.f32 1.0, %v1564_v39  ;;  %2056 = vtanh.f32 %v1671_v38  ;;  %vm1704_vm5 = vmor %vm1702_vm2, %vm1703_vm3 }
 0x598   :  { %v2053_v61 = vpop.eup %2052  ;;  %v1556_v1 = vsel %vm1553_vm1, %v1555_v46, %v1551_v56  ;;  %v1579_v2 = vmul.f32 %v2051_v41, %v1537_v58  ;;  %v1699_v62 = vsub.f32 1.0, %v1698_v32  ;;  %v1728_v19 = vor.u32 1.1754944e-38, %v1727_v22 }
 0x599   :  { %v1578_v13 = vmul.f32 %v1556_v1, %v3668_v36  ;;  %v1717_v14 = vmul.f32 %v2053_v61, %v3804_v30  ;;  %v1566_v8 = vmul.f32 %v3813_v29, %v1565_v57  ;;  %v1725_v36 = vand.u32 2147483647, %v3804_v30 }
 0x59a   :  { %v1700_v24 = vmul.f32 %v2049_v34, %v1699_v62  ;;  %vm1722_vm6 = vweird.f32 %v2053_v61  ;;  %v1747_v31 = vand.u32 2147483648, %v3815_v42  ;;  %vm1741_vm14 = vweird.f32 %v3815_v42 }
 0x59b   :  { %v1580_v18 = vadd.f32 %v1579_v2, %v1578_v13  ;;  %v1718_v12 = vsub.f32 1.0, %v1717_v14  ;;  %v1567_v23 = vadd.f32 %v3813_v29, %v1566_v8  ;;  %vm1723_vm10 = vmor %vm1721_vm9, %vm1722_vm6  ;;  %vm1726_vm11 = vcmp.eq.f32.partialorder %v1725_v36, 8.507059e+37 }
 0x59c   :  { %v2055_v11 = vpop.eup %2054  ;;  %v1701_v45 = vadd.f32 %v2049_v34, %v1700_v24  ;;  %v1745_v37 = vand.u32 2147483647, %v3815_v42  ;;  %v1748_v6 = vor.u32 1.1754944e-38, %v1747_v31 }
 0x59d   :  { %2058 = vtanh.f32 %v1580_v18  ;;  %v1719_v15 = vmul.f32 %v2053_v61, %v1718_v12  ;;  %v1737_v4 = vmul.f32 %v2055_v11, %v3815_v42  ;;  %v2057_v9 = vpop.eup %2056  ;;  %v1571_v0 = vsel %vm1570_vm0, %v3813_v29, %v1567_v23 }
 0x59e   :  { %v1705_v3 = vsel %vm1704_vm5, %v2049_v34, %v1701_v45  ;;  %v1576_v47 = vsel %vm1573_vm12, %v1575_v20, %v1571_v0  ;;  %vm1742_vm13 = vweird.f32 %v2055_v11  ;;  %vm1746_vm1 = vcmp.eq.f32.partialorder %v1745_v37, 8.507059e+37 }
 0x59f   :  { %v1738_v59 = vsub.f32 1.0, %v1737_v4  ;;  %v1710_v49 = vsel %vm1707_vm7, %v1709_v16, %v1705_v3  ;;  %v1720_v55 = vadd.f32 %v2053_v61, %v1719_v15  ;;  %vm1743_vm15 = vmor %vm1741_vm14, %vm1742_vm13 }
 0x5a0   :  { %v1752_v17 = vmul.f32 %v2057_v9, %v1710_v49 }
 0x5a1   :  { %v1724_v5 = vsel %vm1723_vm10, %v2053_v61, %v1720_v55  ;;  %v1739_v27 = vmul.f32 %v2055_v11, %v1738_v59 }
 0x5a2   :  { %v1729_v26 = vsel %vm1726_vm11, %v1728_v19, %v1724_v5 }
 0x5a3   :  { %v2059_v10 = vpop.eup %2058  ;;  %v1751_v28 = vmul.f32 0.0, %v1729_v26  ;;  %v1740_v30 = vadd.f32 %v2055_v11, %v1739_v27 }
 0x5a4   :  { %v1582_v44 = vmul.f32 %v2059_v10, %v1576_v47 }
 0x5a5   :  { %v1753_v40 = vadd.f32 %v1752_v17, %v1751_v28  ;;  %v1744_v48 = vsel %vm1743_vm15, %v2055_v11, %v1740_v30 }
 0x5a6   :  { %1824 = vmatmul.f32.vlgmr.msra.gmra.mxu1 %v1582_v44  ;;  %v1749_v35 = vsel %vm1746_vm1, %v1748_v6, %v1744_v48 }
 0x5a7   :  { %2060 = vtanh.f32 %v1753_v40 }
 0x5ad   :  { %v2061_v43 = vpop.eup %2060 }
 0x5ae   :  { %v1755_v33 = vmul.f32 %v2061_v43, %v1749_v35 }
 0x5b0   :  { %1804 = vmatmul.f32.vlgmr.msra.gmra.mxu0 %v1755_v33 }
 0x623   :  { %v1825_v53 = vpop.f32.mrf.mxu1 }
 0x62d   :  { %v1805_v29 = vpop.f32.mrf.mxu0 }
 0x62e   :  { %v1826_v21 = vadd.f32 %v1825_v53, %v1805_v29 }
 0x630   :  { %v1832_v38 = vadd.f32 %v1917_v54, %v1826_v21 }
 0x632   :  { %1833 = vst [vmem:[%s3861_s9] sm:$0xff] %v1832_v38 }

</bundles_post_ra>
